<compile_context>
chip_gen: v6e
topology: v6e:2x2x1
jax: 0.10.0
libtpu: 0.0.40
codegen_flags: <defaults>
</compile_context>

<pallas_src>
import jax
import jax.numpy as jnp
from jax.experimental import pallas as pl
from jax.experimental.pallas import tpu as pltpu

HIDDEN = 128   # hidden_dim of the PyTorch module


# ---------------------------------------------------------------------------
# Fused BiGRU + attention-pooling kernel.
# One grid program per modality ("parallel"):
#   - run forward & backward GRU recurrences over T (input gates precomputed),
#   - attention weighting: alpha = softmax_T(h @ w_a + b_a),
#   - pooled feature = mean_T(alpha * h)   (== the reference .mean(dim=1) of
#     the attention-weighted BiGRU sequence),
#   - write the (B, 2H) pooled feature into a lane-dense (B, 3*2H) output slab.
# Gate order follows torch.nn.GRU: [r, z, n]; b_hh is added before the r-gate
# multiply, as in torch.
# ---------------------------------------------------------------------------
def _bigru_attnpool_kernel(gi_f_ref, gi_b_ref, whh_f_ref, whh_b_ref,
                           bhh_f_ref, bhh_b_ref, wa_ref, ba_ref,
                           out_ref, hseq_ref):
    T, B, _ = gi_f_ref.shape
    H = whh_f_ref.shape[0]

    whh_f = whh_f_ref[...]          # (H, 3H) bf16
    whh_b = whh_b_ref[...]
    bhh_f = bhh_f_ref[...]          # (1, 3H) f32
    bhh_b = bhh_b_ref[...]

    def gru_step(gi_t, h_prev, whh, bhh):
        gh = jnp.dot(h_prev.astype(whh.dtype), whh,
                     preferred_element_type=jnp.float32) + bhh
        r = jax.nn.sigmoid(gi_t[:, 0:H] + gh[:, 0:H])
        z = jax.nn.sigmoid(gi_t[:, H:2 * H] + gh[:, H:2 * H])
        n = jnp.tanh(gi_t[:, 2 * H:3 * H] + r * gh[:, 2 * H:3 * H])
        return (1.0 - z) * n + z * h_prev

    h_f = jnp.zeros((B, H), jnp.float32)
    h_b = jnp.zeros((B, H), jnp.float32)
    # T is tiny and static: fully unrolled, all indices static (128-aligned
    # lane slices -> plain vector stores, tiny live set).
    for t in range(T):
        rt = T - 1 - t
        h_f = gru_step(gi_f_ref[t], h_f, whh_f, bhh_f)
        h_b = gru_step(gi_b_ref[rt], h_b, whh_b, bhh_b)
        hseq_ref[t, :, 0:H] = h_f
        hseq_ref[rt, :, H:2 * H] = h_b

    # Attention weighting + mean pooling over time, all in VMEM / f32.
    h = hseq_ref[...]                                            # (T, B, 2H)
    wa = wa_ref[...][None, :, :]                                 # (1, 1, 2H)
    s = jnp.sum(h * wa, axis=-1, keepdims=True) + ba_ref[...]    # (T, B, 1)
    s = s - jnp.max(s, axis=0, keepdims=True)
    e = jnp.exp(s)
    alpha = e * pl.reciprocal(jnp.sum(e, axis=0, keepdims=True), approx=True)
    pooled = jnp.sum(alpha * h, axis=0) * (1.0 / T)              # (B, 2H)
    out_ref[...] = pooled.astype(out_ref.dtype)


def bigru_attention_pool(gi_f, gi_b, whh_f, whh_b, bhh_f, bhh_b, wa, ba):
    M, T, B, G = gi_f.shape            # (3, T, B, 3H)
    H = whh_f.shape[1]
    H2 = 2 * H
    seq_spec = pl.BlockSpec((None, T, B, G), lambda m: (m, 0, 0, 0))
    whh_spec = pl.BlockSpec((None, H, G), lambda m: (m, 0, 0))
    bhh_spec = pl.BlockSpec((None, 1, G), lambda m: (m, 0, 0))
    wa_spec = pl.BlockSpec((None, 1, H2), lambda m: (m, 0, 0))
    ba_spec = pl.BlockSpec((None, 1, 1), lambda m: (m, 0, 0))
    return pl.pallas_call(
        _bigru_attnpool_kernel,
        out_shape=jax.ShapeDtypeStruct((B, M * H2), jnp.float32),
        grid=(M,),
        in_specs=[seq_spec, seq_spec, whh_spec, whh_spec,
                  bhh_spec, bhh_spec, wa_spec, ba_spec],
        out_specs=pl.BlockSpec((B, H2), lambda m: (0, m)),
        scratch_shapes=[pltpu.VMEM((T, B, H2), jnp.float32)],
        compiler_params=pltpu.CompilerParams(dimension_semantics=("parallel",)),
    )(gi_f, gi_b, whh_f, whh_b, bhh_f, bhh_b, wa, ba)


# ---------------------------------------------------------------------------
# XLA-side pieces (tiny; per review: leave below-kernel-overhead ops to XLA).
# ---------------------------------------------------------------------------
def _precompute_input_gates(x, mp):
    """x: (B, T, D) -> time-major (T, B, 3H) input gate activations (fwd, bwd)."""
    B, T, D = x.shape
    w = jnp.concatenate([mp["wih_f"], mp["wih_b"]], axis=1)          # (D, 6H) bf16
    gi = jnp.dot(x.reshape(B * T, D).astype(w.dtype), w,
                 preferred_element_type=jnp.float32)                  # (B*T, 6H)
    gi = gi.reshape(B, T, -1).transpose(1, 0, 2)                      # (T, B, 6H)
    G = mp["wih_f"].shape[1]
    return gi[..., :G] + mp["bih_f"], gi[..., G:] + mp["bih_b"]


def _graph_forward(gp, node_features, edge_index, edge_type):
    # TODO(synk): GraphConstructor / GRNN bodies are not part of the provided
    # reference source; approximated as Linear+ReLU node encoding followed by
    # one relational mean-aggregation + GRU-cell update, in plain XLA (the
    # edge_index scatter/gather has no clean Pallas mapping at this size).
    h = jax.nn.relu(jnp.dot(node_features, gp["wg"]) + gp["bg"])      # (N, H)
    n_nodes, H = h.shape
    src, dst = edge_index[0], edge_index[1]
    msgs = jnp.einsum("eh,ehk->ek", h[src], gp["wr"][edge_type])       # (E, H)
    agg = jax.ops.segment_sum(msgs, dst, num_segments=n_nodes)
    cnt = jax.ops.segment_sum(jnp.ones((msgs.shape[0], 1), jnp.float32),
                              dst, num_segments=n_nodes)
    m = agg / jnp.maximum(cnt, 1.0)
    gi = jnp.dot(m, gp["wih_g"]) + gp["bih_g"]                         # (N, 3H)
    gh = jnp.dot(h, gp["whh_g"]) + gp["bhh_g"]
    r = jax.nn.sigmoid(gi[:, 0:H] + gh[:, 0:H])
    z = jax.nn.sigmoid(gi[:, H:2 * H] + gh[:, H:2 * H])
    ng = jnp.tanh(gi[:, 2 * H:] + r * gh[:, 2 * H:])
    return (1.0 - z) * ng + z * h


def coattention_forward(params, audio, text, video,
                        node_features, edge_index, edge_type, batch_speaker_ids):
    # --- BiGRU-with-attention branches (fused Pallas kernel) ----------------
    gi_f, gi_b = [], []
    for x, mp in zip((audio, text, video), params["modalities"]):
        gf, gb = _precompute_input_gates(x, mp)
        gi_f.append(gf)
        gi_b.append(gb)
    gi_f = jnp.stack(gi_f, axis=0)     # (3, T, B, 3H)
    gi_b = jnp.stack(gi_b, axis=0)

    # feats lanes: [audio 0:256 | text 256:512 | video 512:768], each already
    # attention-weighted and mean-pooled over time (video per the reference
    # `.mean(dim=1)`).
    # TODO(synk): the reference torch.cat mixes (B,T,256) audio/text with
    # (B,256) pooled video (ndim mismatch torch would reject); audio/text are
    # pooled the same way so the 896-wide projection_layer input is defined.
    feats = bigru_attention_pool(
        gi_f, gi_b, params["whh_f"], params["whh_b"],
        params["bhh_f"], params["bhh_b"], params["wa"], params["ba"])  # (B, 768)

    # --- graph branch --------------------------------------------------------
    graph_output = _graph_forward(params["graph"], node_features,
                                  edge_index, edge_type)               # (N, H)
    # TODO(synk): the reference raises IndexError for out-of-range speaker ids;
    # a traced-value check cannot raise under jit, so the guard is omitted.
    batch_graph_features = jnp.take(graph_output, batch_speaker_ids, axis=0)

    # --- projection (896->512) + classifier (512->C) head in XLA ------------
    combined = jnp.concatenate([feats, batch_graph_features], axis=-1)  # (B, 896)
    proj = jnp.dot(combined.astype(params["wp"].dtype), params["wp"],
                   preferred_element_type=jnp.float32) + params["bp"]   # (B, 512)
    return jnp.dot(proj.astype(params["wf"].dtype), params["wf"],
                   preferred_element_type=jnp.float32) + params["bf"]   # (B, C)


# ---------------------------------------------------------------------------
# Deterministic synthetic parameters (weights stored pre-transposed as
# (in_features, out_features); MXU weights in bf16, biases / VPU weights f32).
# ---------------------------------------------------------------------------
def init_params(key, d_audio, d_text, d_video, hidden, num_classes,
                num_relations=2):
    keys = iter(jax.random.split(key, 64))

    def w(shape, scale=0.08, dtype=jnp.float32):
        return (jax.random.normal(next(keys), shape, jnp.float32) * scale).astype(dtype)

    H, G, H2 = hidden, 3 * hidden, 2 * hidden

    def modality(d):
        return dict(
            wih_f=w((d, G), dtype=jnp.bfloat16),
            wih_b=w((d, G), dtype=jnp.bfloat16),
            bih_f=w((1, G)), bih_b=w((1, G)),
        )

    return dict(
        modalities=[modality(d_audio), modality(d_text), modality(d_video)],
        whh_f=w((3, H, G), dtype=jnp.bfloat16),
        whh_b=w((3, H, G), dtype=jnp.bfloat16),
        bhh_f=w((3, 1, G)), bhh_b=w((3, 1, G)),
        wa=w((3, 1, H2)), ba=w((3, 1, 1)),
        graph=dict(
            wg=w((2304, H)), bg=w((H,)),
            wr=w((num_relations, H, H)),
            wih_g=w((H, G)), whh_g=w((H, G)),
            bih_g=w((G,)), bhh_g=w((G,)),
        ),
        wp=w((3 * H2 + H, 4 * H), dtype=jnp.bfloat16),   # projection: 896 -> 512
        bp=w((1, 4 * H)),
        wf=w((4 * H, num_classes), dtype=jnp.bfloat16),  # fc: 512 -> num_classes
        bf=w((1, num_classes)),
    )


if __name__ == "__main__":
    B, T = 2, 8
    D_AUDIO, D_TEXT, D_VIDEO = 64, 96, 48
    NUM_CLASSES = 6
    N_NODES, N_EDGES, N_REL = 10, 12, 2

    root = jax.random.PRNGKey(0)
    k_a, k_t, k_v, k_n, k_e, k_p = jax.random.split(root, 6)

    audio = jax.random.normal(k_a, (B, T, D_AUDIO), jnp.float32)
    text = jax.random.normal(k_t, (B, T, D_TEXT), jnp.float32)
    video = jax.random.normal(k_v, (B, T, D_VIDEO), jnp.float32)
    node_features = jax.random.normal(k_n, (N_NODES, 2304), jnp.float32)
    edge_index = jax.random.randint(k_e, (2, N_EDGES), 0, N_NODES, jnp.int32)
    edge_type = (jnp.arange(N_EDGES, dtype=jnp.int32) % N_REL).astype(jnp.int32)
    batch_speaker_ids = jnp.array([0, 3], jnp.int32)

    params = init_params(k_p, D_AUDIO, D_TEXT, D_VIDEO, HIDDEN, NUM_CLASSES, N_REL)

    fwd = jax.jit(coattention_forward)
    logits = fwd(params, audio, text, video,
                 node_features, edge_index, edge_type, batch_speaker_ids)
    logits = jax.block_until_ready(logits)

    assert logits.shape == (B, NUM_CLASSES)
    assert bool(jnp.all(jnp.isfinite(logits)))
    print("KERNEL_OK")
</pallas_src>

<mosaic_0001>
module attributes {stable_mosaic.version = 11 : i64} {
  func.func @_bigru_attnpool_kernel(%arg0: i32, %arg1: memref<1x8x2x384xf32, #tpu.memory_space<vmem>>, %arg2: memref<1x8x2x384xf32, #tpu.memory_space<vmem>>, %arg3: memref<1x128x384xbf16, #tpu.memory_space<vmem>>, %arg4: memref<1x128x384xbf16, #tpu.memory_space<vmem>>, %arg5: memref<1x1x384xf32, #tpu.memory_space<vmem>>, %arg6: memref<1x1x384xf32, #tpu.memory_space<vmem>>, %arg7: memref<1x1x256xf32, #tpu.memory_space<vmem>>, %arg8: memref<1x1x1xf32, #tpu.memory_space<vmem>>, %arg9: memref<2x256xf32, #tpu.memory_space<vmem>>, %arg10: memref<8x2x256xf32, #tpu.memory_space<vmem>>) attributes {dimension_semantics = [#tpu.dimension_semantics<parallel>], iteration_bounds = array<i64: 3>, scalar_prefetch = 0 : i64, scratch_operands = 1 : i64, tpu.core_type = #tpu.core_type<tc>, window_params = [{transform_indices = @transform_0, window_bounds = array<i64: 1, 8, 2, 384>}, {transform_indices = @transform_1, window_bounds = array<i64: 1, 8, 2, 384>}, {transform_indices = @transform_2, window_bounds = array<i64: 1, 128, 384>}, {transform_indices = @transform_3, window_bounds = array<i64: 1, 128, 384>}, {transform_indices = @transform_4, window_bounds = array<i64: 1, 1, 384>}, {transform_indices = @transform_5, window_bounds = array<i64: 1, 1, 384>}, {transform_indices = @transform_6, window_bounds = array<i64: 1, 1, 256>}, {transform_indices = @transform_7, window_bounds = array<i64: 1, 1, 1>}, {transform_indices = @transform_8, window_bounds = array<i64: 2, 256>}]} {
    %c0 = arith.constant 0 : index
    %c0_0 = arith.constant 0 : index
    %c0_1 = arith.constant 0 : index
    %0 = vector.load %arg3[%c0, %c0_0, %c0_1] : memref<1x128x384xbf16, #tpu.memory_space<vmem>>, vector<1x128x384xbf16>
    %1 = vector.shape_cast %0 : vector<1x128x384xbf16> to vector<128x384xbf16>
    %c0_2 = arith.constant 0 : index
    %c0_3 = arith.constant 0 : index
    %c0_4 = arith.constant 0 : index
    %2 = vector.load %arg4[%c0_2, %c0_3, %c0_4] : memref<1x128x384xbf16, #tpu.memory_space<vmem>>, vector<1x128x384xbf16>
    %3 = vector.shape_cast %2 : vector<1x128x384xbf16> to vector<128x384xbf16>
    %c0_5 = arith.constant 0 : index
    %c0_6 = arith.constant 0 : index
    %c0_7 = arith.constant 0 : index
    %4 = vector.load %arg5[%c0_5, %c0_6, %c0_7] : memref<1x1x384xf32, #tpu.memory_space<vmem>>, vector<1x1x384xf32>
    %5 = vector.shape_cast %4 : vector<1x1x384xf32> to vector<1x384xf32>
    %c0_8 = arith.constant 0 : index
    %c0_9 = arith.constant 0 : index
    %c0_10 = arith.constant 0 : index
    %6 = vector.load %arg6[%c0_8, %c0_9, %c0_10] : memref<1x1x384xf32, #tpu.memory_space<vmem>>, vector<1x1x384xf32>
    %7 = vector.shape_cast %6 : vector<1x1x384xf32> to vector<1x384xf32>
    %cst = arith.constant 0.000000e+00 : f32
    %8 = vector.broadcast %cst : f32 to vector<2x128xf32>
    %cst_11 = arith.constant 0.000000e+00 : f32
    %9 = vector.broadcast %cst_11 : f32 to vector<2x128xf32>
    %c0_12 = arith.constant 0 : index
    %c0_13 = arith.constant 0 : index
    %c0_14 = arith.constant 0 : index
    %c0_15 = arith.constant 0 : index
    %10 = vector.load %arg1[%c0_12, %c0_13, %c0_14, %c0_15] : memref<1x8x2x384xf32, #tpu.memory_space<vmem>>, vector<1x1x2x384xf32>
    %11 = vector.shape_cast %10 : vector<1x1x2x384xf32> to vector<2x384xf32>
    %12 = arith.truncf %8 : vector<2x128xf32> to vector<2x128xbf16>
    %cst_16 = arith.constant dense<0.000000e+00> : vector<2x384xf32>
    %13 = tpu.matmul %12, %1, %cst_16 {dimension_numbers = #tpu.dot_dimension_numbers<[1], [0], [0], [1], [0, 0, 1, 1], [], []>} : vector<2x128xbf16>, vector<128x384xbf16>, vector<2x384xf32> -> vector<2x384xf32>
    %14 = vector.broadcast %5 : vector<1x384xf32> to vector<2x384xf32>
    %15 = arith.addf %13, %14 : vector<2x384xf32>
    %16 = vector.extract_strided_slice %11 {offsets = [0, 0], sizes = [2, 128], strides = [1, 1]} : vector<2x384xf32> to vector<2x128xf32>
    %17 = vector.extract_strided_slice %15 {offsets = [0, 0], sizes = [2, 128], strides = [1, 1]} : vector<2x384xf32> to vector<2x128xf32>
    %18 = arith.addf %16, %17 : vector<2x128xf32>
    %19 = arith.negf %18 : vector<2x128xf32>
    %20 = math.exp %19 : vector<2x128xf32>
    %cst_17 = arith.constant 1.000000e+00 : f32
    %21 = vector.broadcast %cst_17 : f32 to vector<2x128xf32>
    %22 = arith.addf %21, %20 : vector<2x128xf32>
    %23 = arith.divf %21, %22 : vector<2x128xf32>
    %24 = vector.extract_strided_slice %11 {offsets = [0, 128], sizes = [2, 128], strides = [1, 1]} : vector<2x384xf32> to vector<2x128xf32>
    %25 = vector.extract_strided_slice %15 {offsets = [0, 128], sizes = [2, 128], strides = [1, 1]} : vector<2x384xf32> to vector<2x128xf32>
    %26 = arith.addf %24, %25 : vector<2x128xf32>
    %27 = arith.negf %26 : vector<2x128xf32>
    %28 = math.exp %27 : vector<2x128xf32>
    %cst_18 = arith.constant 1.000000e+00 : f32
    %29 = vector.broadcast %cst_18 : f32 to vector<2x128xf32>
    %30 = arith.addf %29, %28 : vector<2x128xf32>
    %31 = arith.divf %29, %30 : vector<2x128xf32>
    %32 = vector.extract_strided_slice %11 {offsets = [0, 256], sizes = [2, 128], strides = [1, 1]} : vector<2x384xf32> to vector<2x128xf32>
    %33 = vector.extract_strided_slice %15 {offsets = [0, 256], sizes = [2, 128], strides = [1, 1]} : vector<2x384xf32> to vector<2x128xf32>
    %34 = arith.mulf %23, %33 : vector<2x128xf32>
    %35 = arith.addf %32, %34 : vector<2x128xf32>
    %36 = math.tanh %35 : vector<2x128xf32>
    %cst_19 = arith.constant 1.000000e+00 : f32
    %37 = vector.broadcast %cst_19 : f32 to vector<2x128xf32>
    %38 = arith.subf %37, %31 : vector<2x128xf32>
    %39 = arith.mulf %38, %36 : vector<2x128xf32>
    %40 = arith.mulf %31, %8 : vector<2x128xf32>
    %41 = arith.addf %39, %40 : vector<2x128xf32>
    %c0_20 = arith.constant 0 : index
    %c7 = arith.constant 7 : index
    %c0_21 = arith.constant 0 : index
    %c0_22 = arith.constant 0 : index
    %42 = vector.load %arg2[%c0_20, %c7, %c0_21, %c0_22] : memref<1x8x2x384xf32, #tpu.memory_space<vmem>>, vector<1x1x2x384xf32>
    %43 = vector.shape_cast %42 : vector<1x1x2x384xf32> to vector<2x384xf32>
    %44 = arith.truncf %9 : vector<2x128xf32> to vector<2x128xbf16>
    %cst_23 = arith.constant dense<0.000000e+00> : vector<2x384xf32>
    %45 = tpu.matmul %44, %3, %cst_23 {dimension_numbers = #tpu.dot_dimension_numbers<[1], [0], [0], [1], [0, 0, 1, 1], [], []>} : vector<2x128xbf16>, vector<128x384xbf16>, vector<2x384xf32> -> vector<2x384xf32>
    %46 = vector.broadcast %7 : vector<1x384xf32> to vector<2x384xf32>
    %47 = arith.addf %45, %46 : vector<2x384xf32>
    %48 = vector.extract_strided_slice %43 {offsets = [0, 0], sizes = [2, 128], strides = [1, 1]} : vector<2x384xf32> to vector<2x128xf32>
    %49 = vector.extract_strided_slice %47 {offsets = [0, 0], sizes = [2, 128], strides = [1, 1]} : vector<2x384xf32> to vector<2x128xf32>
    %50 = arith.addf %48, %49 : vector<2x128xf32>
    %51 = arith.negf %50 : vector<2x128xf32>
    %52 = math.exp %51 : vector<2x128xf32>
    %cst_24 = arith.constant 1.000000e+00 : f32
    %53 = vector.broadcast %cst_24 : f32 to vector<2x128xf32>
    %54 = arith.addf %53, %52 : vector<2x128xf32>
    %55 = arith.divf %53, %54 : vector<2x128xf32>
    %56 = vector.extract_strided_slice %43 {offsets = [0, 128], sizes = [2, 128], strides = [1, 1]} : vector<2x384xf32> to vector<2x128xf32>
    %57 = vector.extract_strided_slice %47 {offsets = [0, 128], sizes = [2, 128], strides = [1, 1]} : vector<2x384xf32> to vector<2x128xf32>
    %58 = arith.addf %56, %57 : vector<2x128xf32>
    %59 = arith.negf %58 : vector<2x128xf32>
    %60 = math.exp %59 : vector<2x128xf32>
    %cst_25 = arith.constant 1.000000e+00 : f32
    %61 = vector.broadcast %cst_25 : f32 to vector<2x128xf32>
    %62 = arith.addf %61, %60 : vector<2x128xf32>
    %63 = arith.divf %61, %62 : vector<2x128xf32>
    %64 = vector.extract_strided_slice %43 {offsets = [0, 256], sizes = [2, 128], strides = [1, 1]} : vector<2x384xf32> to vector<2x128xf32>
    %65 = vector.extract_strided_slice %47 {offsets = [0, 256], sizes = [2, 128], strides = [1, 1]} : vector<2x384xf32> to vector<2x128xf32>
    %66 = arith.mulf %55, %65 : vector<2x128xf32>
    %67 = arith.addf %64, %66 : vector<2x128xf32>
    %68 = math.tanh %67 : vector<2x128xf32>
    %cst_26 = arith.constant 1.000000e+00 : f32
    %69 = vector.broadcast %cst_26 : f32 to vector<2x128xf32>
    %70 = arith.subf %69, %63 : vector<2x128xf32>
    %71 = arith.mulf %70, %68 : vector<2x128xf32>
    %72 = arith.mulf %63, %9 : vector<2x128xf32>
    %73 = arith.addf %71, %72 : vector<2x128xf32>
    %c0_27 = arith.constant 0 : index
    %c0_28 = arith.constant 0 : index
    %c0_29 = arith.constant 0 : index
    %74 = vector.load %arg10[%c0_27, %c0_28, %c0_29] : memref<8x2x256xf32, #tpu.memory_space<vmem>>, vector<1x2x128xf32>
    %75 = vector.shape_cast %74 : vector<1x2x128xf32> to vector<2x128xf32>
    %76 = vector.shape_cast %41 : vector<2x128xf32> to vector<1x2x128xf32>
    tpu.vector_store %arg10[%c0_27, %c0_28, %c0_29], %76 {strides = array<i32>} : memref<8x2x256xf32, #tpu.memory_space<vmem>>, vector<1x2x128xf32>,
    %c7_30 = arith.constant 7 : index
    %c0_31 = arith.constant 0 : index
    %c128 = arith.constant 128 : index
    %77 = vector.load %arg10[%c7_30, %c0_31, %c128] : memref<8x2x256xf32, #tpu.memory_space<vmem>>, vector<1x2x128xf32>
    %78 = vector.shape_cast %77 : vector<1x2x128xf32> to vector<2x128xf32>
    %79 = vector.shape_cast %73 : vector<2x128xf32> to vector<1x2x128xf32>
    tpu.vector_store %arg10[%c7_30, %c0_31, %c128], %79 {strides = array<i32>} : memref<8x2x256xf32, #tpu.memory_space<vmem>>, vector<1x2x128xf32>,
    %c0_32 = arith.constant 0 : index
    %c1 = arith.constant 1 : index
    %c0_33 = arith.constant 0 : index
    %c0_34 = arith.constant 0 : index
    %80 = vector.load %arg1[%c0_32, %c1, %c0_33, %c0_34] : memref<1x8x2x384xf32, #tpu.memory_space<vmem>>, vector<1x1x2x384xf32>
    %81 = vector.shape_cast %80 : vector<1x1x2x384xf32> to vector<2x384xf32>
    %82 = arith.truncf %41 : vector<2x128xf32> to vector<2x128xbf16>
    %cst_35 = arith.constant dense<0.000000e+00> : vector<2x384xf32>
    %83 = tpu.matmul %82, %1, %cst_35 {dimension_numbers = #tpu.dot_dimension_numbers<[1], [0], [0], [1], [0, 0, 1, 1], [], []>} : vector<2x128xbf16>, vector<128x384xbf16>, vector<2x384xf32> -> vector<2x384xf32>
    %84 = vector.broadcast %5 : vector<1x384xf32> to vector<2x384xf32>
    %85 = arith.addf %83, %84 : vector<2x384xf32>
    %86 = vector.extract_strided_slice %81 {offsets = [0, 0], sizes = [2, 128], strides = [1, 1]} : vector<2x384xf32> to vector<2x128xf32>
    %87 = vector.extract_strided_slice %85 {offsets = [0, 0], sizes = [2, 128], strides = [1, 1]} : vector<2x384xf32> to vector<2x128xf32>
    %88 = arith.addf %86, %87 : vector<2x128xf32>
    %89 = arith.negf %88 : vector<2x128xf32>
    %90 = math.exp %89 : vector<2x128xf32>
    %cst_36 = arith.constant 1.000000e+00 : f32
    %91 = vector.broadcast %cst_36 : f32 to vector<2x128xf32>
    %92 = arith.addf %91, %90 : vector<2x128xf32>
    %93 = arith.divf %91, %92 : vector<2x128xf32>
    %94 = vector.extract_strided_slice %81 {offsets = [0, 128], sizes = [2, 128], strides = [1, 1]} : vector<2x384xf32> to vector<2x128xf32>
    %95 = vector.extract_strided_slice %85 {offsets = [0, 128], sizes = [2, 128], strides = [1, 1]} : vector<2x384xf32> to vector<2x128xf32>
    %96 = arith.addf %94, %95 : vector<2x128xf32>
    %97 = arith.negf %96 : vector<2x128xf32>
    %98 = math.exp %97 : vector<2x128xf32>
    %cst_37 = arith.constant 1.000000e+00 : f32
    %99 = vector.broadcast %cst_37 : f32 to vector<2x128xf32>
    %100 = arith.addf %99, %98 : vector<2x128xf32>
    %101 = arith.divf %99, %100 : vector<2x128xf32>
    %102 = vector.extract_strided_slice %81 {offsets = [0, 256], sizes = [2, 128], strides = [1, 1]} : vector<2x384xf32> to vector<2x128xf32>
    %103 = vector.extract_strided_slice %85 {offsets = [0, 256], sizes = [2, 128], strides = [1, 1]} : vector<2x384xf32> to vector<2x128xf32>
    %104 = arith.mulf %93, %103 : vector<2x128xf32>
    %105 = arith.addf %102, %104 : vector<2x128xf32>
    %106 = math.tanh %105 : vector<2x128xf32>
    %cst_38 = arith.constant 1.000000e+00 : f32
    %107 = vector.broadcast %cst_38 : f32 to vector<2x128xf32>
    %108 = arith.subf %107, %101 : vector<2x128xf32>
    %109 = arith.mulf %108, %106 : vector<2x128xf32>
    %110 = arith.mulf %101, %41 : vector<2x128xf32>
    %111 = arith.addf %109, %110 : vector<2x128xf32>
    %c0_39 = arith.constant 0 : index
    %c6 = arith.constant 6 : index
    %c0_40 = arith.constant 0 : index
    %c0_41 = arith.constant 0 : index
    %112 = vector.load %arg2[%c0_39, %c6, %c0_40, %c0_41] : memref<1x8x2x384xf32, #tpu.memory_space<vmem>>, vector<1x1x2x384xf32>
    %113 = vector.shape_cast %112 : vector<1x1x2x384xf32> to vector<2x384xf32>
    %114 = arith.truncf %73 : vector<2x128xf32> to vector<2x128xbf16>
    %cst_42 = arith.constant dense<0.000000e+00> : vector<2x384xf32>
    %115 = tpu.matmul %114, %3, %cst_42 {dimension_numbers = #tpu.dot_dimension_numbers<[1], [0], [0], [1], [0, 0, 1, 1], [], []>} : vector<2x128xbf16>, vector<128x384xbf16>, vector<2x384xf32> -> vector<2x384xf32>
    %116 = vector.broadcast %7 : vector<1x384xf32> to vector<2x384xf32>
    %117 = arith.addf %115, %116 : vector<2x384xf32>
    %118 = vector.extract_strided_slice %113 {offsets = [0, 0], sizes = [2, 128], strides = [1, 1]} : vector<2x384xf32> to vector<2x128xf32>
    %119 = vector.extract_strided_slice %117 {offsets = [0, 0], sizes = [2, 128], strides = [1, 1]} : vector<2x384xf32> to vector<2x128xf32>
    %120 = arith.addf %118, %119 : vector<2x128xf32>
    %121 = arith.negf %120 : vector<2x128xf32>
    %122 = math.exp %121 : vector<2x128xf32>
    %cst_43 = arith.constant 1.000000e+00 : f32
    %123 = vector.broadcast %cst_43 : f32 to vector<2x128xf32>
    %124 = arith.addf %123, %122 : vector<2x128xf32>
    %125 = arith.divf %123, %124 : vector<2x128xf32>
    %126 = vector.extract_strided_slice %113 {offsets = [0, 128], sizes = [2, 128], strides = [1, 1]} : vector<2x384xf32> to vector<2x128xf32>
    %127 = vector.extract_strided_slice %117 {offsets = [0, 128], sizes = [2, 128], strides = [1, 1]} : vector<2x384xf32> to vector<2x128xf32>
    %128 = arith.addf %126, %127 : vector<2x128xf32>
    %129 = arith.negf %128 : vector<2x128xf32>
    %130 = math.exp %129 : vector<2x128xf32>
    %cst_44 = arith.constant 1.000000e+00 : f32
    %131 = vector.broadcast %cst_44 : f32 to vector<2x128xf32>
    %132 = arith.addf %131, %130 : vector<2x128xf32>
    %133 = arith.divf %131, %132 : vector<2x128xf32>
    %134 = vector.extract_strided_slice %113 {offsets = [0, 256], sizes = [2, 128], strides = [1, 1]} : vector<2x384xf32> to vector<2x128xf32>
    %135 = vector.extract_strided_slice %117 {offsets = [0, 256], sizes = [2, 128], strides = [1, 1]} : vector<2x384xf32> to vector<2x128xf32>
    %136 = arith.mulf %125, %135 : vector<2x128xf32>
    %137 = arith.addf %134, %136 : vector<2x128xf32>
    %138 = math.tanh %137 : vector<2x128xf32>
    %cst_45 = arith.constant 1.000000e+00 : f32
    %139 = vector.broadcast %cst_45 : f32 to vector<2x128xf32>
    %140 = arith.subf %139, %133 : vector<2x128xf32>
    %141 = arith.mulf %140, %138 : vector<2x128xf32>
    %142 = arith.mulf %133, %73 : vector<2x128xf32>
    %143 = arith.addf %141, %142 : vector<2x128xf32>
    %c1_46 = arith.constant 1 : index
    %c0_47 = arith.constant 0 : index
    %c0_48 = arith.constant 0 : index
    %144 = vector.load %arg10[%c1_46, %c0_47, %c0_48] : memref<8x2x256xf32, #tpu.memory_space<vmem>>, vector<1x2x128xf32>
    %145 = vector.shape_cast %144 : vector<1x2x128xf32> to vector<2x128xf32>
    %146 = vector.shape_cast %111 : vector<2x128xf32> to vector<1x2x128xf32>
    tpu.vector_store %arg10[%c1_46, %c0_47, %c0_48], %146 {strides = array<i32>} : memref<8x2x256xf32, #tpu.memory_space<vmem>>, vector<1x2x128xf32>,
    %c6_49 = arith.constant 6 : index
    %c0_50 = arith.constant 0 : index
    %c128_51 = arith.constant 128 : index
    %147 = vector.load %arg10[%c6_49, %c0_50, %c128_51] : memref<8x2x256xf32, #tpu.memory_space<vmem>>, vector<1x2x128xf32>
    %148 = vector.shape_cast %147 : vector<1x2x128xf32> to vector<2x128xf32>
    %149 = vector.shape_cast %143 : vector<2x128xf32> to vector<1x2x128xf32>
    tpu.vector_store %arg10[%c6_49, %c0_50, %c128_51], %149 {strides = array<i32>} : memref<8x2x256xf32, #tpu.memory_space<vmem>>, vector<1x2x128xf32>,
    %c0_52 = arith.constant 0 : index
    %c2 = arith.constant 2 : index
    %c0_53 = arith.constant 0 : index
    %c0_54 = arith.constant 0 : index
    %150 = vector.load %arg1[%c0_52, %c2, %c0_53, %c0_54] : memref<1x8x2x384xf32, #tpu.memory_space<vmem>>, vector<1x1x2x384xf32>
    %151 = vector.shape_cast %150 : vector<1x1x2x384xf32> to vector<2x384xf32>
    %152 = arith.truncf %111 : vector<2x128xf32> to vector<2x128xbf16>
    %cst_55 = arith.constant dense<0.000000e+00> : vector<2x384xf32>
    %153 = tpu.matmul %152, %1, %cst_55 {dimension_numbers = #tpu.dot_dimension_numbers<[1], [0], [0], [1], [0, 0, 1, 1], [], []>} : vector<2x128xbf16>, vector<128x384xbf16>, vector<2x384xf32> -> vector<2x384xf32>
    %154 = vector.broadcast %5 : vector<1x384xf32> to vector<2x384xf32>
    %155 = arith.addf %153, %154 : vector<2x384xf32>
    %156 = vector.extract_strided_slice %151 {offsets = [0, 0], sizes = [2, 128], strides = [1, 1]} : vector<2x384xf32> to vector<2x128xf32>
    %157 = vector.extract_strided_slice %155 {offsets = [0, 0], sizes = [2, 128], strides = [1, 1]} : vector<2x384xf32> to vector<2x128xf32>
    %158 = arith.addf %156, %157 : vector<2x128xf32>
    %159 = arith.negf %158 : vector<2x128xf32>
    %160 = math.exp %159 : vector<2x128xf32>
    %cst_56 = arith.constant 1.000000e+00 : f32
    %161 = vector.broadcast %cst_56 : f32 to vector<2x128xf32>
    %162 = arith.addf %161, %160 : vector<2x128xf32>
    %163 = arith.divf %161, %162 : vector<2x128xf32>
    %164 = vector.extract_strided_slice %151 {offsets = [0, 128], sizes = [2, 128], strides = [1, 1]} : vector<2x384xf32> to vector<2x128xf32>
    %165 = vector.extract_strided_slice %155 {offsets = [0, 128], sizes = [2, 128], strides = [1, 1]} : vector<2x384xf32> to vector<2x128xf32>
    %166 = arith.addf %164, %165 : vector<2x128xf32>
    %167 = arith.negf %166 : vector<2x128xf32>
    %168 = math.exp %167 : vector<2x128xf32>
    %cst_57 = arith.constant 1.000000e+00 : f32
    %169 = vector.broadcast %cst_57 : f32 to vector<2x128xf32>
    %170 = arith.addf %169, %168 : vector<2x128xf32>
    %171 = arith.divf %169, %170 : vector<2x128xf32>
    %172 = vector.extract_strided_slice %151 {offsets = [0, 256], sizes = [2, 128], strides = [1, 1]} : vector<2x384xf32> to vector<2x128xf32>
    %173 = vector.extract_strided_slice %155 {offsets = [0, 256], sizes = [2, 128], strides = [1, 1]} : vector<2x384xf32> to vector<2x128xf32>
    %174 = arith.mulf %163, %173 : vector<2x128xf32>
    %175 = arith.addf %172, %174 : vector<2x128xf32>
    %176 = math.tanh %175 : vector<2x128xf32>
    %cst_58 = arith.constant 1.000000e+00 : f32
    %177 = vector.broadcast %cst_58 : f32 to vector<2x128xf32>
    %178 = arith.subf %177, %171 : vector<2x128xf32>
    %179 = arith.mulf %178, %176 : vector<2x128xf32>
    %180 = arith.mulf %171, %111 : vector<2x128xf32>
    %181 = arith.addf %179, %180 : vector<2x128xf32>
    %c0_59 = arith.constant 0 : index
    %c5 = arith.constant 5 : index
    %c0_60 = arith.constant 0 : index
    %c0_61 = arith.constant 0 : index
    %182 = vector.load %arg2[%c0_59, %c5, %c0_60, %c0_61] : memref<1x8x2x384xf32, #tpu.memory_space<vmem>>, vector<1x1x2x384xf32>
    %183 = vector.shape_cast %182 : vector<1x1x2x384xf32> to vector<2x384xf32>
    %184 = arith.truncf %143 : vector<2x128xf32> to vector<2x128xbf16>
    %cst_62 = arith.constant dense<0.000000e+00> : vector<2x384xf32>
    %185 = tpu.matmul %184, %3, %cst_62 {dimension_numbers = #tpu.dot_dimension_numbers<[1], [0], [0], [1], [0, 0, 1, 1], [], []>} : vector<2x128xbf16>, vector<128x384xbf16>, vector<2x384xf32> -> vector<2x384xf32>
    %186 = vector.broadcast %7 : vector<1x384xf32> to vector<2x384xf32>
    %187 = arith.addf %185, %186 : vector<2x384xf32>
    %188 = vector.extract_strided_slice %183 {offsets = [0, 0], sizes = [2, 128], strides = [1, 1]} : vector<2x384xf32> to vector<2x128xf32>
    %189 = vector.extract_strided_slice %187 {offsets = [0, 0], sizes = [2, 128], strides = [1, 1]} : vector<2x384xf32> to vector<2x128xf32>
    %190 = arith.addf %188, %189 : vector<2x128xf32>
    %191 = arith.negf %190 : vector<2x128xf32>
    %192 = math.exp %191 : vector<2x128xf32>
    %cst_63 = arith.constant 1.000000e+00 : f32
    %193 = vector.broadcast %cst_63 : f32 to vector<2x128xf32>
    %194 = arith.addf %193, %192 : vector<2x128xf32>
    %195 = arith.divf %193, %194 : vector<2x128xf32>
    %196 = vector.extract_strided_slice %183 {offsets = [0, 128], sizes = [2, 128], strides = [1, 1]} : vector<2x384xf32> to vector<2x128xf32>
    %197 = vector.extract_strided_slice %187 {offsets = [0, 128], sizes = [2, 128], strides = [1, 1]} : vector<2x384xf32> to vector<2x128xf32>
    %198 = arith.addf %196, %197 : vector<2x128xf32>
    %199 = arith.negf %198 : vector<2x128xf32>
    %200 = math.exp %199 : vector<2x128xf32>
    %cst_64 = arith.constant 1.000000e+00 : f32
    %201 = vector.broadcast %cst_64 : f32 to vector<2x128xf32>
    %202 = arith.addf %201, %200 : vector<2x128xf32>
    %203 = arith.divf %201, %202 : vector<2x128xf32>
    %204 = vector.extract_strided_slice %183 {offsets = [0, 256], sizes = [2, 128], strides = [1, 1]} : vector<2x384xf32> to vector<2x128xf32>
    %205 = vector.extract_strided_slice %187 {offsets = [0, 256], sizes = [2, 128], strides = [1, 1]} : vector<2x384xf32> to vector<2x128xf32>
    %206 = arith.mulf %195, %205 : vector<2x128xf32>
    %207 = arith.addf %204, %206 : vector<2x128xf32>
    %208 = math.tanh %207 : vector<2x128xf32>
    %cst_65 = arith.constant 1.000000e+00 : f32
    %209 = vector.broadcast %cst_65 : f32 to vector<2x128xf32>
    %210 = arith.subf %209, %203 : vector<2x128xf32>
    %211 = arith.mulf %210, %208 : vector<2x128xf32>
    %212 = arith.mulf %203, %143 : vector<2x128xf32>
    %213 = arith.addf %211, %212 : vector<2x128xf32>
    %c2_66 = arith.constant 2 : index
    %c0_67 = arith.constant 0 : index
    %c0_68 = arith.constant 0 : index
    %214 = vector.load %arg10[%c2_66, %c0_67, %c0_68] : memref<8x2x256xf32, #tpu.memory_space<vmem>>, vector<1x2x128xf32>
    %215 = vector.shape_cast %214 : vector<1x2x128xf32> to vector<2x128xf32>
    %216 = vector.shape_cast %181 : vector<2x128xf32> to vector<1x2x128xf32>
    tpu.vector_store %arg10[%c2_66, %c0_67, %c0_68], %216 {strides = array<i32>} : memref<8x2x256xf32, #tpu.memory_space<vmem>>, vector<1x2x128xf32>,
    %c5_69 = arith.constant 5 : index
    %c0_70 = arith.constant 0 : index
    %c128_71 = arith.constant 128 : index
    %217 = vector.load %arg10[%c5_69, %c0_70, %c128_71] : memref<8x2x256xf32, #tpu.memory_space<vmem>>, vector<1x2x128xf32>
    %218 = vector.shape_cast %217 : vector<1x2x128xf32> to vector<2x128xf32>
    %219 = vector.shape_cast %213 : vector<2x128xf32> to vector<1x2x128xf32>
    tpu.vector_store %arg10[%c5_69, %c0_70, %c128_71], %219 {strides = array<i32>} : memref<8x2x256xf32, #tpu.memory_space<vmem>>, vector<1x2x128xf32>,
    %c0_72 = arith.constant 0 : index
    %c3 = arith.constant 3 : index
    %c0_73 = arith.constant 0 : index
    %c0_74 = arith.constant 0 : index
    %220 = vector.load %arg1[%c0_72, %c3, %c0_73, %c0_74] : memref<1x8x2x384xf32, #tpu.memory_space<vmem>>, vector<1x1x2x384xf32>
    %221 = vector.shape_cast %220 : vector<1x1x2x384xf32> to vector<2x384xf32>
    %222 = arith.truncf %181 : vector<2x128xf32> to vector<2x128xbf16>
    %cst_75 = arith.constant dense<0.000000e+00> : vector<2x384xf32>
    %223 = tpu.matmul %222, %1, %cst_75 {dimension_numbers = #tpu.dot_dimension_numbers<[1], [0], [0], [1], [0, 0, 1, 1], [], []>} : vector<2x128xbf16>, vector<128x384xbf16>, vector<2x384xf32> -> vector<2x384xf32>
    %224 = vector.broadcast %5 : vector<1x384xf32> to vector<2x384xf32>
    %225 = arith.addf %223, %224 : vector<2x384xf32>
    %226 = vector.extract_strided_slice %221 {offsets = [0, 0], sizes = [2, 128], strides = [1, 1]} : vector<2x384xf32> to vector<2x128xf32>
    %227 = vector.extract_strided_slice %225 {offsets = [0, 0], sizes = [2, 128], strides = [1, 1]} : vector<2x384xf32> to vector<2x128xf32>
    %228 = arith.addf %226, %227 : vector<2x128xf32>
    %229 = arith.negf %228 : vector<2x128xf32>
    %230 = math.exp %229 : vector<2x128xf32>
    %cst_76 = arith.constant 1.000000e+00 : f32
    %231 = vector.broadcast %cst_76 : f32 to vector<2x128xf32>
    %232 = arith.addf %231, %230 : vector<2x128xf32>
    %233 = arith.divf %231, %232 : vector<2x128xf32>
    %234 = vector.extract_strided_slice %221 {offsets = [0, 128], sizes = [2, 128], strides = [1, 1]} : vector<2x384xf32> to vector<2x128xf32>
    %235 = vector.extract_strided_slice %225 {offsets = [0, 128], sizes = [2, 128], strides = [1, 1]} : vector<2x384xf32> to vector<2x128xf32>
    %236 = arith.addf %234, %235 : vector<2x128xf32>
    %237 = arith.negf %236 : vector<2x128xf32>
    %238 = math.exp %237 : vector<2x128xf32>
    %cst_77 = arith.constant 1.000000e+00 : f32
    %239 = vector.broadcast %cst_77 : f32 to vector<2x128xf32>
    %240 = arith.addf %239, %238 : vector<2x128xf32>
    %241 = arith.divf %239, %240 : vector<2x128xf32>
    %242 = vector.extract_strided_slice %221 {offsets = [0, 256], sizes = [2, 128], strides = [1, 1]} : vector<2x384xf32> to vector<2x128xf32>
    %243 = vector.extract_strided_slice %225 {offsets = [0, 256], sizes = [2, 128], strides = [1, 1]} : vector<2x384xf32> to vector<2x128xf32>
    %244 = arith.mulf %233, %243 : vector<2x128xf32>
    %245 = arith.addf %242, %244 : vector<2x128xf32>
    %246 = math.tanh %245 : vector<2x128xf32>
    %cst_78 = arith.constant 1.000000e+00 : f32
    %247 = vector.broadcast %cst_78 : f32 to vector<2x128xf32>
    %248 = arith.subf %247, %241 : vector<2x128xf32>
    %249 = arith.mulf %248, %246 : vector<2x128xf32>
    %250 = arith.mulf %241, %181 : vector<2x128xf32>
    %251 = arith.addf %249, %250 : vector<2x128xf32>
    %c0_79 = arith.constant 0 : index
    %c4 = arith.constant 4 : index
    %c0_80 = arith.constant 0 : index
    %c0_81 = arith.constant 0 : index
    %252 = vector.load %arg2[%c0_79, %c4, %c0_80, %c0_81] : memref<1x8x2x384xf32, #tpu.memory_space<vmem>>, vector<1x1x2x384xf32>
    %253 = vector.shape_cast %252 : vector<1x1x2x384xf32> to vector<2x384xf32>
    %254 = arith.truncf %213 : vector<2x128xf32> to vector<2x128xbf16>
    %cst_82 = arith.constant dense<0.000000e+00> : vector<2x384xf32>
    %255 = tpu.matmul %254, %3, %cst_82 {dimension_numbers = #tpu.dot_dimension_numbers<[1], [0], [0], [1], [0, 0, 1, 1], [], []>} : vector<2x128xbf16>, vector<128x384xbf16>, vector<2x384xf32> -> vector<2x384xf32>
    %256 = vector.broadcast %7 : vector<1x384xf32> to vector<2x384xf32>
    %257 = arith.addf %255, %256 : vector<2x384xf32>
    %258 = vector.extract_strided_slice %253 {offsets = [0, 0], sizes = [2, 128], strides = [1, 1]} : vector<2x384xf32> to vector<2x128xf32>
    %259 = vector.extract_strided_slice %257 {offsets = [0, 0], sizes = [2, 128], strides = [1, 1]} : vector<2x384xf32> to vector<2x128xf32>
    %260 = arith.addf %258, %259 : vector<2x128xf32>
    %261 = arith.negf %260 : vector<2x128xf32>
    %262 = math.exp %261 : vector<2x128xf32>
    %cst_83 = arith.constant 1.000000e+00 : f32
    %263 = vector.broadcast %cst_83 : f32 to vector<2x128xf32>
    %264 = arith.addf %263, %262 : vector<2x128xf32>
    %265 = arith.divf %263, %264 : vector<2x128xf32>
    %266 = vector.extract_strided_slice %253 {offsets = [0, 128], sizes = [2, 128], strides = [1, 1]} : vector<2x384xf32> to vector<2x128xf32>
    %267 = vector.extract_strided_slice %257 {offsets = [0, 128], sizes = [2, 128], strides = [1, 1]} : vector<2x384xf32> to vector<2x128xf32>
    %268 = arith.addf %266, %267 : vector<2x128xf32>
    %269 = arith.negf %268 : vector<2x128xf32>
    %270 = math.exp %269 : vector<2x128xf32>
    %cst_84 = arith.constant 1.000000e+00 : f32
    %271 = vector.broadcast %cst_84 : f32 to vector<2x128xf32>
    %272 = arith.addf %271, %270 : vector<2x128xf32>
    %273 = arith.divf %271, %272 : vector<2x128xf32>
    %274 = vector.extract_strided_slice %253 {offsets = [0, 256], sizes = [2, 128], strides = [1, 1]} : vector<2x384xf32> to vector<2x128xf32>
    %275 = vector.extract_strided_slice %257 {offsets = [0, 256], sizes = [2, 128], strides = [1, 1]} : vector<2x384xf32> to vector<2x128xf32>
    %276 = arith.mulf %265, %275 : vector<2x128xf32>
    %277 = arith.addf %274, %276 : vector<2x128xf32>
    %278 = math.tanh %277 : vector<2x128xf32>
    %cst_85 = arith.constant 1.000000e+00 : f32
    %279 = vector.broadcast %cst_85 : f32 to vector<2x128xf32>
    %280 = arith.subf %279, %273 : vector<2x128xf32>
    %281 = arith.mulf %280, %278 : vector<2x128xf32>
    %282 = arith.mulf %273, %213 : vector<2x128xf32>
    %283 = arith.addf %281, %282 : vector<2x128xf32>
    %c3_86 = arith.constant 3 : index
    %c0_87 = arith.constant 0 : index
    %c0_88 = arith.constant 0 : index
    %284 = vector.load %arg10[%c3_86, %c0_87, %c0_88] : memref<8x2x256xf32, #tpu.memory_space<vmem>>, vector<1x2x128xf32>
    %285 = vector.shape_cast %284 : vector<1x2x128xf32> to vector<2x128xf32>
    %286 = vector.shape_cast %251 : vector<2x128xf32> to vector<1x2x128xf32>
    tpu.vector_store %arg10[%c3_86, %c0_87, %c0_88], %286 {strides = array<i32>} : memref<8x2x256xf32, #tpu.memory_space<vmem>>, vector<1x2x128xf32>,
    %c4_89 = arith.constant 4 : index
    %c0_90 = arith.constant 0 : index
    %c128_91 = arith.constant 128 : index
    %287 = vector.load %arg10[%c4_89, %c0_90, %c128_91] : memref<8x2x256xf32, #tpu.memory_space<vmem>>, vector<1x2x128xf32>
    %288 = vector.shape_cast %287 : vector<1x2x128xf32> to vector<2x128xf32>
    %289 = vector.shape_cast %283 : vector<2x128xf32> to vector<1x2x128xf32>
    tpu.vector_store %arg10[%c4_89, %c0_90, %c128_91], %289 {strides = array<i32>} : memref<8x2x256xf32, #tpu.memory_space<vmem>>, vector<1x2x128xf32>,
    %c0_92 = arith.constant 0 : index
    %c4_93 = arith.constant 4 : index
    %c0_94 = arith.constant 0 : index
    %c0_95 = arith.constant 0 : index
    %290 = vector.load %arg1[%c0_92, %c4_93, %c0_94, %c0_95] : memref<1x8x2x384xf32, #tpu.memory_space<vmem>>, vector<1x1x2x384xf32>
    %291 = vector.shape_cast %290 : vector<1x1x2x384xf32> to vector<2x384xf32>
    %292 = arith.truncf %251 : vector<2x128xf32> to vector<2x128xbf16>
    %cst_96 = arith.constant dense<0.000000e+00> : vector<2x384xf32>
    %293 = tpu.matmul %292, %1, %cst_96 {dimension_numbers = #tpu.dot_dimension_numbers<[1], [0], [0], [1], [0, 0, 1, 1], [], []>} : vector<2x128xbf16>, vector<128x384xbf16>, vector<2x384xf32> -> vector<2x384xf32>
    %294 = vector.broadcast %5 : vector<1x384xf32> to vector<2x384xf32>
    %295 = arith.addf %293, %294 : vector<2x384xf32>
    %296 = vector.extract_strided_slice %291 {offsets = [0, 0], sizes = [2, 128], strides = [1, 1]} : vector<2x384xf32> to vector<2x128xf32>
    %297 = vector.extract_strided_slice %295 {offsets = [0, 0], sizes = [2, 128], strides = [1, 1]} : vector<2x384xf32> to vector<2x128xf32>
    %298 = arith.addf %296, %297 : vector<2x128xf32>
    %299 = arith.negf %298 : vector<2x128xf32>
    %300 = math.exp %299 : vector<2x128xf32>
    %cst_97 = arith.constant 1.000000e+00 : f32
    %301 = vector.broadcast %cst_97 : f32 to vector<2x128xf32>
    %302 = arith.addf %301, %300 : vector<2x128xf32>
    %303 = arith.divf %301, %302 : vector<2x128xf32>
    %304 = vector.extract_strided_slice %291 {offsets = [0, 128], sizes = [2, 128], strides = [1, 1]} : vector<2x384xf32> to vector<2x128xf32>
    %305 = vector.extract_strided_slice %295 {offsets = [0, 128], sizes = [2, 128], strides = [1, 1]} : vector<2x384xf32> to vector<2x128xf32>
    %306 = arith.addf %304, %305 : vector<2x128xf32>
    %307 = arith.negf %306 : vector<2x128xf32>
    %308 = math.exp %307 : vector<2x128xf32>
    %cst_98 = arith.constant 1.000000e+00 : f32
    %309 = vector.broadcast %cst_98 : f32 to vector<2x128xf32>
    %310 = arith.addf %309, %308 : vector<2x128xf32>
    %311 = arith.divf %309, %310 : vector<2x128xf32>
    %312 = vector.extract_strided_slice %291 {offsets = [0, 256], sizes = [2, 128], strides = [1, 1]} : vector<2x384xf32> to vector<2x128xf32>
    %313 = vector.extract_strided_slice %295 {offsets = [0, 256], sizes = [2, 128], strides = [1, 1]} : vector<2x384xf32> to vector<2x128xf32>
    %314 = arith.mulf %303, %313 : vector<2x128xf32>
    %315 = arith.addf %312, %314 : vector<2x128xf32>
    %316 = math.tanh %315 : vector<2x128xf32>
    %cst_99 = arith.constant 1.000000e+00 : f32
    %317 = vector.broadcast %cst_99 : f32 to vector<2x128xf32>
    %318 = arith.subf %317, %311 : vector<2x128xf32>
    %319 = arith.mulf %318, %316 : vector<2x128xf32>
    %320 = arith.mulf %311, %251 : vector<2x128xf32>
    %321 = arith.addf %319, %320 : vector<2x128xf32>
    %c0_100 = arith.constant 0 : index
    %c3_101 = arith.constant 3 : index
    %c0_102 = arith.constant 0 : index
    %c0_103 = arith.constant 0 : index
    %322 = vector.load %arg2[%c0_100, %c3_101, %c0_102, %c0_103] : memref<1x8x2x384xf32, #tpu.memory_space<vmem>>, vector<1x1x2x384xf32>
    %323 = vector.shape_cast %322 : vector<1x1x2x384xf32> to vector<2x384xf32>
    %324 = arith.truncf %283 : vector<2x128xf32> to vector<2x128xbf16>
    %cst_104 = arith.constant dense<0.000000e+00> : vector<2x384xf32>
    %325 = tpu.matmul %324, %3, %cst_104 {dimension_numbers = #tpu.dot_dimension_numbers<[1], [0], [0], [1], [0, 0, 1, 1], [], []>} : vector<2x128xbf16>, vector<128x384xbf16>, vector<2x384xf32> -> vector<2x384xf32>
    %326 = vector.broadcast %7 : vector<1x384xf32> to vector<2x384xf32>
    %327 = arith.addf %325, %326 : vector<2x384xf32>
    %328 = vector.extract_strided_slice %323 {offsets = [0, 0], sizes = [2, 128], strides = [1, 1]} : vector<2x384xf32> to vector<2x128xf32>
    %329 = vector.extract_strided_slice %327 {offsets = [0, 0], sizes = [2, 128], strides = [1, 1]} : vector<2x384xf32> to vector<2x128xf32>
    %330 = arith.addf %328, %329 : vector<2x128xf32>
    %331 = arith.negf %330 : vector<2x128xf32>
    %332 = math.exp %331 : vector<2x128xf32>
    %cst_105 = arith.constant 1.000000e+00 : f32
    %333 = vector.broadcast %cst_105 : f32 to vector<2x128xf32>
    %334 = arith.addf %333, %332 : vector<2x128xf32>
    %335 = arith.divf %333, %334 : vector<2x128xf32>
    %336 = vector.extract_strided_slice %323 {offsets = [0, 128], sizes = [2, 128], strides = [1, 1]} : vector<2x384xf32> to vector<2x128xf32>
    %337 = vector.extract_strided_slice %327 {offsets = [0, 128], sizes = [2, 128], strides = [1, 1]} : vector<2x384xf32> to vector<2x128xf32>
    %338 = arith.addf %336, %337 : vector<2x128xf32>
    %339 = arith.negf %338 : vector<2x128xf32>
    %340 = math.exp %339 : vector<2x128xf32>
    %cst_106 = arith.constant 1.000000e+00 : f32
    %341 = vector.broadcast %cst_106 : f32 to vector<2x128xf32>
    %342 = arith.addf %341, %340 : vector<2x128xf32>
    %343 = arith.divf %341, %342 : vector<2x128xf32>
    %344 = vector.extract_strided_slice %323 {offsets = [0, 256], sizes = [2, 128], strides = [1, 1]} : vector<2x384xf32> to vector<2x128xf32>
    %345 = vector.extract_strided_slice %327 {offsets = [0, 256], sizes = [2, 128], strides = [1, 1]} : vector<2x384xf32> to vector<2x128xf32>
    %346 = arith.mulf %335, %345 : vector<2x128xf32>
    %347 = arith.addf %344, %346 : vector<2x128xf32>
    %348 = math.tanh %347 : vector<2x128xf32>
    %cst_107 = arith.constant 1.000000e+00 : f32
    %349 = vector.broadcast %cst_107 : f32 to vector<2x128xf32>
    %350 = arith.subf %349, %343 : vector<2x128xf32>
    %351 = arith.mulf %350, %348 : vector<2x128xf32>
    %352 = arith.mulf %343, %283 : vector<2x128xf32>
    %353 = arith.addf %351, %352 : vector<2x128xf32>
    %c4_108 = arith.constant 4 : index
    %c0_109 = arith.constant 0 : index
    %c0_110 = arith.constant 0 : index
    %354 = vector.load %arg10[%c4_108, %c0_109, %c0_110] : memref<8x2x256xf32, #tpu.memory_space<vmem>>, vector<1x2x128xf32>
    %355 = vector.shape_cast %354 : vector<1x2x128xf32> to vector<2x128xf32>
    %356 = vector.shape_cast %321 : vector<2x128xf32> to vector<1x2x128xf32>
    tpu.vector_store %arg10[%c4_108, %c0_109, %c0_110], %356 {strides = array<i32>} : memref<8x2x256xf32, #tpu.memory_space<vmem>>, vector<1x2x128xf32>,
    %c3_111 = arith.constant 3 : index
    %c0_112 = arith.constant 0 : index
    %c128_113 = arith.constant 128 : index
    %357 = vector.load %arg10[%c3_111, %c0_112, %c128_113] : memref<8x2x256xf32, #tpu.memory_space<vmem>>, vector<1x2x128xf32>
    %358 = vector.shape_cast %357 : vector<1x2x128xf32> to vector<2x128xf32>
    %359 = vector.shape_cast %353 : vector<2x128xf32> to vector<1x2x128xf32>
    tpu.vector_store %arg10[%c3_111, %c0_112, %c128_113], %359 {strides = array<i32>} : memref<8x2x256xf32, #tpu.memory_space<vmem>>, vector<1x2x128xf32>,
    %c0_114 = arith.constant 0 : index
    %c5_115 = arith.constant 5 : index
    %c0_116 = arith.constant 0 : index
    %c0_117 = arith.constant 0 : index
    %360 = vector.load %arg1[%c0_114, %c5_115, %c0_116, %c0_117] : memref<1x8x2x384xf32, #tpu.memory_space<vmem>>, vector<1x1x2x384xf32>
    %361 = vector.shape_cast %360 : vector<1x1x2x384xf32> to vector<2x384xf32>
    %362 = arith.truncf %321 : vector<2x128xf32> to vector<2x128xbf16>
    %cst_118 = arith.constant dense<0.000000e+00> : vector<2x384xf32>
    %363 = tpu.matmul %362, %1, %cst_118 {dimension_numbers = #tpu.dot_dimension_numbers<[1], [0], [0], [1], [0, 0, 1, 1], [], []>} : vector<2x128xbf16>, vector<128x384xbf16>, vector<2x384xf32> -> vector<2x384xf32>
    %364 = vector.broadcast %5 : vector<1x384xf32> to vector<2x384xf32>
    %365 = arith.addf %363, %364 : vector<2x384xf32>
    %366 = vector.extract_strided_slice %361 {offsets = [0, 0], sizes = [2, 128], strides = [1, 1]} : vector<2x384xf32> to vector<2x128xf32>
    %367 = vector.extract_strided_slice %365 {offsets = [0, 0], sizes = [2, 128], strides = [1, 1]} : vector<2x384xf32> to vector<2x128xf32>
    %368 = arith.addf %366, %367 : vector<2x128xf32>
    %369 = arith.negf %368 : vector<2x128xf32>
    %370 = math.exp %369 : vector<2x128xf32>
    %cst_119 = arith.constant 1.000000e+00 : f32
    %371 = vector.broadcast %cst_119 : f32 to vector<2x128xf32>
    %372 = arith.addf %371, %370 : vector<2x128xf32>
    %373 = arith.divf %371, %372 : vector<2x128xf32>
    %374 = vector.extract_strided_slice %361 {offsets = [0, 128], sizes = [2, 128], strides = [1, 1]} : vector<2x384xf32> to vector<2x128xf32>
    %375 = vector.extract_strided_slice %365 {offsets = [0, 128], sizes = [2, 128], strides = [1, 1]} : vector<2x384xf32> to vector<2x128xf32>
    %376 = arith.addf %374, %375 : vector<2x128xf32>
    %377 = arith.negf %376 : vector<2x128xf32>
    %378 = math.exp %377 : vector<2x128xf32>
    %cst_120 = arith.constant 1.000000e+00 : f32
    %379 = vector.broadcast %cst_120 : f32 to vector<2x128xf32>
    %380 = arith.addf %379, %378 : vector<2x128xf32>
    %381 = arith.divf %379, %380 : vector<2x128xf32>
    %382 = vector.extract_strided_slice %361 {offsets = [0, 256], sizes = [2, 128], strides = [1, 1]} : vector<2x384xf32> to vector<2x128xf32>
    %383 = vector.extract_strided_slice %365 {offsets = [0, 256], sizes = [2, 128], strides = [1, 1]} : vector<2x384xf32> to vector<2x128xf32>
    %384 = arith.mulf %373, %383 : vector<2x128xf32>
    %385 = arith.addf %382, %384 : vector<2x128xf32>
    %386 = math.tanh %385 : vector<2x128xf32>
    %cst_121 = arith.constant 1.000000e+00 : f32
    %387 = vector.broadcast %cst_121 : f32 to vector<2x128xf32>
    %388 = arith.subf %387, %381 : vector<2x128xf32>
    %389 = arith.mulf %388, %386 : vector<2x128xf32>
    %390 = arith.mulf %381, %321 : vector<2x128xf32>
    %391 = arith.addf %389, %390 : vector<2x128xf32>
    %c0_122 = arith.constant 0 : index
    %c2_123 = arith.constant 2 : index
    %c0_124 = arith.constant 0 : index
    %c0_125 = arith.constant 0 : index
    %392 = vector.load %arg2[%c0_122, %c2_123, %c0_124, %c0_125] : memref<1x8x2x384xf32, #tpu.memory_space<vmem>>, vector<1x1x2x384xf32>
    %393 = vector.shape_cast %392 : vector<1x1x2x384xf32> to vector<2x384xf32>
    %394 = arith.truncf %353 : vector<2x128xf32> to vector<2x128xbf16>
    %cst_126 = arith.constant dense<0.000000e+00> : vector<2x384xf32>
    %395 = tpu.matmul %394, %3, %cst_126 {dimension_numbers = #tpu.dot_dimension_numbers<[1], [0], [0], [1], [0, 0, 1, 1], [], []>} : vector<2x128xbf16>, vector<128x384xbf16>, vector<2x384xf32> -> vector<2x384xf32>
    %396 = vector.broadcast %7 : vector<1x384xf32> to vector<2x384xf32>
    %397 = arith.addf %395, %396 : vector<2x384xf32>
    %398 = vector.extract_strided_slice %393 {offsets = [0, 0], sizes = [2, 128], strides = [1, 1]} : vector<2x384xf32> to vector<2x128xf32>
    %399 = vector.extract_strided_slice %397 {offsets = [0, 0], sizes = [2, 128], strides = [1, 1]} : vector<2x384xf32> to vector<2x128xf32>
    %400 = arith.addf %398, %399 : vector<2x128xf32>
    %401 = arith.negf %400 : vector<2x128xf32>
    %402 = math.exp %401 : vector<2x128xf32>
    %cst_127 = arith.constant 1.000000e+00 : f32
    %403 = vector.broadcast %cst_127 : f32 to vector<2x128xf32>
    %404 = arith.addf %403, %402 : vector<2x128xf32>
    %405 = arith.divf %403, %404 : vector<2x128xf32>
    %406 = vector.extract_strided_slice %393 {offsets = [0, 128], sizes = [2, 128], strides = [1, 1]} : vector<2x384xf32> to vector<2x128xf32>
    %407 = vector.extract_strided_slice %397 {offsets = [0, 128], sizes = [2, 128], strides = [1, 1]} : vector<2x384xf32> to vector<2x128xf32>
    %408 = arith.addf %406, %407 : vector<2x128xf32>
    %409 = arith.negf %408 : vector<2x128xf32>
    %410 = math.exp %409 : vector<2x128xf32>
    %cst_128 = arith.constant 1.000000e+00 : f32
    %411 = vector.broadcast %cst_128 : f32 to vector<2x128xf32>
    %412 = arith.addf %411, %410 : vector<2x128xf32>
    %413 = arith.divf %411, %412 : vector<2x128xf32>
    %414 = vector.extract_strided_slice %393 {offsets = [0, 256], sizes = [2, 128], strides = [1, 1]} : vector<2x384xf32> to vector<2x128xf32>
    %415 = vector.extract_strided_slice %397 {offsets = [0, 256], sizes = [2, 128], strides = [1, 1]} : vector<2x384xf32> to vector<2x128xf32>
    %416 = arith.mulf %405, %415 : vector<2x128xf32>
    %417 = arith.addf %414, %416 : vector<2x128xf32>
    %418 = math.tanh %417 : vector<2x128xf32>
    %cst_129 = arith.constant 1.000000e+00 : f32
    %419 = vector.broadcast %cst_129 : f32 to vector<2x128xf32>
    %420 = arith.subf %419, %413 : vector<2x128xf32>
    %421 = arith.mulf %420, %418 : vector<2x128xf32>
    %422 = arith.mulf %413, %353 : vector<2x128xf32>
    %423 = arith.addf %421, %422 : vector<2x128xf32>
    %c5_130 = arith.constant 5 : index
    %c0_131 = arith.constant 0 : index
    %c0_132 = arith.constant 0 : index
    %424 = vector.load %arg10[%c5_130, %c0_131, %c0_132] : memref<8x2x256xf32, #tpu.memory_space<vmem>>, vector<1x2x128xf32>
    %425 = vector.shape_cast %424 : vector<1x2x128xf32> to vector<2x128xf32>
    %426 = vector.shape_cast %391 : vector<2x128xf32> to vector<1x2x128xf32>
    tpu.vector_store %arg10[%c5_130, %c0_131, %c0_132], %426 {strides = array<i32>} : memref<8x2x256xf32, #tpu.memory_space<vmem>>, vector<1x2x128xf32>,
    %c2_133 = arith.constant 2 : index
    %c0_134 = arith.constant 0 : index
    %c128_135 = arith.constant 128 : index
    %427 = vector.load %arg10[%c2_133, %c0_134, %c128_135] : memref<8x2x256xf32, #tpu.memory_space<vmem>>, vector<1x2x128xf32>
    %428 = vector.shape_cast %427 : vector<1x2x128xf32> to vector<2x128xf32>
    %429 = vector.shape_cast %423 : vector<2x128xf32> to vector<1x2x128xf32>
    tpu.vector_store %arg10[%c2_133, %c0_134, %c128_135], %429 {strides = array<i32>} : memref<8x2x256xf32, #tpu.memory_space<vmem>>, vector<1x2x128xf32>,
    %c0_136 = arith.constant 0 : index
    %c6_137 = arith.constant 6 : index
    %c0_138 = arith.constant 0 : index
    %c0_139 = arith.constant 0 : index
    %430 = vector.load %arg1[%c0_136, %c6_137, %c0_138, %c0_139] : memref<1x8x2x384xf32, #tpu.memory_space<vmem>>, vector<1x1x2x384xf32>
    %431 = vector.shape_cast %430 : vector<1x1x2x384xf32> to vector<2x384xf32>
    %432 = arith.truncf %391 : vector<2x128xf32> to vector<2x128xbf16>
    %cst_140 = arith.constant dense<0.000000e+00> : vector<2x384xf32>
    %433 = tpu.matmul %432, %1, %cst_140 {dimension_numbers = #tpu.dot_dimension_numbers<[1], [0], [0], [1], [0, 0, 1, 1], [], []>} : vector<2x128xbf16>, vector<128x384xbf16>, vector<2x384xf32> -> vector<2x384xf32>
    %434 = vector.broadcast %5 : vector<1x384xf32> to vector<2x384xf32>
    %435 = arith.addf %433, %434 : vector<2x384xf32>
    %436 = vector.extract_strided_slice %431 {offsets = [0, 0], sizes = [2, 128], strides = [1, 1]} : vector<2x384xf32> to vector<2x128xf32>
    %437 = vector.extract_strided_slice %435 {offsets = [0, 0], sizes = [2, 128], strides = [1, 1]} : vector<2x384xf32> to vector<2x128xf32>
    %438 = arith.addf %436, %437 : vector<2x128xf32>
    %439 = arith.negf %438 : vector<2x128xf32>
    %440 = math.exp %439 : vector<2x128xf32>
    %cst_141 = arith.constant 1.000000e+00 : f32
    %441 = vector.broadcast %cst_141 : f32 to vector<2x128xf32>
    %442 = arith.addf %441, %440 : vector<2x128xf32>
    %443 = arith.divf %441, %442 : vector<2x128xf32>
    %444 = vector.extract_strided_slice %431 {offsets = [0, 128], sizes = [2, 128], strides = [1, 1]} : vector<2x384xf32> to vector<2x128xf32>
    %445 = vector.extract_strided_slice %435 {offsets = [0, 128], sizes = [2, 128], strides = [1, 1]} : vector<2x384xf32> to vector<2x128xf32>
    %446 = arith.addf %444, %445 : vector<2x128xf32>
    %447 = arith.negf %446 : vector<2x128xf32>
    %448 = math.exp %447 : vector<2x128xf32>
    %cst_142 = arith.constant 1.000000e+00 : f32
    %449 = vector.broadcast %cst_142 : f32 to vector<2x128xf32>
    %450 = arith.addf %449, %448 : vector<2x128xf32>
    %451 = arith.divf %449, %450 : vector<2x128xf32>
    %452 = vector.extract_strided_slice %431 {offsets = [0, 256], sizes = [2, 128], strides = [1, 1]} : vector<2x384xf32> to vector<2x128xf32>
    %453 = vector.extract_strided_slice %435 {offsets = [0, 256], sizes = [2, 128], strides = [1, 1]} : vector<2x384xf32> to vector<2x128xf32>
    %454 = arith.mulf %443, %453 : vector<2x128xf32>
    %455 = arith.addf %452, %454 : vector<2x128xf32>
    %456 = math.tanh %455 : vector<2x128xf32>
    %cst_143 = arith.constant 1.000000e+00 : f32
    %457 = vector.broadcast %cst_143 : f32 to vector<2x128xf32>
    %458 = arith.subf %457, %451 : vector<2x128xf32>
    %459 = arith.mulf %458, %456 : vector<2x128xf32>
    %460 = arith.mulf %451, %391 : vector<2x128xf32>
    %461 = arith.addf %459, %460 : vector<2x128xf32>
    %c0_144 = arith.constant 0 : index
    %c1_145 = arith.constant 1 : index
    %c0_146 = arith.constant 0 : index
    %c0_147 = arith.constant 0 : index
    %462 = vector.load %arg2[%c0_144, %c1_145, %c0_146, %c0_147] : memref<1x8x2x384xf32, #tpu.memory_space<vmem>>, vector<1x1x2x384xf32>
    %463 = vector.shape_cast %462 : vector<1x1x2x384xf32> to vector<2x384xf32>
    %464 = arith.truncf %423 : vector<2x128xf32> to vector<2x128xbf16>
    %cst_148 = arith.constant dense<0.000000e+00> : vector<2x384xf32>
    %465 = tpu.matmul %464, %3, %cst_148 {dimension_numbers = #tpu.dot_dimension_numbers<[1], [0], [0], [1], [0, 0, 1, 1], [], []>} : vector<2x128xbf16>, vector<128x384xbf16>, vector<2x384xf32> -> vector<2x384xf32>
    %466 = vector.broadcast %7 : vector<1x384xf32> to vector<2x384xf32>
    %467 = arith.addf %465, %466 : vector<2x384xf32>
    %468 = vector.extract_strided_slice %463 {offsets = [0, 0], sizes = [2, 128], strides = [1, 1]} : vector<2x384xf32> to vector<2x128xf32>
    %469 = vector.extract_strided_slice %467 {offsets = [0, 0], sizes = [2, 128], strides = [1, 1]} : vector<2x384xf32> to vector<2x128xf32>
    %470 = arith.addf %468, %469 : vector<2x128xf32>
    %471 = arith.negf %470 : vector<2x128xf32>
    %472 = math.exp %471 : vector<2x128xf32>
    %cst_149 = arith.constant 1.000000e+00 : f32
    %473 = vector.broadcast %cst_149 : f32 to vector<2x128xf32>
    %474 = arith.addf %473, %472 : vector<2x128xf32>
    %475 = arith.divf %473, %474 : vector<2x128xf32>
    %476 = vector.extract_strided_slice %463 {offsets = [0, 128], sizes = [2, 128], strides = [1, 1]} : vector<2x384xf32> to vector<2x128xf32>
    %477 = vector.extract_strided_slice %467 {offsets = [0, 128], sizes = [2, 128], strides = [1, 1]} : vector<2x384xf32> to vector<2x128xf32>
    %478 = arith.addf %476, %477 : vector<2x128xf32>
    %479 = arith.negf %478 : vector<2x128xf32>
    %480 = math.exp %479 : vector<2x128xf32>
    %cst_150 = arith.constant 1.000000e+00 : f32
    %481 = vector.broadcast %cst_150 : f32 to vector<2x128xf32>
    %482 = arith.addf %481, %480 : vector<2x128xf32>
    %483 = arith.divf %481, %482 : vector<2x128xf32>
    %484 = vector.extract_strided_slice %463 {offsets = [0, 256], sizes = [2, 128], strides = [1, 1]} : vector<2x384xf32> to vector<2x128xf32>
    %485 = vector.extract_strided_slice %467 {offsets = [0, 256], sizes = [2, 128], strides = [1, 1]} : vector<2x384xf32> to vector<2x128xf32>
    %486 = arith.mulf %475, %485 : vector<2x128xf32>
    %487 = arith.addf %484, %486 : vector<2x128xf32>
    %488 = math.tanh %487 : vector<2x128xf32>
    %cst_151 = arith.constant 1.000000e+00 : f32
    %489 = vector.broadcast %cst_151 : f32 to vector<2x128xf32>
    %490 = arith.subf %489, %483 : vector<2x128xf32>
    %491 = arith.mulf %490, %488 : vector<2x128xf32>
    %492 = arith.mulf %483, %423 : vector<2x128xf32>
    %493 = arith.addf %491, %492 : vector<2x128xf32>
    %c6_152 = arith.constant 6 : index
    %c0_153 = arith.constant 0 : index
    %c0_154 = arith.constant 0 : index
    %494 = vector.load %arg10[%c6_152, %c0_153, %c0_154] : memref<8x2x256xf32, #tpu.memory_space<vmem>>, vector<1x2x128xf32>
    %495 = vector.shape_cast %494 : vector<1x2x128xf32> to vector<2x128xf32>
    %496 = vector.shape_cast %461 : vector<2x128xf32> to vector<1x2x128xf32>
    tpu.vector_store %arg10[%c6_152, %c0_153, %c0_154], %496 {strides = array<i32>} : memref<8x2x256xf32, #tpu.memory_space<vmem>>, vector<1x2x128xf32>,
    %c1_155 = arith.constant 1 : index
    %c0_156 = arith.constant 0 : index
    %c128_157 = arith.constant 128 : index
    %497 = vector.load %arg10[%c1_155, %c0_156, %c128_157] : memref<8x2x256xf32, #tpu.memory_space<vmem>>, vector<1x2x128xf32>
    %498 = vector.shape_cast %497 : vector<1x2x128xf32> to vector<2x128xf32>
    %499 = vector.shape_cast %493 : vector<2x128xf32> to vector<1x2x128xf32>
    tpu.vector_store %arg10[%c1_155, %c0_156, %c128_157], %499 {strides = array<i32>} : memref<8x2x256xf32, #tpu.memory_space<vmem>>, vector<1x2x128xf32>,
    %c0_158 = arith.constant 0 : index
    %c7_159 = arith.constant 7 : index
    %c0_160 = arith.constant 0 : index
    %c0_161 = arith.constant 0 : index
    %500 = vector.load %arg1[%c0_158, %c7_159, %c0_160, %c0_161] : memref<1x8x2x384xf32, #tpu.memory_space<vmem>>, vector<1x1x2x384xf32>
    %501 = vector.shape_cast %500 : vector<1x1x2x384xf32> to vector<2x384xf32>
    %502 = arith.truncf %461 : vector<2x128xf32> to vector<2x128xbf16>
    %cst_162 = arith.constant dense<0.000000e+00> : vector<2x384xf32>
    %503 = tpu.matmul %502, %1, %cst_162 {dimension_numbers = #tpu.dot_dimension_numbers<[1], [0], [0], [1], [0, 0, 1, 1], [], []>} : vector<2x128xbf16>, vector<128x384xbf16>, vector<2x384xf32> -> vector<2x384xf32>
    %504 = vector.broadcast %5 : vector<1x384xf32> to vector<2x384xf32>
    %505 = arith.addf %503, %504 : vector<2x384xf32>
    %506 = vector.extract_strided_slice %501 {offsets = [0, 0], sizes = [2, 128], strides = [1, 1]} : vector<2x384xf32> to vector<2x128xf32>
    %507 = vector.extract_strided_slice %505 {offsets = [0, 0], sizes = [2, 128], strides = [1, 1]} : vector<2x384xf32> to vector<2x128xf32>
    %508 = arith.addf %506, %507 : vector<2x128xf32>
    %509 = arith.negf %508 : vector<2x128xf32>
    %510 = math.exp %509 : vector<2x128xf32>
    %cst_163 = arith.constant 1.000000e+00 : f32
    %511 = vector.broadcast %cst_163 : f32 to vector<2x128xf32>
    %512 = arith.addf %511, %510 : vector<2x128xf32>
    %513 = arith.divf %511, %512 : vector<2x128xf32>
    %514 = vector.extract_strided_slice %501 {offsets = [0, 128], sizes = [2, 128], strides = [1, 1]} : vector<2x384xf32> to vector<2x128xf32>
    %515 = vector.extract_strided_slice %505 {offsets = [0, 128], sizes = [2, 128], strides = [1, 1]} : vector<2x384xf32> to vector<2x128xf32>
    %516 = arith.addf %514, %515 : vector<2x128xf32>
    %517 = arith.negf %516 : vector<2x128xf32>
    %518 = math.exp %517 : vector<2x128xf32>
    %cst_164 = arith.constant 1.000000e+00 : f32
    %519 = vector.broadcast %cst_164 : f32 to vector<2x128xf32>
    %520 = arith.addf %519, %518 : vector<2x128xf32>
    %521 = arith.divf %519, %520 : vector<2x128xf32>
    %522 = vector.extract_strided_slice %501 {offsets = [0, 256], sizes = [2, 128], strides = [1, 1]} : vector<2x384xf32> to vector<2x128xf32>
    %523 = vector.extract_strided_slice %505 {offsets = [0, 256], sizes = [2, 128], strides = [1, 1]} : vector<2x384xf32> to vector<2x128xf32>
    %524 = arith.mulf %513, %523 : vector<2x128xf32>
    %525 = arith.addf %522, %524 : vector<2x128xf32>
    %526 = math.tanh %525 : vector<2x128xf32>
    %cst_165 = arith.constant 1.000000e+00 : f32
    %527 = vector.broadcast %cst_165 : f32 to vector<2x128xf32>
    %528 = arith.subf %527, %521 : vector<2x128xf32>
    %529 = arith.mulf %528, %526 : vector<2x128xf32>
    %530 = arith.mulf %521, %461 : vector<2x128xf32>
    %531 = arith.addf %529, %530 : vector<2x128xf32>
    %c0_166 = arith.constant 0 : index
    %c0_167 = arith.constant 0 : index
    %c0_168 = arith.constant 0 : index
    %c0_169 = arith.constant 0 : index
    %532 = vector.load %arg2[%c0_166, %c0_167, %c0_168, %c0_169] : memref<1x8x2x384xf32, #tpu.memory_space<vmem>>, vector<1x1x2x384xf32>
    %533 = vector.shape_cast %532 : vector<1x1x2x384xf32> to vector<2x384xf32>
    %534 = arith.truncf %493 : vector<2x128xf32> to vector<2x128xbf16>
    %cst_170 = arith.constant dense<0.000000e+00> : vector<2x384xf32>
    %535 = tpu.matmul %534, %3, %cst_170 {dimension_numbers = #tpu.dot_dimension_numbers<[1], [0], [0], [1], [0, 0, 1, 1], [], []>} : vector<2x128xbf16>, vector<128x384xbf16>, vector<2x384xf32> -> vector<2x384xf32>
    %536 = vector.broadcast %7 : vector<1x384xf32> to vector<2x384xf32>
    %537 = arith.addf %535, %536 : vector<2x384xf32>
    %538 = vector.extract_strided_slice %533 {offsets = [0, 0], sizes = [2, 128], strides = [1, 1]} : vector<2x384xf32> to vector<2x128xf32>
    %539 = vector.extract_strided_slice %537 {offsets = [0, 0], sizes = [2, 128], strides = [1, 1]} : vector<2x384xf32> to vector<2x128xf32>
    %540 = arith.addf %538, %539 : vector<2x128xf32>
    %541 = arith.negf %540 : vector<2x128xf32>
    %542 = math.exp %541 : vector<2x128xf32>
    %cst_171 = arith.constant 1.000000e+00 : f32
    %543 = vector.broadcast %cst_171 : f32 to vector<2x128xf32>
    %544 = arith.addf %543, %542 : vector<2x128xf32>
    %545 = arith.divf %543, %544 : vector<2x128xf32>
    %546 = vector.extract_strided_slice %533 {offsets = [0, 128], sizes = [2, 128], strides = [1, 1]} : vector<2x384xf32> to vector<2x128xf32>
    %547 = vector.extract_strided_slice %537 {offsets = [0, 128], sizes = [2, 128], strides = [1, 1]} : vector<2x384xf32> to vector<2x128xf32>
    %548 = arith.addf %546, %547 : vector<2x128xf32>
    %549 = arith.negf %548 : vector<2x128xf32>
    %550 = math.exp %549 : vector<2x128xf32>
    %cst_172 = arith.constant 1.000000e+00 : f32
    %551 = vector.broadcast %cst_172 : f32 to vector<2x128xf32>
    %552 = arith.addf %551, %550 : vector<2x128xf32>
    %553 = arith.divf %551, %552 : vector<2x128xf32>
    %554 = vector.extract_strided_slice %533 {offsets = [0, 256], sizes = [2, 128], strides = [1, 1]} : vector<2x384xf32> to vector<2x128xf32>
    %555 = vector.extract_strided_slice %537 {offsets = [0, 256], sizes = [2, 128], strides = [1, 1]} : vector<2x384xf32> to vector<2x128xf32>
    %556 = arith.mulf %545, %555 : vector<2x128xf32>
    %557 = arith.addf %554, %556 : vector<2x128xf32>
    %558 = math.tanh %557 : vector<2x128xf32>
    %cst_173 = arith.constant 1.000000e+00 : f32
    %559 = vector.broadcast %cst_173 : f32 to vector<2x128xf32>
    %560 = arith.subf %559, %553 : vector<2x128xf32>
    %561 = arith.mulf %560, %558 : vector<2x128xf32>
    %562 = arith.mulf %553, %493 : vector<2x128xf32>
    %563 = arith.addf %561, %562 : vector<2x128xf32>
    %c7_174 = arith.constant 7 : index
    %c0_175 = arith.constant 0 : index
    %c0_176 = arith.constant 0 : index
    %564 = vector.load %arg10[%c7_174, %c0_175, %c0_176] : memref<8x2x256xf32, #tpu.memory_space<vmem>>, vector<1x2x128xf32>
    %565 = vector.shape_cast %564 : vector<1x2x128xf32> to vector<2x128xf32>
    %566 = vector.shape_cast %531 : vector<2x128xf32> to vector<1x2x128xf32>
    tpu.vector_store %arg10[%c7_174, %c0_175, %c0_176], %566 {strides = array<i32>} : memref<8x2x256xf32, #tpu.memory_space<vmem>>, vector<1x2x128xf32>,
    %c0_177 = arith.constant 0 : index
    %c0_178 = arith.constant 0 : index
    %c128_179 = arith.constant 128 : index
    %567 = vector.load %arg10[%c0_177, %c0_178, %c128_179] : memref<8x2x256xf32, #tpu.memory_space<vmem>>, vector<1x2x128xf32>
    %568 = vector.shape_cast %567 : vector<1x2x128xf32> to vector<2x128xf32>
    %569 = vector.shape_cast %563 : vector<2x128xf32> to vector<1x2x128xf32>
    tpu.vector_store %arg10[%c0_177, %c0_178, %c128_179], %569 {strides = array<i32>} : memref<8x2x256xf32, #tpu.memory_space<vmem>>, vector<1x2x128xf32>,
    %c0_180 = arith.constant 0 : index
    %c0_181 = arith.constant 0 : index
    %c0_182 = arith.constant 0 : index
    %570 = vector.load %arg10[%c0_180, %c0_181, %c0_182] : memref<8x2x256xf32, #tpu.memory_space<vmem>>, vector<8x2x256xf32>
    %c0_183 = arith.constant 0 : index
    %c0_184 = arith.constant 0 : index
    %c0_185 = arith.constant 0 : index
    %571 = vector.load %arg7[%c0_183, %c0_184, %c0_185] : memref<1x1x256xf32, #tpu.memory_space<vmem>>, vector<1x1x256xf32>
    %572 = vector.shape_cast %571 : vector<1x1x256xf32> to vector<1x256xf32>
    %573 = vector.shape_cast %572 : vector<1x256xf32> to vector<1x1x256xf32>
    %574 = vector.broadcast %573 : vector<1x1x256xf32> to vector<8x2x256xf32>
    %575 = arith.mulf %570, %574 : vector<8x2x256xf32>
    %cst_186 = arith.constant dense<0.000000e+00> : vector<8x2xf32>
    %576 = vector.multi_reduction <add>, %575, %cst_186 [2] : vector<8x2x256xf32> to vector<8x2xf32>
    %577 = vector.shape_cast %576 : vector<8x2xf32> to vector<8x2x1xf32>
    %c0_187 = arith.constant 0 : index
    %c0_188 = arith.constant 0 : index
    %c0_189 = arith.constant 0 : index
    %578 = vector.load %arg8[%c0_187, %c0_188, %c0_189] : memref<1x1x1xf32, #tpu.memory_space<vmem>>, vector<1x1x1xf32>
    %579 = vector.shape_cast %578 : vector<1x1x1xf32> to vector<1x1xf32>
    %580 = vector.shape_cast %579 : vector<1x1xf32> to vector<1x1x1xf32>
    %581 = vector.broadcast %580 : vector<1x1x1xf32> to vector<8x2x1xf32>
    %582 = arith.addf %577, %581 : vector<8x2x1xf32>
    %cst_190 = arith.constant dense<0xFF800000> : vector<2x1xf32>
    %583 = vector.multi_reduction <maximumf>, %582, %cst_190 [0] : vector<8x2x1xf32> to vector<2x1xf32>
    %584 = vector.shape_cast %583 : vector<2x1xf32> to vector<1x2x1xf32>
    %585 = vector.broadcast %584 : vector<1x2x1xf32> to vector<8x2x1xf32>
    %586 = arith.subf %582, %585 : vector<8x2x1xf32>
    %587 = math.exp %586 : vector<8x2x1xf32>
    %cst_191 = arith.constant dense<0.000000e+00> : vector<2x1xf32>
    %588 = vector.multi_reduction <add>, %587, %cst_191 [0] : vector<8x2x1xf32> to vector<2x1xf32>
    %589 = vector.shape_cast %588 : vector<2x1xf32> to vector<1x2x1xf32>
    %590 = tpu.reciprocal %589 {approx = true} : vector<1x2x1xf32> -> vector<1x2x1xf32>
    %591 = vector.broadcast %590 : vector<1x2x1xf32> to vector<8x2x1xf32>
    %592 = arith.mulf %587, %591 : vector<8x2x1xf32>
    %593 = vector.broadcast %592 : vector<8x2x1xf32> to vector<8x2x256xf32>
    %594 = arith.mulf %593, %570 : vector<8x2x256xf32>
    %cst_192 = arith.constant dense<0.000000e+00> : vector<2x256xf32>
    %595 = vector.multi_reduction <add>, %594, %cst_192 [0] : vector<8x2x256xf32> to vector<2x256xf32>
    %cst_193 = arith.constant 1.250000e-01 : f32
    %596 = vector.broadcast %cst_193 : f32 to vector<2x256xf32>
    %597 = arith.mulf %595, %596 : vector<2x256xf32>
    %c0_194 = arith.constant 0 : index
    %c0_195 = arith.constant 0 : index
    %598 = vector.load %arg9[%c0_194, %c0_195] : memref<2x256xf32, #tpu.memory_space<vmem>>, vector<2x256xf32>
    tpu.vector_store %arg9[%c0_194, %c0_195], %597 {strides = array<i32>} : memref<2x256xf32, #tpu.memory_space<vmem>>, vector<2x256xf32>,
    return
  }
  func.func @transform_0(%arg0: i32) -> (i32, i32, i32, i32) {
    %c0_i32 = arith.constant 0 : i32
    %c0_i32_0 = arith.constant 0 : i32
    %c0_i32_1 = arith.constant 0 : i32
    %c0_i32_2 = arith.constant 0 : i32
    return %arg0, %c0_i32, %c0_i32_0, %c0_i32_1 : i32, i32, i32, i32
  }
  func.func @transform_1(%arg0: i32) -> (i32, i32, i32, i32) {
    %c0_i32 = arith.constant 0 : i32
    %c0_i32_0 = arith.constant 0 : i32
    %c0_i32_1 = arith.constant 0 : i32
    %c0_i32_2 = arith.constant 0 : i32
    return %arg0, %c0_i32, %c0_i32_0, %c0_i32_1 : i32, i32, i32, i32
  }
  func.func @transform_2(%arg0: i32) -> (i32, i32, i32) {
    %c0_i32 = arith.constant 0 : i32
    %c0_i32_0 = arith.constant 0 : i32
    %c0_i32_1 = arith.constant 0 : i32
    return %arg0, %c0_i32, %c0_i32_0 : i32, i32, i32
  }
  func.func @transform_3(%arg0: i32) -> (i32, i32, i32) {
    %c0_i32 = arith.constant 0 : i32
    %c0_i32_0 = arith.constant 0 : i32
    %c0_i32_1 = arith.constant 0 : i32
    return %arg0, %c0_i32, %c0_i32_0 : i32, i32, i32
  }
  func.func @transform_4(%arg0: i32) -> (i32, i32, i32) {
    %c0_i32 = arith.constant 0 : i32
    %c0_i32_0 = arith.constant 0 : i32
    %c0_i32_1 = arith.constant 0 : i32
    return %arg0, %c0_i32, %c0_i32_0 : i32, i32, i32
  }
  func.func @transform_5(%arg0: i32) -> (i32, i32, i32) {
    %c0_i32 = arith.constant 0 : i32
    %c0_i32_0 = arith.constant 0 : i32
    %c0_i32_1 = arith.constant 0 : i32
    return %arg0, %c0_i32, %c0_i32_0 : i32, i32, i32
  }
  func.func @transform_6(%arg0: i32) -> (i32, i32, i32) {
    %c0_i32 = arith.constant 0 : i32
    %c0_i32_0 = arith.constant 0 : i32
    %c0_i32_1 = arith.constant 0 : i32
    return %arg0, %c0_i32, %c0_i32_0 : i32, i32, i32
  }
  func.func @transform_7(%arg0: i32) -> (i32, i32, i32) {
    %c0_i32 = arith.constant 0 : i32
    %c0_i32_0 = arith.constant 0 : i32
    %c0_i32_1 = arith.constant 0 : i32
    return %arg0, %c0_i32, %c0_i32_0 : i32, i32, i32
  }
  func.func @transform_8(%arg0: i32) -> (i32, i32) {
    %c0_i32 = arith.constant 0 : i32
    %c0_i32_0 = arith.constant 0 : i32
    return %c0_i32, %arg0 : i32, i32
  }
}

</mosaic_0001>

<bundles_post_ra>
// kernel: coattention_forward.1
= control target key start
LH: loop header
LB: loop body
LE: loop exit
PB: predicated region body
PF: predicated region fallthrough
CT: control target
= control target key end

     0   :  { %s4076_s27 = smov 0   ;;  %s5281_s0 = inlined_call_operand.vmem [shape: f32[3,8,2,384], index: 0, kind: input, shape index: {}]   ;;  %s5282_s1 = inlined_call_operand.vmem [shape: f32[3,8,2,384], index: 1, kind: input, shape index: {}]   ;;  %s5283_s2 = inlined_call_operand.vmem [shape: bf16[3,128,384], index: 2, kind: input, shape index: {}]   ;;  %s5284_s3 = inlined_call_operand.vmem [shape: bf16[3,128,384], index: 3, kind: input, shape index: {}]   ;;  %s5285_s4 = inlined_call_operand.vmem [shape: f32[3,1,384], index: 4, kind: input, shape index: {}]   ;;  %s5286_s5 = inlined_call_operand.vmem [shape: f32[3,1,384], index: 5, kind: input, shape index: {}]   ;;  %s5287_s6 = inlined_call_operand.vmem [shape: f32[3,1,256], index: 6, kind: input, shape index: {}]   ;;  %s5288_s7 = inlined_call_operand.vmem [shape: f32[3,1,1], index: 7, kind: input, shape index: {}]   ;;  %s5289_s8 = inlined_call_operand.vmem [shape: f32[2,768], index: 8, kind: output, shape index: {}]  }
   0x1 LB: > { %s4082_s28 = sadd.s32 4294967295, %s4025_s27   ;;  %p3138_p0 = scmp.ge.s32.totalorder %s4025_s27, 1  ;;  %s4025_s27 = sphi %s4076_s27, %s18_s27  }
   0x2   : > { %p327_p1 = scmp.lt.s32.totalorder %s4025_s27, 4 }
   0x4   : > { %p328_p2 = pnand %p3138_p0, %p327_p1 }
   0x6   : > { %331 = sbr.rel (%p328_p2) target bundleno = 2482 (0x9b2), region = 52 }
   0xb   : > { %p391_p3 = scmp.lt.s32.totalorder %s4082_s28, 2  ;;  %v5292_v0 = vmov 0.0   ;;  %v5290_v1 = vmov 0   ;;  %vm4029_vm0 = vmmov 0   ;;  %v501_v50 = vlaneseq }
   0xc   : > { %3388 = vmatprep.subr.bf16.mxu1 %v5292_v0  ;;  %676 = vmatprep.mubr.bf16.mxu0 %v5290_v1  ;;  %vm2689_vm1 = vcmask 1041408   ;;  %vm2745_vm2 = vcmask 1024  }
   0xd   : > { %s4090_s29 = scalar_select %p391_p3, %s4082_s28, 2  ;;  %3404 = vmatprep.mubr.msk.bf16.mxu1 %vm4029_vm0, %v5292_v0  ;;  %3724 = vset.pattern.permute.xlu1 %v5290_v1  ;;  %v4359_v51 = vshrl.u32 %v501_v50, 7 }
   0xe   : > { %3723 = vset.pattern.permute.xlu0 %v5290_v1 }
   0xf   : > { %s3709_s30 = smul.u32 192, %s4090_s29  ;;  %5376 = vst [vmem:[#allocation17_spill] sm:$0xff] %v4359_v51  ;;  %v4368_v52 = vsub.s32 0, %v4359_v51  ;;  %v4381_v55 = vsub.s32 1, %v4359_v51  ;;  %s3143_s10 = sshll.u32 %s4090_s29, 1 }
  0x10   : > { %s3710_s15 = smul.u32 3, %s4090_s29  ;;  %s422_s13 = scalar_lea.vmem %s5287_s6, %s3143_s10 }
  0x11   : > { %s4100_s11 = scalar_lea.vmem %s5283_s2, %s3709_s30  ;;  %s4134_s14 = scalar_lea.vmem %s5284_s3, %s3709_s30  ;;  %5377 = vst [vmem:[#allocation18_spill] sm:$0xff] %v4368_v52  ;;  %5379 = vst [vmem:[#allocation20_spill] sm:$0xff] %v4381_v55 }
  0x12   : > { %v4103_v2 = vld [vmem:[%s4100_s11 + $0xac] ss:$12 sps:$4 sm:$0xff]   ;;  %v4106_v3 = vld [vmem:[%s4100_s11 + $0xa8] ss:$12 sps:$4 sm:$0xff]   ;;  %v4114_v5 = vld [vmem:[%s4100_s11 + $0x90] ss:$12 sps:$4 sm:$0xff]   ;;  %s414_s18 = scalar_lea.vmem %s5285_s4, %s3710_s15  ;;  %s418_s25 = scalar_lea.vmem %s5286_s5, %s3710_s15 }
  0x13   : > { %644 = vmatprep.subr.bf16.mxu0 %v4103_v2  ;;  %v4110_v4 = vld [vmem:[%s4100_s11 + $0x94] ss:$12 sps:$4 sm:$0xff]   ;;  %v4118_v6 = vld [vmem:[%s4100_s11 + $0x7c] ss:$12 sps:$4 sm:$0xff]   ;;  %v4122_v7 = vld [vmem:[%s4100_s11 + $0x78] ss:$12 sps:$4 sm:$0xff]   ;;  %s425_s16 = scalar_lea.vmem %s5288_s7, %s4090_s29 }
  0x14   : > { %645 = vmatpush1.bf16.msra.mxu0 %v4106_v3  ;;  %v4126_v8 = vld [vmem:[%s4100_s11 + $0x64] ss:$12 sps:$4 sm:$0xff]   ;;  %v4129_v9 = vld [vmem:[%s4100_s11 + $0x60] ss:$12 sps:$4 sm:$0xff]   ;;  %v4151_v13 = vld [vmem:[%s4100_s11 + $0x48] ss:$12 sps:$4 sm:$0xff]  }
  0x15   : > { %646 = vmatprep.subr.bf16.mxu0 %v4110_v4  ;;  %v4138_v10 = vld [vmem:[%s4100_s11 + $0xb0] ss:$12 sps:$4 sm:$0xff]   ;;  %v4142_v11 = vld [vmem:[%s4100_s11 + $0x4c] ss:$12 sps:$4 sm:$0xff]   ;;  %5363 = vst [vmem:[#allocation4_spill] sm:$0xff] %v4151_v13  ;;  %s3708_s19 = smul.u32 48, %s4090_s29 }
  0x16   : > { %5362 = vst [vmem:[#allocation3_spill] sm:$0xff] %v4142_v11  ;;  %3389 = vmatpush3.bf16.msra.mxu1 %v4138_v10  ;;  %v4146_v12 = vld [vmem:[%s4100_s11 + $0x98] ss:$12 sps:$4 sm:$0xff]   ;;  %v4155_v14 = vld [vmem:[%s4100_s11 + $0x34] ss:$12 sps:$4 sm:$0xff]   ;;  %s3144_s29 = sshll.u32 %s4082_s28, 1 }
  0x17   : > { %3390 = vmatprep.subr.bf16.mxu1 %v5292_v0  ;;  %5364 = vst [vmem:[#allocation5_spill] sm:$0xff] %v4155_v14  ;;  %v4159_v15 = vld [vmem:[%s4100_s11 + $0x80] ss:$12 sps:$4 sm:$0xff]   ;;  %v4164_v16 = vld [vmem:[%s4100_s11 + $0x30] ss:$12 sps:$4 sm:$0xff]   ;;  %s4375_s22 = scalar_lea.vmem %s5281_s0, %s3708_s19  ;;  %s4402_s9 = scalar_lea.vmem %s5282_s1, %s3708_s19 }
  0x18   : > { %647 = vmatpush1.bf16.msra.mxu0 %v4114_v5  ;;  %5365 = vst [vmem:[#allocation6_spill] sm:$0xff] %v4164_v16  ;;  %v4168_v17 = vld [vmem:[%s4100_s11 + $0x1c] ss:$12 sps:$4 sm:$0xff]   ;;  %v4177_v19 = vld [vmem:[%s4100_s11 + $0x18] ss:$12 sps:$4 sm:$0xff]   ;;  %p427_p4 = scmp.lt.s32.totalorder %s3144_s29, 5 }
  0x19   : > { %648 = vmatprep.subr.bf16.mxu0 %v4118_v6  ;;  %5366 = vst [vmem:[#allocation7_spill] sm:$0xff] %v4168_v17  ;;  %v4172_v18 = vld [vmem:[%s4100_s11 + $0x68] ss:$12 sps:$4 sm:$0xff]   ;;  %5368 = vst [vmem:[#allocation9_spill] sm:$0xff] %v4177_v19  ;;  %v4181_v20 = vld [vmem:[%s4100_s11 + $0x4] ss:$12 sps:$4 sm:$0xff]  }
  0x1a   : > { %3391 = vmatpush3.bf16.msra.mxu1 %v4146_v12  ;;  %5367 = vst [vmem:[#allocation8_spill] sm:$0xff] %v4172_v18  ;;  %5369 = vst [vmem:[#allocation10_spill] sm:$0xff] %v4181_v20  ;;  %v4185_v21 = vld [vmem:[%s4100_s11 + $0x50] ss:$12 sps:$4 sm:$0xff]   ;;  %v4190_v22 = vld [vmem:[%s4100_s11] ss:$12 sps:$4 sm:$0xff]  }
  0x1b   : > { %3392 = vmatprep.subr.bf16.mxu1 %v5292_v0  ;;  %5370 = vst [vmem:[#allocation11_spill] sm:$0xff] %v4185_v21  ;;  %5371 = vst [vmem:[#allocation12_spill] sm:$0xff] %v4190_v22  ;;  %v4194_v23 = vld [vmem:[%s4134_s14 + $0xac] ss:$12 sps:$4 sm:$0xff]   ;;  %v4203_v25 = vld [vmem:[%s4134_s14 + $0xa8] ss:$12 sps:$4 sm:$0xff]  }
  0x1c   : > { %649 = vmatpush1.bf16.msra.mxu0 %v4122_v7  ;;  %5372 = vst [vmem:[#allocation13_spill] sm:$0xff] %v4194_v23  ;;  %v4198_v24 = vld [vmem:[%s4100_s11 + $0x38] ss:$12 sps:$4 sm:$0xff]   ;;  %v4207_v26 = vld [vmem:[%s4134_s14 + $0x94] ss:$12 sps:$4 sm:$0xff]   ;;  %s5473_s29 = smov (!%p427_p4, %s3144_s29), 5 }
  0x1d   : > { %650 = vmatprep.subr.bf16.mxu0 %v4126_v8  ;;  %5373 = vst [vmem:[#allocation14_spill] sm:$0xff] %v4198_v24  ;;  %v4211_v27 = vld [vmem:[%s4100_s11 + $0x20] ss:$12 sps:$4 sm:$0xff]   ;;  %v4217_v28 = vld [vmem:[%s4134_s14 + $0x90] ss:$12 sps:$4 sm:$0xff]   ;;  %s3145_s28 = sshll.u32 %s5473_s29, 1 }
  0x1e   : > { %3393 = vmatpush3.bf16.msra.mxu1 %v4159_v15  ;;  %5374 = vst [vmem:[#allocation15_spill] sm:$0xff] %v4211_v27  ;;  %v4222_v29 = vld [vmem:[%s4134_s14 + $0x7c] ss:$12 sps:$4 sm:$0xff]   ;;  %v4231_v31 = vld [vmem:[%s4134_s14 + $0x78] ss:$12 sps:$4 sm:$0xff]   ;;  %s430_s19 = scalar_lea.vmem %s5289_s8, %s3145_s28 }
  0x1f   : > { %3394 = vmatprep.subr.bf16.mxu1 %v5292_v0  ;;  %v4226_v30 = vld [vmem:[%s4100_s11 + $0x8] ss:$12 sps:$4 sm:$0xff]   ;;  %v4235_v32 = vld [vmem:[%s4134_s14 + $0x64] ss:$12 sps:$4 sm:$0xff]   ;;  %v4244_v34 = vld [vmem:[%s4134_s14 + $0x60] ss:$12 sps:$4 sm:$0xff]  }
  0x20   : > { %651 = vmatpush1.bf16.msra.mxu0 %v4129_v9  ;;  %5375 = vst [vmem:[#allocation16_spill] sm:$0xff] %v4226_v30  ;;  %v4239_v33 = vld [vmem:[%s4134_s14 + $0xb0] ss:$12 sps:$4 sm:$0xff]   ;;  %v4248_v35 = vld [vmem:[%s4134_s14 + $0x4c] ss:$12 sps:$4 sm:$0xff]  }
  0x21   : > { %652 = vmatprep.subr.bf16.mxu0 %v4142_v11  ;;  %v4253_v36 = vld [vmem:[%s4134_s14 + $0x98] ss:$12 sps:$4 sm:$0xff]   ;;  %v4260_v37 = vld [vmem:[%s4134_s14 + $0x48] ss:$12 sps:$4 sm:$0xff]   ;;  %v4268_v39 = vld [vmem:[%s4134_s14 + $0x80] ss:$12 sps:$4 sm:$0xff]  }
  0x22   : > { %3395 = vmatpush3.bf16.msra.mxu1 %v4172_v18  ;;  %v4264_v38 = vld [vmem:[%s4134_s14 + $0x34] ss:$12 sps:$4 sm:$0xff]   ;;  %v4273_v40 = vld [vmem:[%s4134_s14 + $0x30] ss:$12 sps:$4 sm:$0xff]   ;;  %v4286_v43 = vld [vmem:[%s4134_s14 + $0x18] ss:$12 sps:$4 sm:$0xff]  }
  0x23   : > { %3396 = vmatprep.subr.bf16.mxu1 %v5292_v0  ;;  %v4277_v41 = vld [vmem:[%s4134_s14 + $0x1c] ss:$12 sps:$4 sm:$0xff]   ;;  %v4290_v44 = vld [vmem:[%s4134_s14 + $0x4] ss:$12 sps:$4 sm:$0xff]   ;;  %v4299_v46 = vld [vmem:[%s4134_s14] ss:$12 sps:$4 sm:$0xff]  }
  0x24   : > { %653 = vmatpush1.bf16.msra.mxu0 %v4151_v13  ;;  %v4281_v42 = vld [vmem:[%s4134_s14 + $0x68] ss:$12 sps:$4 sm:$0xff]   ;;  %v4294_v45 = vld [vmem:[%s4134_s14 + $0x50] ss:$12 sps:$4 sm:$0xff]   ;;  %v4304_v47 = vld [vmem:[%s4134_s14 + $0x38] ss:$12 sps:$4 sm:$0xff]  }
  0x25   : > { %654 = vmatprep.subr.bf16.mxu0 %v4155_v14  ;;  %v4311_v48 = vld [vmem:[%s4134_s14 + $0x20] ss:$12 sps:$4 sm:$0xff]   ;;  %v4320_v49 = vld [vmem:[%s4134_s14 + $0x8] ss:$12 sps:$4 sm:$0xff]  }
  0x26   : > { %3397 = vmatpush3.bf16.msra.mxu1 %v4185_v21  ;;  %v497_v53 = vld [vmem:[%s414_s18] sm:$0x7] }
  0x27   : > { %3398 = vmatprep.subr.bf16.mxu1 %v5292_v0  ;;  %v4378_v54 = vrot.slane %v497_v53, %v4368_v52  ;;  %v499_v56 = vld [vmem:[%s4375_s22] sm:$0x3f]  ;;  %v4386_v59 = vrot.slane %v497_v53, %v4381_v55 }
  0x28   : > { %655 = vmatpush1.bf16.msra.mxu0 %v4164_v16 }
  0x29   : > { %656 = vmatprep.subr.bf16.mxu0 %v4168_v17  ;;  %5378 = vst [vmem:[#allocation19_spill] sm:$0xff] %v4378_v54  ;;  %5380 = vst [vmem:[#allocation21_spill] sm:$0xff] %v4386_v59 }
  0x2a   : > { %3399 = vmatpush3.bf16.msra.mxu1 %v4198_v24 }
  0x2b   : > { %3400 = vmatprep.subr.bf16.mxu1 %v5292_v0 }
  0x2c   : > { %657 = vmatpush1.bf16.msra.mxu0 %v4177_v19 }
  0x2d   : > { %658 = vmatprep.subr.bf16.mxu0 %v4181_v20 }
  0x2e   : > { %3401 = vmatpush3.bf16.msra.mxu1 %v4211_v27 }
  0x2f   : > { %3402 = vmatprep.subr.bf16.mxu1 %v5292_v0 }
  0x30   : > { %659 = vmatpush1.bf16.msra.mxu0 %v4190_v22 }
  0x31   : > { %897 = vmatprep.subr.bf16.mxu0 %v4194_v23 }
  0x32   : > { %3403 = vmatpush3.bf16.msra.mxu1 %v4226_v30 }
  0x33   : > { %677 = vmatmul.mubr.bf16.vlgmr.msra.gmra.mxu0 %v5290_v1  ;;  %3408 = vmatprep.subr.bf16.mxu1 %v5292_v0 }
  0x34   : > { %898 = vmatpush1.bf16.msra.mxu0 %v4203_v25  ;;  %929 = vmatprep.mubr.bf16.mxu0 %v5290_v1 }
  0x35   : > { %899 = vmatprep.subr.bf16.mxu0 %v4207_v26  ;;  %3405 = vmatmul.mubr.bf16.vlgmr.msra.gmra.mxu1 %v5290_v1 }
  0x36   : > { %3409 = vmatpush3.bf16.msra.mxu1 %v4239_v33  ;;  %3424 = vmatprep.mubr.msk.bf16.mxu1 %vm4029_vm0, %v5292_v0 }
  0x37   : > { %3410 = vmatprep.subr.bf16.mxu1 %v5292_v0 }
  0x38   : > { %900 = vmatpush1.bf16.msra.mxu0 %v4217_v28 }
  0x39   : > { %901 = vmatprep.subr.bf16.mxu0 %v4222_v29 }
  0x3a   : > { %3411 = vmatpush3.bf16.msra.mxu1 %v4253_v36 }
  0x3b   : > { %3412 = vmatprep.subr.bf16.mxu1 %v5292_v0 }
  0x3c   : > { %902 = vmatpush1.bf16.msra.mxu0 %v4231_v31 }
  0x3d   : > { %903 = vmatprep.subr.bf16.mxu0 %v4235_v32 }
  0x3e   : > { %3413 = vmatpush3.bf16.msra.mxu1 %v4268_v39 }
  0x3f   : > { %3414 = vmatprep.subr.bf16.mxu1 %v5292_v0 }
  0x40   : > { %904 = vmatpush1.bf16.msra.mxu0 %v4244_v34 }
  0x41   : > { %905 = vmatprep.subr.bf16.mxu0 %v4248_v35 }
  0x42   : > { %3415 = vmatpush3.bf16.msra.mxu1 %v4281_v42 }
  0x43   : > { %3416 = vmatprep.subr.bf16.mxu1 %v5292_v0 }
  0x44   : > { %906 = vmatpush1.bf16.msra.mxu0 %v4260_v37 }
  0x45   : > { %907 = vmatprep.subr.bf16.mxu0 %v4264_v38 }
  0x46   : > { %3417 = vmatpush3.bf16.msra.mxu1 %v4294_v45 }
  0x47   : > { %3418 = vmatprep.subr.bf16.mxu1 %v5292_v0 }
  0x48   : > { %908 = vmatpush1.bf16.msra.mxu0 %v4273_v40 }
  0x49   : > { %909 = vmatprep.subr.bf16.mxu0 %v4277_v41 }
  0x4a   : > { %3419 = vmatpush3.bf16.msra.mxu1 %v4304_v47 }
  0x4b   : > { %3420 = vmatprep.subr.bf16.mxu1 %v5292_v0 }
  0x4c   : > { %910 = vmatpush1.bf16.msra.mxu0 %v4286_v43 }
  0x4d   : > { %911 = vmatprep.subr.bf16.mxu0 %v4290_v44 }
  0x4e   : > { %3421 = vmatpush3.bf16.msra.mxu1 %v4311_v48 }
  0x4f   : > { %3422 = vmatprep.subr.bf16.mxu1 %v5292_v0 }
  0x50   : > { %912 = vmatpush1.bf16.msra.mxu0 %v4299_v46 }
  0x51   : > { %1010 = vmatprep.subr.bf16.mxu0 %v4103_v2 }
  0x52   : > { %3423 = vmatpush3.bf16.msra.mxu1 %v4320_v49 }
  0x53   : > { %930 = vmatmul.mubr.bf16.vlgmr.msra.gmra.mxu0 %v5290_v1  ;;  %3428 = vmatprep.subr.bf16.mxu1 %v5292_v0 }
  0x54   : > { %1011 = vmatpush1.bf16.msra.mxu0 %v4106_v3  ;;  %1042 = vmatprep.mubr.bf16.mxu0 %v5290_v1 }
  0x55   : > { %1012 = vmatprep.subr.bf16.mxu0 %v4110_v4  ;;  %3425 = vmatmul.mubr.bf16.vlgmr.msra.gmra.mxu1 %v5290_v1  ;;  %v733_v1 = vrot.slane %v499_v56, 2 }
  0x56   : > { %3429 = vmatpush3.bf16.msra.mxu1 %v4138_v10  ;;  %3444 = vmatprep.mubr.msk.bf16.mxu1 %vm4029_vm0, %v5292_v0 }
  0x57   : > { %3430 = vmatprep.subr.bf16.mxu1 %v5292_v0 }
  0x58   : > { %1013 = vmatpush1.bf16.msra.mxu0 %v4114_v5 }
  0x59   : > { %1014 = vmatprep.subr.bf16.mxu0 %v4118_v6 }
  0x5a   : > { %3431 = vmatpush3.bf16.msra.mxu1 %v4146_v12 }
  0x5b   : > { %3432 = vmatprep.subr.bf16.mxu1 %v5292_v0 }
  0x5c   : > { %1015 = vmatpush1.bf16.msra.mxu0 %v4122_v7 }
  0x5d   : > { %1016 = vmatprep.subr.bf16.mxu0 %v4126_v8 }
  0x5e   : > { %3433 = vmatpush3.bf16.msra.mxu1 %v4159_v15 }
  0x5f   : > { %3434 = vmatprep.subr.bf16.mxu1 %v5292_v0 }
  0x60   : > { %1017 = vmatpush1.bf16.msra.mxu0 %v4129_v9 }
  0x61   : > { %1018 = vmatprep.subr.bf16.mxu0 %v4142_v11 }
  0x62   : > { %3435 = vmatpush3.bf16.msra.mxu1 %v4172_v18 }
  0x63   : > { %3436 = vmatprep.subr.bf16.mxu1 %v5292_v0 }
  0x64   : > { %1019 = vmatpush1.bf16.msra.mxu0 %v4151_v13 }
  0x65   : > { %1020 = vmatprep.subr.bf16.mxu0 %v4155_v14 }
  0x66   : > { %3437 = vmatpush3.bf16.msra.mxu1 %v4185_v21 }
  0x67   : > { %3438 = vmatprep.subr.bf16.mxu1 %v5292_v0 }
  0x68   : > { %1021 = vmatpush1.bf16.msra.mxu0 %v4164_v16 }
  0x69   : > { %1022 = vmatprep.subr.bf16.mxu0 %v4168_v17 }
  0x6a   : > { %3439 = vmatpush3.bf16.msra.mxu1 %v4198_v24 }
  0x6b   : > { %3440 = vmatprep.subr.bf16.mxu1 %v5292_v0 }
  0x6c   : > { %1023 = vmatpush1.bf16.msra.mxu0 %v4177_v19 }
  0x6d   : > { %1024 = vmatprep.subr.bf16.mxu0 %v4181_v20 }
  0x6e   : > { %3441 = vmatpush3.bf16.msra.mxu1 %v4211_v27 }
  0x6f   : > { %3442 = vmatprep.subr.bf16.mxu1 %v5292_v0 }
  0x70   : > { %1025 = vmatpush1.bf16.msra.mxu0 %v4190_v22 }
  0x71   : > { %1120 = vmatprep.subr.bf16.mxu0 %v4194_v23 }
  0x72   : > { %3443 = vmatpush3.bf16.msra.mxu1 %v4226_v30 }
  0x73   : > { %3448 = vmatprep.subr.bf16.mxu1 %v5292_v0 }
  0xf3   : > { %v678_v57 = vpop.f32.mrf.mxu0 }
  0xf4   : > { %v679_v58 = vadd.f32 %v678_v57, %v4378_v54 }
  0xf5   : > { %v680_v60 = vpop.f32.mrf.mxu0  ;;  %v719_v30 = vpop.f32.mrf.mxu1 }
  0xf6   : > { %v725_v61 = vadd.f32 %v679_v58, %v499_v56  ;;  %v681_v50 = vadd.f32 %v680_v60, %v4386_v59  ;;  %v511_v58 = vsub.s32 2, %v4359_v51 }
  0xf7   : > { %v682_v62 = vpop.f32.mrf.mxu0  ;;  %v3406_v22 = vpop.f32.mrf.mxu1 }
  0xf8   : > { %v3170_v63 = vmul.f32 -1.442695, %v725_v61  ;;  %v735_v23 = vadd.f32 %v733_v1, %v681_v50  ;;  %v4395_v60 = vrot.slane %v497_v53, %v511_v58  ;;  %v743_v62 = vrot.slane %v499_v56, 4 }
  0xf9   : > { %v683_v0 = vpop.f32.mrf.mxu0  ;;  %v722_v27 = vpop.f32.mrf.mxu1 }
  0xfa   : > { %3789 = vpow2.f32 %v3170_v63  ;;  %v3171_v20 = vmul.f32 -1.442695, %v735_v23  ;;  %v498_v0 = vld [vmem:[%s418_s25] sm:$0x7]  ;;  %5381 = vst [vmem:[#allocation22_spill] sm:$0xff] %v4395_v60  ;;  %v720_v27 = vadd.f32 %v719_v30, %v4395_v60 }
  0xfb   : > { %v3407_v57 = vpop.f32.mrf.mxu1  ;;  %v4405_v1 = vrot.slane %v498_v0, %v4368_v52  ;;  %v4411_v53 = vrot.slane %v498_v0, %v4381_v55 }
  0xfc   : > { %3791 = vpow2.f32 %v3171_v20  ;;  %v3172_v20 = vld [vmem:[%s4402_s9 + $0x2a] sm:$0x3f] }
  0xfd   : > { %5382 = vst [vmem:[#allocation23_spill] sm:$0xff] %v4405_v1  ;;  %v986_v57 = vrot.slane %v3172_v20, 2 }
 0x107   : > { %v3790_v54 = vpop.eup %3789 }
 0x108   : > { %v729_v19 = vadd.f32 1.0, %v3790_v54 }
 0x10a   : > { %3793 = vrcp.f32 %v729_v19  ;;  %v3792_v19 = vpop.eup %3791 }
 0x10b   : > { %v739_v23 = vadd.f32 1.0, %v3792_v19 }
 0x10d   : > { %3795 = vrcp.f32 %v739_v23 }
 0x113   : > { %v931_v22 = vpop.f32.mrf.mxu0 }
 0x114   : > { %v932_v54 = vadd.f32 %v931_v22, %v4405_v1 }
 0x115   : > { %v933_v61 = vpop.f32.mrf.mxu0  ;;  %v972_v22 = vpop.f32.mrf.mxu1 }
 0x116   : > { %v978_v63 = vadd.f32 %v3172_v20, %v932_v54  ;;  %v934_v17 = vadd.f32 %v933_v61, %v4411_v53 }
 0x117   : > { %v3794_v50 = vpop.eup %3793  ;;  %v935_v51 = vpop.f32.mrf.mxu0 }
 0x118   : > { %v742_v52 = vmul.f32 %v3794_v50, %v720_v27  ;;  %v3197_v59 = vmul.f32 -1.442695, %v978_v63  ;;  %v988_v30 = vadd.f32 %v986_v57, %v934_v17  ;;  %v3426_v60 = vpop.f32.mrf.mxu1 }
 0x119   : > { %v936_v24 = vpop.f32.mrf.mxu0 }
 0x11a   : > { %v745_v19 = vadd.f32 %v743_v62, %v742_v52  ;;  %3797 = vpow2.f32 %v3197_v59  ;;  %v3198_v55 = vmul.f32 -1.442695, %v988_v30  ;;  %v975_v1 = vpop.f32.mrf.mxu1  ;;  %v3796_v56 = vpop.eup %3795  ;;  %v4419_v24 = vrot.slane %v498_v0, %v511_v58 }
 0x11b   : > { %v747_v51 = vsub.f32 1.0, %v3796_v56  ;;  %v749_v63 = vmul.f32 0.0, %v3796_v56  ;;  %v5384_v52 = vmov 0   ;;  %v996_v58 = vrot.slane %v3172_v20, 4  ;;  %v5385_v56 = vld [vmem:[#allocation5_spill] sm:$0xff] }
 0x11c   : > { %3799 = vtanh.f32 %v745_v19  ;;  %v3427_v16 = vpop.f32.mrf.mxu1  ;;  %v973_v59 = vadd.f32 %v972_v22, %v4419_v24 }
 0x11d   : > { %3801 = vpow2.f32 %v3198_v55 }
 0x127   : > { %v3798_v54 = vpop.eup %3797 }
 0x128   : > { %v982_v14 = vadd.f32 1.0, %v3798_v54  ;;  %v5386_v54 = vld [vmem:[#allocation6_spill] sm:$0xff] }
 0x129   : > { %v3800_v23 = vpop.eup %3799 }
 0x12a   : > { %3803 = vrcp.f32 %v982_v14  ;;  %v748_v27 = vmul.f32 %v3800_v23, %v747_v51  ;;  %v3802_v16 = vpop.eup %3801  ;;  %v5383_v14 = vmov 0.0   ;;  %v5387_v51 = vld [vmem:[#allocation14_spill] sm:$0xff]  ;;  %v5388_v23 = vld [vmem:[#allocation7_spill] sm:$0xff] }
 0x12b   : > { %v992_v55 = vadd.f32 1.0, %v3802_v16  ;;  %v5392_v16 = vld [vmem:[#allocation12_spill] sm:$0xff] }
 0x12c   : > { %v4414_v61 = vadd.f32 %v749_v63, %v748_v27  ;;  %v5389_v27 = vld [vmem:[#allocation9_spill] sm:$0xff]  ;;  %v5390_v63 = vld [vmem:[#allocation15_spill] sm:$0xff] }
 0x12d   : > { %3805 = vrcp.f32 %v992_v55  ;;  %v5393_v55 = vld [vmem:[#allocation16_spill] sm:$0xff] }
 0x12e   : > { %1004 = vst [vmem:[#allocation2] sm:$0x3] %v4414_v61  ;;  %v1009_v17 = vpack.c.bf16 %v4414_v61, %v4414_v61 }
 0x130   : > { %1043 = vmatmul.mubr.bf16.vlgmr.msra.gmra.mxu0 %v1009_v17  ;;  %3445 = vmatmul.mubr.bf16.vlgmr.msra.gmra.mxu1 %v1009_v17  ;;  %v5391_v17 = vld [vmem:[#allocation10_spill] sm:$0xff] }
 0x131   : > { %1121 = vmatpush1.bf16.msra.mxu0 %v4203_v25  ;;  %3449 = vmatpush3.bf16.msra.mxu1 %v4239_v33 }
 0x132   : > { %1122 = vmatprep.subr.bf16.mxu0 %v4207_v26  ;;  %3450 = vmatprep.subr.bf16.mxu1 %v5383_v14 }
 0x133   : > { %1152 = vmatprep.mubr.bf16.mxu0 %v5384_v52  ;;  %3464 = vmatprep.mubr.msk.bf16.mxu1 %vm4029_vm0, %v5383_v14 }
 0x135   : > { %1123 = vmatpush1.bf16.msra.mxu0 %v4217_v28  ;;  %3451 = vmatpush3.bf16.msra.mxu1 %v4253_v36 }
 0x136   : > { %1124 = vmatprep.subr.bf16.mxu0 %v4222_v29  ;;  %3452 = vmatprep.subr.bf16.mxu1 %v5383_v14 }
 0x137   : > { %v3804_v0 = vpop.eup %3803 }
 0x138   : > { %v995_v60 = vmul.f32 %v3804_v0, %v973_v59  ;;  %v5394_v59 = vld [vmem:[#allocation13_spill] sm:$0xff] }
 0x139   : > { %1125 = vmatpush1.bf16.msra.mxu0 %v4231_v31  ;;  %3453 = vmatpush3.bf16.msra.mxu1 %v4268_v39 }
 0x13a   : > { %v998_v1 = vadd.f32 %v996_v58, %v995_v60  ;;  %1126 = vmatprep.subr.bf16.mxu0 %v4235_v32  ;;  %3454 = vmatprep.subr.bf16.mxu1 %v5383_v14  ;;  %v3806_v20 = vpop.eup %3805  ;;  %v3199_v58 = vld [vmem:[%s4375_s22 + $0x6] sm:$0x3f] }
 0x13b   : > { %v1000_v62 = vsub.f32 1.0, %v3806_v20  ;;  %v1002_v19 = vmul.f32 0.0, %v3806_v20 }
 0x13c   : > { %3807 = vtanh.f32 %v998_v1  ;;  %v5395_v1 = vld [vmem:[#allocation19_spill] sm:$0xff] }
 0x13d   : > { %1127 = vmatpush1.bf16.msra.mxu0 %v4244_v34  ;;  %3455 = vmatpush3.bf16.msra.mxu1 %v4281_v42 }
 0x13e   : > { %1128 = vmatprep.subr.bf16.mxu0 %v4248_v35  ;;  %3456 = vmatprep.subr.bf16.mxu1 %v5383_v14 }
 0x141   : > { %1129 = vmatpush1.bf16.msra.mxu0 %v4260_v37  ;;  %3457 = vmatpush3.bf16.msra.mxu1 %v4294_v45 }
 0x142   : > { %1130 = vmatprep.subr.bf16.mxu0 %v4264_v38  ;;  %3458 = vmatprep.subr.bf16.mxu1 %v5383_v14 }
 0x145   : > { %1131 = vmatpush1.bf16.msra.mxu0 %v4273_v40  ;;  %3459 = vmatpush3.bf16.msra.mxu1 %v4304_v47 }
 0x146   : > { %1132 = vmatprep.subr.bf16.mxu0 %v4277_v41  ;;  %3460 = vmatprep.subr.bf16.mxu1 %v5383_v14 }
 0x149   : > { %v3808_v50 = vpop.eup %3807  ;;  %1133 = vmatpush1.bf16.msra.mxu0 %v4286_v43  ;;  %3461 = vmatpush3.bf16.msra.mxu1 %v4311_v48 }
 0x14a   : > { %1134 = vmatprep.subr.bf16.mxu0 %v4290_v44  ;;  %3462 = vmatprep.subr.bf16.mxu1 %v5383_v14  ;;  %v1001_v57 = vmul.f32 %v3808_v50, %v1000_v62 }
 0x14c   : > { %v4453_v30 = vadd.f32 %v1002_v19, %v1001_v57 }
 0x14d   : > { %1135 = vmatpush1.bf16.msra.mxu0 %v4299_v46  ;;  %3463 = vmatpush3.bf16.msra.mxu1 %v4320_v49 }
 0x14e   : > { %1006 = vst [vmem:[#allocation2 + $0x1e] sm:$0x3] %v4453_v30  ;;  %v1119_v22 = vpack.c.bf16 %v4453_v30, %v4453_v30  ;;  %1234 = vmatprep.subr.bf16.mxu0 %v4103_v2  ;;  %3468 = vmatprep.subr.bf16.mxu1 %v5383_v14 }
 0x150   : > { %1153 = vmatmul.mubr.bf16.vlgmr.msra.gmra.mxu0 %v1119_v22  ;;  %3465 = vmatmul.mubr.bf16.vlgmr.msra.gmra.mxu1 %v1119_v22 }
 0x151   : > { %1235 = vmatpush1.bf16.msra.mxu0 %v4106_v3  ;;  %3469 = vmatpush3.bf16.msra.mxu1 %v4138_v10 }
 0x152   : > { %1236 = vmatprep.subr.bf16.mxu0 %v4110_v4  ;;  %3470 = vmatprep.subr.bf16.mxu1 %v5383_v14 }
 0x153   : > { %1266 = vmatprep.mubr.bf16.mxu0 %v5384_v52  ;;  %3484 = vmatprep.mubr.msk.bf16.mxu1 %vm4029_vm0, %v5383_v14 }
 0x155   : > { %1237 = vmatpush1.bf16.msra.mxu0 %v4114_v5  ;;  %3471 = vmatpush3.bf16.msra.mxu1 %v4146_v12 }
 0x156   : > { %1238 = vmatprep.subr.bf16.mxu0 %v4118_v6  ;;  %3472 = vmatprep.subr.bf16.mxu1 %v5383_v14 }
 0x159   : > { %1239 = vmatpush1.bf16.msra.mxu0 %v4122_v7  ;;  %3473 = vmatpush3.bf16.msra.mxu1 %v4159_v15 }
 0x15a   : > { %1240 = vmatprep.subr.bf16.mxu0 %v4126_v8  ;;  %3474 = vmatprep.subr.bf16.mxu1 %v5383_v14 }
 0x15d   : > { %1241 = vmatpush1.bf16.msra.mxu0 %v4129_v9  ;;  %3475 = vmatpush3.bf16.msra.mxu1 %v4172_v18 }
 0x15e   : > { %1242 = vmatprep.subr.bf16.mxu0 %v4142_v11  ;;  %3476 = vmatprep.subr.bf16.mxu1 %v5383_v14 }
 0x161   : > { %1243 = vmatpush1.bf16.msra.mxu0 %v4151_v13  ;;  %3477 = vmatpush3.bf16.msra.mxu1 %v4185_v21 }
 0x162   : > { %1244 = vmatprep.subr.bf16.mxu0 %v5385_v56  ;;  %3478 = vmatprep.subr.bf16.mxu1 %v5383_v14 }
 0x165   : > { %1245 = vmatpush1.bf16.msra.mxu0 %v5386_v54  ;;  %3479 = vmatpush3.bf16.msra.mxu1 %v5387_v51 }
 0x166   : > { %1246 = vmatprep.subr.bf16.mxu0 %v5388_v23  ;;  %3480 = vmatprep.subr.bf16.mxu1 %v5383_v14 }
 0x169   : > { %1247 = vmatpush1.bf16.msra.mxu0 %v5389_v27  ;;  %3481 = vmatpush3.bf16.msra.mxu1 %v5390_v63  ;;  %v5396_v63 = vld [vmem:[#allocation21_spill] sm:$0xff]  ;;  %v1099_v27 = vrot.slane %v3199_v58, 2 }
 0x16a   : > { %1248 = vmatprep.subr.bf16.mxu0 %v5391_v17  ;;  %3482 = vmatprep.subr.bf16.mxu1 %v5383_v14 }
 0x16d   : > { %1249 = vmatpush1.bf16.msra.mxu0 %v5392_v16  ;;  %3483 = vmatpush3.bf16.msra.mxu1 %v5393_v55 }
 0x16e   : > { %1344 = vmatprep.subr.bf16.mxu0 %v5394_v59  ;;  %3488 = vmatprep.subr.bf16.mxu1 %v5383_v14 }
 0x1f0   : > { %v1044_v0 = vpop.f32.mrf.mxu0  ;;  %v1085_v60 = vpop.f32.mrf.mxu1 }
 0x1f1   : > { %v1045_v20 = vadd.f32 %v1044_v0, %v5395_v1  ;;  %v3202_v1 = vld [vmem:[%s4402_s9 + $0x24] sm:$0x3f] }
 0x1f2   : > { %v1046_v62 = vpop.f32.mrf.mxu0  ;;  %v3446_v50 = vpop.f32.mrf.mxu1 }
 0x1f3   : > { %v1091_v57 = vadd.f32 %v3199_v58, %v1045_v20  ;;  %v1047_v16 = vadd.f32 %v1046_v62, %v5396_v63  ;;  %v5398_v62 = vld [vmem:[#allocation22_spill] sm:$0xff] }
 0x1f4   : > { %v1048_v19 = vpop.f32.mrf.mxu0  ;;  %v1088_v22 = vpop.f32.mrf.mxu1  ;;  %v1086_v63 = vadd.f32 %v1085_v60, %v5398_v62 }
 0x1f5   : > { %v3200_v17 = vmul.f32 -1.442695, %v1091_v57  ;;  %v1101_v59 = vadd.f32 %v1099_v27, %v1047_v16  ;;  %v5397_v19 = vld [vmem:[#allocation23_spill] sm:$0xff]  ;;  %v1209_v27 = vrot.slane %v3202_v1, 2 }
 0x1f6   : > { %v1049_v55 = vpop.f32.mrf.mxu0  ;;  %v3447_v23 = vpop.f32.mrf.mxu1 }
 0x1f7   : > { %3809 = vpow2.f32 %v3200_v17  ;;  %v3201_v51 = vmul.f32 -1.442695, %v1101_v59  ;;  %v1109_v55 = vrot.slane %v3199_v58, 4 }
 0x1f9   : > { %3811 = vpow2.f32 %v3201_v51 }
 0x204   : > { %v3810_v54 = vpop.eup %3809 }
 0x205   : > { %v1095_v56 = vadd.f32 1.0, %v3810_v54 }
 0x206   : > { %v3812_v0 = vpop.eup %3811 }
 0x207   : > { %3813 = vrcp.f32 %v1095_v56  ;;  %v1105_v21 = vadd.f32 1.0, %v3812_v0 }
 0x209   : > { %3815 = vrcp.f32 %v1105_v21 }
 0x210   : > { %v1154_v50 = vpop.f32.mrf.mxu0  ;;  %v1195_v20 = vpop.f32.mrf.mxu1 }
 0x211   : > { %v1155_v22 = vadd.f32 %v1154_v50, %v5397_v19 }
 0x212   : > { %v1156_v57 = vpop.f32.mrf.mxu0  ;;  %v3466_v13 = vpop.f32.mrf.mxu1 }
 0x213   : > { %v1201_v23 = vadd.f32 %v3202_v1, %v1155_v22  ;;  %v1157_v54 = vadd.f32 %v1156_v57, %v4411_v53  ;;  %v1219_v57 = vrot.slane %v3202_v1, 4 }
 0x214   : > { %v3814_v17 = vpop.eup %3813  ;;  %v1158_v16 = vpop.f32.mrf.mxu0 }
 0x215   : > { %v1198_v51 = vpop.f32.mrf.mxu1  ;;  %v1108_v59 = vmul.f32 %v3814_v17, %v1086_v63  ;;  %v3203_v56 = vmul.f32 -1.442695, %v1201_v23  ;;  %v1211_v50 = vadd.f32 %v1209_v27, %v1157_v54  ;;  %v5411_v54 = vld [vmem:[#allocation16_spill] sm:$0xff] }
 0x216   : > { %v1159_v11 = vpop.f32.mrf.mxu0  ;;  %v3816_v60 = vpop.eup %3815 }
 0x217   : > { %v3467_v18 = vpop.f32.mrf.mxu1  ;;  %v1111_v0 = vadd.f32 %v1109_v55, %v1108_v59  ;;  %3817 = vpow2.f32 %v3203_v56  ;;  %v3204_v13 = vmul.f32 -1.442695, %v1211_v50  ;;  %v1113_v62 = vsub.f32 1.0, %v3816_v60  ;;  %v3205_v50 = vld [vmem:[%s4375_s22 + $0xc] sm:$0x3f] }
 0x218   : > { %v1115_v21 = vmul.f32 %v3816_v60, %v4414_v61 }
 0x219   : > { %3819 = vtanh.f32 %v1111_v0  ;;  %v5412_v0 = vld [vmem:[#allocation13_spill] sm:$0xff] }
 0x21a   : > { %3821 = vpow2.f32 %v3204_v13 }
 0x224   : > { %v3818_v58 = vpop.eup %3817 }
 0x225   : > { %v1205_v22 = vadd.f32 1.0, %v3818_v58  ;;  %v5413_v58 = vld [vmem:[#allocation19_spill] sm:$0xff] }
 0x226   : > { %v3820_v19 = vpop.eup %3819 }
 0x227   : > { %3823 = vrcp.f32 %v1205_v22  ;;  %v1114_v16 = vmul.f32 %v3820_v19, %v1113_v62  ;;  %v3822_v18 = vpop.eup %3821  ;;  %v1196_v19 = vadd.f32 %v1195_v20, %v4419_v24 }
 0x228   : > { %v1215_v61 = vadd.f32 1.0, %v3822_v18 }
 0x229   : > { %v4505_v63 = vadd.f32 %v1115_v21, %v1114_v16 }
 0x22a   : > { %3825 = vrcp.f32 %v1215_v61 }
 0x22b   : > { %1228 = vst [vmem:[#allocation2 + $0x4] sm:$0x3] %v4505_v63  ;;  %v1233_v11 = vpack.c.bf16 %v4505_v63, %v4505_v63 }
 0x22d   : > { %1267 = vmatmul.mubr.bf16.vlgmr.msra.gmra.mxu0 %v1233_v11  ;;  %3485 = vmatmul.mubr.bf16.vlgmr.msra.gmra.mxu1 %v1233_v11 }
 0x22e   : > { %1345 = vmatpush1.bf16.msra.mxu0 %v4203_v25  ;;  %3489 = vmatpush3.bf16.msra.mxu1 %v4239_v33 }
 0x22f   : > { %1346 = vmatprep.subr.bf16.mxu0 %v4207_v26  ;;  %3490 = vmatprep.subr.bf16.mxu1 %v5383_v14 }
 0x230   : > { %1376 = vmatprep.mubr.bf16.mxu0 %v5384_v52  ;;  %3504 = vmatprep.mubr.msk.bf16.mxu1 %vm4029_vm0, %v5383_v14 }
 0x232   : > { %1347 = vmatpush1.bf16.msra.mxu0 %v4217_v28  ;;  %3491 = vmatpush3.bf16.msra.mxu1 %v4253_v36 }
 0x233   : > { %1348 = vmatprep.subr.bf16.mxu0 %v4222_v29  ;;  %3492 = vmatprep.subr.bf16.mxu1 %v5383_v14 }
 0x234   : > { %v3824_v62 = vpop.eup %3823 }
 0x235   : > { %v1218_v55 = vmul.f32 %v3824_v62, %v1196_v19 }
 0x236   : > { %1349 = vmatpush1.bf16.msra.mxu0 %v4231_v31  ;;  %3493 = vmatpush3.bf16.msra.mxu1 %v4268_v39 }
 0x237   : > { %v1221_v23 = vadd.f32 %v1219_v57, %v1218_v55  ;;  %1350 = vmatprep.subr.bf16.mxu0 %v4235_v32  ;;  %3494 = vmatprep.subr.bf16.mxu1 %v5383_v14  ;;  %v3826_v1 = vpop.eup %3825  ;;  %v5414_v57 = vld [vmem:[#allocation21_spill] sm:$0xff]  ;;  %v1323_v55 = vrot.slane %v3205_v50, 2 }
 0x238   : > { %v1223_v20 = vsub.f32 1.0, %v3826_v1  ;;  %v1225_v51 = vmul.f32 %v3826_v1, %v4453_v30  ;;  %v5410_v30 = vld [vmem:[#allocation12_spill] sm:$0xff] }
 0x239   : > { %3827 = vtanh.f32 %v1221_v23 }
 0x23a   : > { %1351 = vmatpush1.bf16.msra.mxu0 %v4244_v34  ;;  %3495 = vmatpush3.bf16.msra.mxu1 %v4281_v42 }
 0x23b   : > { %1352 = vmatprep.subr.bf16.mxu0 %v4248_v35  ;;  %3496 = vmatprep.subr.bf16.mxu1 %v5383_v14 }
 0x23e   : > { %1353 = vmatpush1.bf16.msra.mxu0 %v4260_v37  ;;  %3497 = vmatpush3.bf16.msra.mxu1 %v4294_v45 }
 0x23f   : > { %1354 = vmatprep.subr.bf16.mxu0 %v4264_v38  ;;  %3498 = vmatprep.subr.bf16.mxu1 %v5383_v14 }
 0x242   : > { %1355 = vmatpush1.bf16.msra.mxu0 %v4273_v40  ;;  %3499 = vmatpush3.bf16.msra.mxu1 %v4304_v47 }
 0x243   : > { %1356 = vmatprep.subr.bf16.mxu0 %v4277_v41  ;;  %3500 = vmatprep.subr.bf16.mxu1 %v5383_v14 }
 0x246   : > { %v3828_v17 = vpop.eup %3827  ;;  %1357 = vmatpush1.bf16.msra.mxu0 %v4286_v43  ;;  %3501 = vmatpush3.bf16.msra.mxu1 %v4311_v48 }
 0x247   : > { %1358 = vmatprep.subr.bf16.mxu0 %v4290_v44  ;;  %3502 = vmatprep.subr.bf16.mxu1 %v5383_v14  ;;  %v1224_v27 = vmul.f32 %v3828_v17, %v1223_v20 }
 0x249   : > { %v4543_v59 = vadd.f32 %v1225_v51, %v1224_v27 }
 0x24a   : > { %1359 = vmatpush1.bf16.msra.mxu0 %v4299_v46  ;;  %3503 = vmatpush3.bf16.msra.mxu1 %v4320_v49 }
 0x24b   : > { %1230 = vst [vmem:[#allocation2 + $0x1a] sm:$0x3] %v4543_v59  ;;  %v1343_v56 = vpack.c.bf16 %v4543_v59, %v4543_v59  ;;  %1458 = vmatprep.subr.bf16.mxu0 %v4103_v2  ;;  %3508 = vmatprep.subr.bf16.mxu1 %v5383_v14  ;;  %v5399_v2 = vld [vmem:[#allocation8_spill] sm:$0xff] }
 0x24d   : > { %1377 = vmatmul.mubr.bf16.vlgmr.msra.gmra.mxu0 %v1343_v56  ;;  %3505 = vmatmul.mubr.bf16.vlgmr.msra.gmra.mxu1 %v1343_v56 }
 0x24e   : > { %1459 = vmatpush1.bf16.msra.mxu0 %v4106_v3  ;;  %3509 = vmatpush3.bf16.msra.mxu1 %v4138_v10  ;;  %v5400_v3 = vld [vmem:[#allocation3_spill] sm:$0xff]  ;;  %v5407_v10 = vld [vmem:[#allocation9_spill] sm:$0xff] }
 0x24f   : > { %1460 = vmatprep.subr.bf16.mxu0 %v4110_v4  ;;  %3510 = vmatprep.subr.bf16.mxu1 %v5383_v14  ;;  %v5401_v4 = vld [vmem:[#allocation4_spill] sm:$0xff] }
 0x250   : > { %1490 = vmatprep.mubr.bf16.mxu0 %v5384_v52  ;;  %3524 = vmatprep.mubr.msk.bf16.mxu1 %vm4029_vm0, %v5383_v14 }
 0x252   : > { %1461 = vmatpush1.bf16.msra.mxu0 %v4114_v5  ;;  %3511 = vmatpush3.bf16.msra.mxu1 %v4146_v12  ;;  %v5402_v5 = vld [vmem:[#allocation11_spill] sm:$0xff] }
 0x253   : > { %1462 = vmatprep.subr.bf16.mxu0 %v4118_v6  ;;  %3512 = vmatprep.subr.bf16.mxu1 %v5383_v14  ;;  %v5403_v6 = vld [vmem:[#allocation5_spill] sm:$0xff]  ;;  %v5408_v12 = vld [vmem:[#allocation15_spill] sm:$0xff] }
 0x256   : > { %1463 = vmatpush1.bf16.msra.mxu0 %v4122_v7  ;;  %3513 = vmatpush3.bf16.msra.mxu1 %v4159_v15  ;;  %v5404_v7 = vld [vmem:[#allocation6_spill] sm:$0xff] }
 0x257   : > { %1464 = vmatprep.subr.bf16.mxu0 %v4126_v8  ;;  %3514 = vmatprep.subr.bf16.mxu1 %v5383_v14  ;;  %v5405_v8 = vld [vmem:[#allocation14_spill] sm:$0xff] }
 0x258   : > { %v5409_v15 = vld [vmem:[#allocation10_spill] sm:$0xff] }
 0x25a   : > { %1465 = vmatpush1.bf16.msra.mxu0 %v4129_v9  ;;  %3515 = vmatpush3.bf16.msra.mxu1 %v5399_v2  ;;  %v5406_v9 = vld [vmem:[#allocation7_spill] sm:$0xff] }
 0x25b   : > { %1466 = vmatprep.subr.bf16.mxu0 %v5400_v3  ;;  %3516 = vmatprep.subr.bf16.mxu1 %v5383_v14  ;;  %v3208_v2 = vld [vmem:[%s4402_s9 + $0x1e] sm:$0x3f] }
 0x25e   : > { %1467 = vmatpush1.bf16.msra.mxu0 %v5401_v4  ;;  %3517 = vmatpush3.bf16.msra.mxu1 %v5402_v5 }
 0x25f   : > { %1468 = vmatprep.subr.bf16.mxu0 %v5403_v6  ;;  %3518 = vmatprep.subr.bf16.mxu1 %v5383_v14  ;;  %v5415_v6 = vld [vmem:[#allocation23_spill] sm:$0xff] }
 0x262   : > { %1469 = vmatpush1.bf16.msra.mxu0 %v5404_v7  ;;  %3519 = vmatpush3.bf16.msra.mxu1 %v5405_v8 }
 0x263   : > { %1470 = vmatprep.subr.bf16.mxu0 %v5406_v9  ;;  %3520 = vmatprep.subr.bf16.mxu1 %v5383_v14 }
 0x266   : > { %1471 = vmatpush1.bf16.msra.mxu0 %v5407_v10  ;;  %3521 = vmatpush3.bf16.msra.mxu1 %v5408_v12  ;;  %v5416_v10 = vld [vmem:[#allocation22_spill] sm:$0xff] }
 0x267   : > { %1472 = vmatprep.subr.bf16.mxu0 %v5409_v15  ;;  %3522 = vmatprep.subr.bf16.mxu1 %v5383_v14  ;;  %v1333_v15 = vrot.slane %v3205_v50, 4 }
 0x26a   : > { %1473 = vmatpush1.bf16.msra.mxu0 %v5410_v30  ;;  %3523 = vmatpush3.bf16.msra.mxu1 %v5411_v54 }
 0x26b   : > { %1568 = vmatprep.subr.bf16.mxu0 %v5412_v0  ;;  %3528 = vmatprep.subr.bf16.mxu1 %v5383_v14  ;;  %v1433_v0 = vrot.slane %v3208_v2, 2 }
 0x2ed   : > { %v1268_v13 = vpop.f32.mrf.mxu0  ;;  %v1309_v60 = vpop.f32.mrf.mxu1 }
 0x2ee   : > { %v1269_v22 = vadd.f32 %v1268_v13, %v5413_v58  ;;  %v1310_v12 = vadd.f32 %v1309_v60, %v5416_v10 }
 0x2ef   : > { %v1270_v16 = vpop.f32.mrf.mxu0  ;;  %v3486_v21 = vpop.f32.mrf.mxu1 }
 0x2f0   : > { %v1315_v11 = vadd.f32 %v3205_v50, %v1269_v22  ;;  %v1271_v62 = vadd.f32 %v1270_v16, %v5414_v57 }
 0x2f1   : > { %v1272_v18 = vpop.f32.mrf.mxu0  ;;  %v1312_v61 = vpop.f32.mrf.mxu1 }
 0x2f2   : > { %v3206_v19 = vmul.f32 -1.442695, %v1315_v11  ;;  %v1325_v20 = vadd.f32 %v1323_v55, %v1271_v62 }
 0x2f3   : > { %v1273_v23 = vpop.f32.mrf.mxu0  ;;  %v3487_v1 = vpop.f32.mrf.mxu1 }
 0x2f4   : > { %3829 = vpow2.f32 %v3206_v19  ;;  %v3207_v17 = vmul.f32 -1.442695, %v1325_v20 }
 0x2f6   : > { %3831 = vpow2.f32 %v3207_v17 }
 0x301   : > { %v3830_v27 = vpop.eup %3829 }
 0x302   : > { %v1319_v51 = vadd.f32 1.0, %v3830_v27 }
 0x303   : > { %v3832_v56 = vpop.eup %3831 }
 0x304   : > { %3833 = vrcp.f32 %v1319_v51  ;;  %v1329_v5 = vadd.f32 1.0, %v3832_v56 }
 0x306   : > { %3835 = vrcp.f32 %v1329_v5 }
 0x30d   : > { %v1378_v3 = vpop.f32.mrf.mxu0  ;;  %v1419_v4 = vpop.f32.mrf.mxu1 }
 0x30e   : > { %v1379_v7 = vadd.f32 %v1378_v3, %v5415_v6  ;;  %v1420_v5 = vadd.f32 %v1419_v4, %v4419_v24  ;;  %v4709_v4 = vld [vmem:[%s4100_s11 + $0x34] ss:$12 sps:$4 sm:$0xff]  }
 0x30f   : > { %v1380_v8 = vpop.f32.mrf.mxu0  ;;  %v3506_v9 = vpop.f32.mrf.mxu1  ;;  %5423 = vst [vmem:[#allocation14_spill] sm:$0xff] %v4709_v4 }
 0x310   : > { %v1425_v30 = vadd.f32 %v3208_v2, %v1379_v7  ;;  %v1381_v11 = vadd.f32 %v1380_v8, %v4411_v53  ;;  %v1443_v7 = vrot.slane %v3208_v2, 4  ;;  %v4705_v2 = vld [vmem:[%s4100_s11 + $0x50] ss:$12 sps:$4 sm:$0xff]   ;;  %v4718_v9 = vld [vmem:[%s4100_s11 + $0x38] ss:$12 sps:$4 sm:$0xff]  }
 0x311   : > { %v3834_v54 = vpop.eup %3833  ;;  %v1382_v13 = vpop.f32.mrf.mxu0  ;;  %5422 = vst [vmem:[#allocation6_spill] sm:$0xff] %v4705_v2  ;;  %v4714_v8 = vld [vmem:[%s4100_s11 + $0x30] ss:$12 sps:$4 sm:$0xff]   ;;  %5425 = vst [vmem:[#allocation9_spill] sm:$0xff] %v4718_v9 }
 0x312   : > { %v1422_v22 = vpop.f32.mrf.mxu1  ;;  %v1332_v16 = vmul.f32 %v3834_v54, %v1310_v12  ;;  %v3209_v21 = vmul.f32 -1.442695, %v1425_v30  ;;  %v1435_v62 = vadd.f32 %v1433_v0, %v1381_v11  ;;  %5424 = vst [vmem:[#allocation7_spill] sm:$0xff] %v4714_v8  ;;  %v4722_v12 = vld [vmem:[%s4100_s11 + $0x1c] ss:$12 sps:$4 sm:$0xff]  }
 0x313   : > { %v1383_v18 = vpop.f32.mrf.mxu0  ;;  %v3836_v60 = vpop.eup %3835  ;;  %5426 = vst [vmem:[#allocation15_spill] sm:$0xff] %v4722_v12  ;;  %v4731_v30 = vld [vmem:[%s4100_s11 + $0x20] ss:$12 sps:$4 sm:$0xff]   ;;  %v4735_v54 = vld [vmem:[%s4100_s11 + $0x4] ss:$12 sps:$4 sm:$0xff]  }
 0x314   : > { %v3507_v61 = vpop.f32.mrf.mxu1  ;;  %v1335_v19 = vadd.f32 %v1333_v15, %v1332_v16  ;;  %3837 = vpow2.f32 %v3209_v21  ;;  %v3210_v55 = vmul.f32 -1.442695, %v1435_v62  ;;  %v1337_v1 = vsub.f32 1.0, %v3836_v60  ;;  %v4727_v15 = vld [vmem:[%s4100_s11 + $0x18] ss:$12 sps:$4 sm:$0xff]   ;;  %5428 = vst [vmem:[#allocation12_spill] sm:$0xff] %v4731_v30 }
 0x315   : > { %v1339_v27 = vmul.f32 %v3836_v60, %v4505_v63  ;;  %5427 = vst [vmem:[#allocation10_spill] sm:$0xff] %v4727_v15  ;;  %5429 = vst [vmem:[#allocation16_spill] sm:$0xff] %v4735_v54  ;;  %v4740_v0 = vld [vmem:[%s4100_s11] ss:$12 sps:$4 sm:$0xff]   ;;  %v4744_v13 = vld [vmem:[%s4100_s11 + $0x8] ss:$12 sps:$4 sm:$0xff]  }
 0x316   : > { %3839 = vtanh.f32 %v1335_v19  ;;  %5430 = vst [vmem:[#allocation13_spill] sm:$0xff] %v4740_v0  ;;  %5431 = vst [vmem:[#allocation24_spill] sm:$0xff] %v4744_v13  ;;  %v4748_v22 = vld [vmem:[%s4134_s14 + $0xac] ss:$12 sps:$4 sm:$0xff]   ;;  %v3211_v16 = vld [vmem:[%s4375_s22 + $0x12] sm:$0x3f] }
 0x317   : > { %3841 = vpow2.f32 %v3210_v55  ;;  %5432 = vst [vmem:[#allocation25_spill] sm:$0xff] %v4748_v22 }
 0x321   : > { %v3838_v50 = vpop.eup %3837 }
 0x322   : > { %v1429_v23 = vadd.f32 1.0, %v3838_v50 }
 0x323   : > { %v3840_v20 = vpop.eup %3839 }
 0x324   : > { %3843 = vrcp.f32 %v1429_v23  ;;  %v1338_v17 = vmul.f32 %v3840_v20, %v1337_v1  ;;  %v3842_v3 = vpop.eup %3841  ;;  %v1547_v1 = vrot.slane %v3211_v16, 2 }
 0x325   : > { %v1439_v63 = vadd.f32 1.0, %v3842_v3 }
 0x326   : > { %v4595_v51 = vadd.f32 %v1339_v27, %v1338_v17 }
 0x327   : > { %3845 = vrcp.f32 %v1439_v63 }
 0x328   : > { %1452 = vst [vmem:[#allocation2 + $0x8] sm:$0x3] %v4595_v51  ;;  %v1457_v56 = vpack.c.bf16 %v4595_v51, %v4595_v51 }
 0x32a   : > { %1491 = vmatmul.mubr.bf16.vlgmr.msra.gmra.mxu0 %v1457_v56  ;;  %3525 = vmatmul.mubr.bf16.vlgmr.msra.gmra.mxu1 %v1457_v56 }
 0x32b   : > { %1569 = vmatpush1.bf16.msra.mxu0 %v4203_v25  ;;  %3529 = vmatpush3.bf16.msra.mxu1 %v4239_v33 }
 0x32c   : > { %1570 = vmatprep.subr.bf16.mxu0 %v4207_v26  ;;  %3530 = vmatprep.subr.bf16.mxu1 %v5383_v14 }
 0x32d   : > { %1600 = vmatprep.mubr.bf16.mxu0 %v5384_v52  ;;  %3544 = vmatprep.mubr.msk.bf16.mxu1 %vm4029_vm0, %v5383_v14 }
 0x32f   : > { %1571 = vmatpush1.bf16.msra.mxu0 %v4217_v28  ;;  %3531 = vmatpush3.bf16.msra.mxu1 %v4253_v36 }
 0x330   : > { %1572 = vmatprep.subr.bf16.mxu0 %v4222_v29  ;;  %3532 = vmatprep.subr.bf16.mxu1 %v5383_v14 }
 0x331   : > { %v3844_v25 = vpop.eup %3843 }
 0x332   : > { %v1442_v26 = vmul.f32 %v3844_v25, %v1420_v5 }
 0x333   : > { %1573 = vmatpush1.bf16.msra.mxu0 %v4231_v31  ;;  %3533 = vmatpush3.bf16.msra.mxu1 %v4268_v39  ;;  %v4650_v39 = vld [vmem:[%s4100_s11 + $0xb0] ss:$12 sps:$4 sm:$0xff]  }
 0x334   : > { %v1445_v33 = vadd.f32 %v1443_v7, %v1442_v26  ;;  %1574 = vmatprep.subr.bf16.mxu0 %v4235_v32  ;;  %3534 = vmatprep.subr.bf16.mxu1 %v5383_v14  ;;  %v3846_v28 = vpop.eup %3845  ;;  %v4756_v7 = vld [vmem:[%s4402_s9 + $0x18] sm:$0x3f] }
 0x335   : > { %v1447_v29 = vsub.f32 1.0, %v3846_v28 }
 0x336   : > { %3847 = vtanh.f32 %v1445_v33 }
 0x337   : > { %1575 = vmatpush1.bf16.msra.mxu0 %v4244_v34  ;;  %3535 = vmatpush3.bf16.msra.mxu1 %v4281_v42  ;;  %v1449_v34 = vmul.f32 %v3846_v28, %v4543_v59  ;;  %v4666_v42 = vld [vmem:[%s4100_s11 + $0x98] ss:$12 sps:$4 sm:$0xff]   ;;  %v4701_v59 = vld [vmem:[%s4100_s11 + $0x48] ss:$12 sps:$4 sm:$0xff]  }
 0x338   : > { %1576 = vmatprep.subr.bf16.mxu0 %v4248_v35  ;;  %3536 = vmatprep.subr.bf16.mxu1 %v5383_v14  ;;  %5421 = vst [vmem:[#allocation5_spill] sm:$0xff] %v4701_v59 }
 0x33b   : > { %1577 = vmatpush1.bf16.msra.mxu0 %v4260_v37  ;;  %3537 = vmatpush3.bf16.msra.mxu1 %v4294_v45  ;;  %v4641_v37 = vld [vmem:[%s4100_s11 + $0xac] ss:$12 sps:$4 sm:$0xff]  }
 0x33c   : > { %1578 = vmatprep.subr.bf16.mxu0 %v4264_v38  ;;  %3538 = vmatprep.subr.bf16.mxu1 %v5383_v14  ;;  %v4646_v38 = vld [vmem:[%s4100_s11 + $0xa8] ss:$12 sps:$4 sm:$0xff]   ;;  %v4679_v45 = vld [vmem:[%s4100_s11 + $0x80] ss:$12 sps:$4 sm:$0xff]  }
 0x33f   : > { %1579 = vmatpush1.bf16.msra.mxu0 %v4273_v40  ;;  %3539 = vmatpush3.bf16.msra.mxu1 %v4304_v47  ;;  %v4654_v40 = vld [vmem:[%s4100_s11 + $0x94] ss:$12 sps:$4 sm:$0xff]  }
 0x340   : > { %1580 = vmatprep.subr.bf16.mxu0 %v4277_v41  ;;  %3540 = vmatprep.subr.bf16.mxu1 %v5383_v14  ;;  %v4662_v41 = vld [vmem:[%s4100_s11 + $0x90] ss:$12 sps:$4 sm:$0xff]   ;;  %v4688_v47 = vld [vmem:[%s4100_s11 + $0x60] ss:$12 sps:$4 sm:$0xff]  }
 0x341   : > { %5418 = vst [vmem:[#allocation3_spill] sm:$0xff] %v4688_v47 }
 0x343   : > { %v3848_v31 = vpop.eup %3847  ;;  %1581 = vmatpush1.bf16.msra.mxu0 %v4286_v43  ;;  %3541 = vmatpush3.bf16.msra.mxu1 %v4311_v48  ;;  %v4670_v43 = vld [vmem:[%s4100_s11 + $0x7c] ss:$12 sps:$4 sm:$0xff]  }
 0x344   : > { %1582 = vmatprep.subr.bf16.mxu0 %v4290_v44  ;;  %3542 = vmatprep.subr.bf16.mxu1 %v5383_v14  ;;  %v1448_v32 = vmul.f32 %v3848_v31, %v1447_v29  ;;  %v4675_v44 = vld [vmem:[%s4100_s11 + $0x78] ss:$12 sps:$4 sm:$0xff]   ;;  %v4692_v48 = vld [vmem:[%s4100_s11 + $0x68] ss:$12 sps:$4 sm:$0xff]  }
 0x345   : > { %5419 = vst [vmem:[#allocation4_spill] sm:$0xff] %v4692_v48 }
 0x346   : > { %v4633_v35 = vadd.f32 %v1449_v34, %v1448_v32  ;;  %v1557_v34 = vrot.slane %v3211_v16, 4 }
 0x347   : > { %1583 = vmatpush1.bf16.msra.mxu0 %v4299_v46  ;;  %3543 = vmatpush3.bf16.msra.mxu1 %v4320_v49  ;;  %v4683_v46 = vld [vmem:[%s4100_s11 + $0x64] ss:$12 sps:$4 sm:$0xff]   ;;  %v4696_v49 = vld [vmem:[%s4100_s11 + $0x4c] ss:$12 sps:$4 sm:$0xff]  }
 0x348   : > { %1454 = vst [vmem:[#allocation2 + $0x16] sm:$0x3] %v4633_v35  ;;  %v1567_v36 = vpack.c.bf16 %v4633_v35, %v4633_v35  ;;  %1682 = vmatprep.subr.bf16.mxu0 %v4641_v37  ;;  %3548 = vmatprep.subr.bf16.mxu1 %v5383_v14  ;;  %5417 = vst [vmem:[#allocation8_spill] sm:$0xff] %v4683_v46 }
 0x349   : > { %5420 = vst [vmem:[#allocation11_spill] sm:$0xff] %v4696_v49 }
 0x34a   : > { %1601 = vmatmul.mubr.bf16.vlgmr.msra.gmra.mxu0 %v1567_v36  ;;  %3545 = vmatmul.mubr.bf16.vlgmr.msra.gmra.mxu1 %v1567_v36 }
 0x34b   : > { %1683 = vmatpush1.bf16.msra.mxu0 %v4646_v38  ;;  %3549 = vmatpush3.bf16.msra.mxu1 %v4650_v39 }
 0x34c   : > { %1684 = vmatprep.subr.bf16.mxu0 %v4654_v40  ;;  %3550 = vmatprep.subr.bf16.mxu1 %v5383_v14 }
 0x34d   : > { %1714 = vmatprep.mubr.bf16.mxu0 %v5384_v52  ;;  %3564 = vmatprep.mubr.msk.bf16.mxu1 %vm4029_vm0, %v5383_v14 }
 0x34f   : > { %1685 = vmatpush1.bf16.msra.mxu0 %v4662_v41  ;;  %3551 = vmatpush3.bf16.msra.mxu1 %v4666_v42 }
 0x350   : > { %1686 = vmatprep.subr.bf16.mxu0 %v4670_v43  ;;  %3552 = vmatprep.subr.bf16.mxu1 %v5383_v14 }
 0x353   : > { %1687 = vmatpush1.bf16.msra.mxu0 %v4675_v44  ;;  %3553 = vmatpush3.bf16.msra.mxu1 %v4679_v45 }
 0x354   : > { %1688 = vmatprep.subr.bf16.mxu0 %v4683_v46  ;;  %3554 = vmatprep.subr.bf16.mxu1 %v5383_v14 }
 0x357   : > { %1689 = vmatpush1.bf16.msra.mxu0 %v4688_v47  ;;  %3555 = vmatpush3.bf16.msra.mxu1 %v4692_v48 }
 0x358   : > { %1690 = vmatprep.subr.bf16.mxu0 %v4696_v49  ;;  %3556 = vmatprep.subr.bf16.mxu1 %v5383_v14 }
 0x35b   : > { %1691 = vmatpush1.bf16.msra.mxu0 %v4701_v59  ;;  %3557 = vmatpush3.bf16.msra.mxu1 %v4705_v2 }
 0x35c   : > { %1692 = vmatprep.subr.bf16.mxu0 %v4709_v4  ;;  %3558 = vmatprep.subr.bf16.mxu1 %v5383_v14 }
 0x35f   : > { %1693 = vmatpush1.bf16.msra.mxu0 %v4714_v8  ;;  %3559 = vmatpush3.bf16.msra.mxu1 %v4718_v9 }
 0x360   : > { %1694 = vmatprep.subr.bf16.mxu0 %v4722_v12  ;;  %3560 = vmatprep.subr.bf16.mxu1 %v5383_v14 }
 0x363   : > { %1695 = vmatpush1.bf16.msra.mxu0 %v4727_v15  ;;  %3561 = vmatpush3.bf16.msra.mxu1 %v4731_v30 }
 0x364   : > { %1696 = vmatprep.subr.bf16.mxu0 %v4735_v54  ;;  %3562 = vmatprep.subr.bf16.mxu1 %v5383_v14 }
 0x367   : > { %1697 = vmatpush1.bf16.msra.mxu0 %v4740_v0  ;;  %3563 = vmatpush3.bf16.msra.mxu1 %v4744_v13 }
 0x368   : > { %1792 = vmatprep.subr.bf16.mxu0 %v4748_v22  ;;  %3568 = vmatprep.subr.bf16.mxu1 %v5383_v14 }
 0x3ea   : > { %v1492_v21 = vpop.f32.mrf.mxu0  ;;  %v1533_v11 = vpop.f32.mrf.mxu1 }
 0x3eb   : > { %v1493_v18 = vadd.f32 %v1492_v21, %v5413_v58  ;;  %v1534_v32 = vadd.f32 %v1533_v11, %v5416_v10 }
 0x3ec   : > { %v1494_v61 = vpop.f32.mrf.mxu0  ;;  %v3526_v19 = vpop.f32.mrf.mxu1 }
 0x3ed   : > { %v1539_v62 = vadd.f32 %v3211_v16, %v1493_v18  ;;  %v1495_v23 = vadd.f32 %v1494_v61, %v5414_v57  ;;  %v1657_v18 = vrot.slane %v4756_v7, 2 }
 0x3ee   : > { %v1496_v55 = vpop.f32.mrf.mxu0  ;;  %v1536_v60 = vpop.f32.mrf.mxu1 }
 0x3ef   : > { %v3212_v50 = vmul.f32 -1.442695, %v1539_v62  ;;  %v1549_v27 = vadd.f32 %v1547_v1, %v1495_v23 }
 0x3f0   : > { %v1497_v20 = vpop.f32.mrf.mxu0  ;;  %v3527_v17 = vpop.f32.mrf.mxu1 }
 0x3f1   : > { %3849 = vpow2.f32 %v3212_v50  ;;  %v3213_v56 = vmul.f32 -1.442695, %v1549_v27 }
 0x3f3   : > { %3851 = vpow2.f32 %v3213_v56 }
 0x3fe   : > { %v3850_v3 = vpop.eup %3849 }
 0x3ff   : > { %v1543_v63 = vadd.f32 1.0, %v3850_v3 }
 0x400   : > { %v3852_v5 = vpop.eup %3851 }
 0x401   : > { %3853 = vrcp.f32 %v1543_v63  ;;  %v1553_v33 = vadd.f32 1.0, %v3852_v5 }
 0x403   : > { %3855 = vrcp.f32 %v1553_v33 }
 0x40a   : > { %v1602_v25 = vpop.f32.mrf.mxu0  ;;  %v1643_v26 = vpop.f32.mrf.mxu1 }
 0x40b   : > { %v1603_v28 = vadd.f32 %v1602_v25, %v5415_v6 }
 0x40c   : > { %v1604_v29 = vpop.f32.mrf.mxu0  ;;  %v3546_v31 = vpop.f32.mrf.mxu1 }
 0x40d   : > { %v1649_v36 = vadd.f32 %v4756_v7, %v1603_v28  ;;  %v1605_v60 = vadd.f32 %v1604_v29, %v4411_v53  ;;  %v4770_v29 = vld [vmem:[%s4134_s14 + $0xa8] ss:$12 sps:$4 sm:$0xff]   ;;  %v4774_v31 = vld [vmem:[%s4134_s14 + $0xb0] ss:$12 sps:$4 sm:$0xff]  }
 0x40e   : > { %v3854_v21 = vpop.eup %3853  ;;  %v1606_v61 = vpop.f32.mrf.mxu0 }
 0x40f   : > { %v1646_v19 = vpop.f32.mrf.mxu1  ;;  %v1556_v62 = vmul.f32 %v3854_v21, %v1534_v32  ;;  %v3215_v55 = vmul.f32 -1.442695, %v1649_v36  ;;  %v1659_v20 = vadd.f32 %v1657_v18, %v1605_v60  ;;  %v4790_v36 = vld [vmem:[%s4134_s14 + $0x98] ss:$12 sps:$4 sm:$0xff]   ;;  %v1644_v21 = vadd.f32 %v1643_v26, %v4419_v24  ;;  %v4796_v61 = vld [vmem:[%s4134_s14 + $0x7c] ss:$12 sps:$4 sm:$0xff]  }
 0x410   : > { %v1607_v50 = vpop.f32.mrf.mxu0  ;;  %v3856_v16 = vpop.eup %3855  ;;  %v1667_v18 = vrot.slane %v4756_v7, 4  ;;  %v4805_v26 = vld [vmem:[%s4134_s14 + $0x80] ss:$12 sps:$4 sm:$0xff]   ;;  %v4809_v60 = vld [vmem:[%s4134_s14 + $0x64] ss:$12 sps:$4 sm:$0xff]  }
 0x411   : > { %v3547_v23 = vpop.f32.mrf.mxu1  ;;  %v1559_v1 = vadd.f32 %v1557_v34, %v1556_v62  ;;  %3857 = vpow2.f32 %v3215_v55  ;;  %v3216_v11 = vmul.f32 -1.442695, %v1659_v20  ;;  %v1561_v56 = vsub.f32 1.0, %v3856_v16  ;;  %v4786_v34 = vld [vmem:[%s4134_s14 + $0x90] ss:$12 sps:$4 sm:$0xff]  }
 0x412   : > { %v1563_v5 = vmul.f32 %v3856_v16, %v4595_v51  ;;  %v4778_v51 = vld [vmem:[%s4134_s14 + $0x94] ss:$12 sps:$4 sm:$0xff]   ;;  %v4801_v55 = vld [vmem:[%s4134_s14 + $0x78] ss:$12 sps:$4 sm:$0xff]  }
 0x413   : > { %3859 = vtanh.f32 %v1559_v1  ;;  %v4814_v50 = vld [vmem:[%s4134_s14 + $0x60] ss:$12 sps:$4 sm:$0xff]   ;;  %v4818_v23 = vld [vmem:[%s4134_s14 + $0x68] ss:$12 sps:$4 sm:$0xff]  }
 0x414   : > { %3861 = vpow2.f32 %v3216_v11  ;;  %v4822_v1 = vld [vmem:[%s4134_s14 + $0x4c] ss:$12 sps:$4 sm:$0xff]   ;;  %v4827_v20 = vld [vmem:[%s4134_s14 + $0x48] ss:$12 sps:$4 sm:$0xff]   ;;  %v4831_v11 = vld [vmem:[%s4134_s14 + $0x50] ss:$12 sps:$4 sm:$0xff]  }
 0x415   : > { %v4835_v16 = vld [vmem:[%s4134_s14 + $0x34] ss:$12 sps:$4 sm:$0xff]  }
 0x41e   : > { %v3858_v17 = vpop.eup %3857 }
 0x41f   : > { %v1653_v27 = vadd.f32 1.0, %v3858_v17 }
 0x420   : > { %v3860_v3 = vpop.eup %3859 }
 0x421   : > { %3863 = vrcp.f32 %v1653_v27  ;;  %v1562_v63 = vmul.f32 %v3860_v3, %v1561_v56  ;;  %v3862_v28 = vpop.eup %3861  ;;  %v4840_v27 = vld [vmem:[%s4134_s14 + $0x30] ss:$12 sps:$4 sm:$0xff]   ;;  %v4844_v56 = vld [vmem:[%s4134_s14 + $0x38] ss:$12 sps:$4 sm:$0xff]  }
 0x422   : > { %v1663_v32 = vadd.f32 1.0, %v3862_v28  ;;  %v4848_v3 = vld [vmem:[%s4134_s14 + $0x1c] ss:$12 sps:$4 sm:$0xff]   ;;  %v4857_v28 = vld [vmem:[%s4134_s14 + $0x20] ss:$12 sps:$4 sm:$0xff]  }
 0x423   : > { %v4764_v25 = vadd.f32 %v1563_v5, %v1562_v63 }
 0x424   : > { %3865 = vrcp.f32 %v1663_v32  ;;  %v4861_v32 = vld [vmem:[%s4134_s14 + $0x4] ss:$12 sps:$4 sm:$0xff]  }
 0x425   : > { %1676 = vst [vmem:[#allocation2 + $0xc] sm:$0x3] %v4764_v25  ;;  %v1681_v33 = vpack.c.bf16 %v4764_v25, %v4764_v25  ;;  %5433 = vst [vmem:[#allocation26_spill] sm:$0xff] %v4861_v32 }
 0x427   : > { %1715 = vmatmul.mubr.bf16.vlgmr.msra.gmra.mxu0 %v1681_v33  ;;  %3565 = vmatmul.mubr.bf16.vlgmr.msra.gmra.mxu1 %v1681_v33  ;;  %v4853_v33 = vld [vmem:[%s4134_s14 + $0x18] ss:$12 sps:$4 sm:$0xff]  }
 0x428   : > { %1793 = vmatpush1.bf16.msra.mxu0 %v4770_v29  ;;  %3569 = vmatpush3.bf16.msra.mxu1 %v4774_v31 }
 0x429   : > { %1794 = vmatprep.subr.bf16.mxu0 %v4778_v51  ;;  %3570 = vmatprep.subr.bf16.mxu1 %v5383_v14 }
 0x42a   : > { %1824 = vmatprep.mubr.bf16.mxu0 %v5384_v52  ;;  %3584 = vmatprep.mubr.msk.bf16.mxu1 %vm4029_vm0, %v5383_v14 }
 0x42c   : > { %1795 = vmatpush1.bf16.msra.mxu0 %v4786_v34  ;;  %3571 = vmatpush3.bf16.msra.mxu1 %v4790_v36 }
 0x42d   : > { %1796 = vmatprep.subr.bf16.mxu0 %v4796_v61  ;;  %3572 = vmatprep.subr.bf16.mxu1 %v5383_v14 }
 0x42e   : > { %v3864_v19 = vpop.eup %3863 }
 0x42f   : > { %v1666_v62 = vmul.f32 %v3864_v19, %v1644_v21 }
 0x430   : > { %1797 = vmatpush1.bf16.msra.mxu0 %v4801_v55  ;;  %3573 = vmatpush3.bf16.msra.mxu1 %v4805_v26 }
 0x431   : > { %v1669_v7 = vadd.f32 %v1667_v18, %v1666_v62  ;;  %1798 = vmatprep.subr.bf16.mxu0 %v4809_v60  ;;  %3574 = vmatprep.subr.bf16.mxu1 %v5383_v14  ;;  %v3866_v17 = vpop.eup %3865  ;;  %v4869_v62 = vld [vmem:[%s4134_s14] ss:$12 sps:$4 sm:$0xff]  }
 0x432   : > { %v1671_v63 = vsub.f32 1.0, %v3866_v17  ;;  %v1673_v18 = vmul.f32 %v3866_v17, %v4633_v35  ;;  %v3217_v35 = vld [vmem:[%s4375_s22 + $0x18] sm:$0x3f] }
 0x433   : > { %3867 = vtanh.f32 %v1669_v7  ;;  %v4873_v7 = vld [vmem:[%s4134_s14 + $0x8] ss:$12 sps:$4 sm:$0xff]  }
 0x434   : > { %1799 = vmatpush1.bf16.msra.mxu0 %v4814_v50  ;;  %3575 = vmatpush3.bf16.msra.mxu1 %v4818_v23 }
 0x435   : > { %1800 = vmatprep.subr.bf16.mxu0 %v4822_v1  ;;  %3576 = vmatprep.subr.bf16.mxu1 %v5383_v14 }
 0x438   : > { %1801 = vmatpush1.bf16.msra.mxu0 %v4827_v20  ;;  %3577 = vmatpush3.bf16.msra.mxu1 %v4831_v11 }
 0x439   : > { %1802 = vmatprep.subr.bf16.mxu0 %v4835_v16  ;;  %3578 = vmatprep.subr.bf16.mxu1 %v5383_v14 }
 0x43c   : > { %1803 = vmatpush1.bf16.msra.mxu0 %v4840_v27  ;;  %3579 = vmatpush3.bf16.msra.mxu1 %v4844_v56 }
 0x43d   : > { %1804 = vmatprep.subr.bf16.mxu0 %v4848_v3  ;;  %3580 = vmatprep.subr.bf16.mxu1 %v5383_v14 }
 0x440   : > { %v3868_v5 = vpop.eup %3867  ;;  %1805 = vmatpush1.bf16.msra.mxu0 %v4853_v33  ;;  %3581 = vmatpush3.bf16.msra.mxu1 %v4857_v28 }
 0x441   : > { %1806 = vmatprep.subr.bf16.mxu0 %v4861_v32  ;;  %3582 = vmatprep.subr.bf16.mxu1 %v5383_v14  ;;  %v1672_v21 = vmul.f32 %v3868_v5, %v1671_v63 }
 0x443   : > { %v4866_v19 = vadd.f32 %v1673_v18, %v1672_v21 }
 0x444   : > { %1807 = vmatpush1.bf16.msra.mxu0 %v4869_v62  ;;  %3583 = vmatpush3.bf16.msra.mxu1 %v4873_v7 }
 0x445   : > { %1678 = vst [vmem:[#allocation2 + $0x12] sm:$0x3] %v4866_v19  ;;  %v1791_v32 = vpack.c.bf16 %v4866_v19, %v4866_v19  ;;  %1904 = vmatprep.subr.bf16.mxu0 %v4641_v37  ;;  %3588 = vmatprep.subr.bf16.mxu1 %v5383_v14 }
 0x447   : > { %1825 = vmatmul.mubr.bf16.vlgmr.msra.gmra.mxu0 %v1791_v32  ;;  %3585 = vmatmul.mubr.bf16.vlgmr.msra.gmra.mxu1 %v1791_v32 }
 0x448   : > { %1905 = vmatpush1.bf16.msra.mxu0 %v4646_v38  ;;  %3589 = vmatpush3.bf16.msra.mxu1 %v4650_v39 }
 0x449   : > { %1906 = vmatprep.subr.bf16.mxu0 %v4654_v40  ;;  %3590 = vmatprep.subr.bf16.mxu1 %v5383_v14 }
 0x44a   : > { %1936 = vmatprep.mubr.bf16.mxu0 %v5384_v52  ;;  %3604 = vmatprep.mubr.msk.bf16.mxu1 %vm4029_vm0, %v5383_v14 }
 0x44c   : > { %1907 = vmatpush1.bf16.msra.mxu0 %v4662_v41  ;;  %3591 = vmatpush3.bf16.msra.mxu1 %v4666_v42 }
 0x44d   : > { %1908 = vmatprep.subr.bf16.mxu0 %v4670_v43  ;;  %3592 = vmatprep.subr.bf16.mxu1 %v5383_v14 }
 0x450   : > { %1909 = vmatpush1.bf16.msra.mxu0 %v4675_v44  ;;  %3593 = vmatpush3.bf16.msra.mxu1 %v4679_v45 }
 0x451   : > { %1910 = vmatprep.subr.bf16.mxu0 %v4683_v46  ;;  %3594 = vmatprep.subr.bf16.mxu1 %v5383_v14 }
 0x454   : > { %1911 = vmatpush1.bf16.msra.mxu0 %v4688_v47  ;;  %3595 = vmatpush3.bf16.msra.mxu1 %v4692_v48 }
 0x455   : > { %1912 = vmatprep.subr.bf16.mxu0 %v4696_v49  ;;  %3596 = vmatprep.subr.bf16.mxu1 %v5383_v14 }
 0x458   : > { %1913 = vmatpush1.bf16.msra.mxu0 %v4701_v59  ;;  %3597 = vmatpush3.bf16.msra.mxu1 %v4705_v2 }
 0x459   : > { %1914 = vmatprep.subr.bf16.mxu0 %v4709_v4  ;;  %3598 = vmatprep.subr.bf16.mxu1 %v5383_v14 }
 0x45c   : > { %1915 = vmatpush1.bf16.msra.mxu0 %v4714_v8  ;;  %3599 = vmatpush3.bf16.msra.mxu1 %v4718_v9 }
 0x45d   : > { %1916 = vmatprep.subr.bf16.mxu0 %v4722_v12  ;;  %3600 = vmatprep.subr.bf16.mxu1 %v5383_v14  ;;  %v1771_v12 = vrot.slane %v3217_v35, 2 }
 0x460   : > { %1917 = vmatpush1.bf16.msra.mxu0 %v4727_v15  ;;  %3601 = vmatpush3.bf16.msra.mxu1 %v4731_v30 }
 0x461   : > { %1918 = vmatprep.subr.bf16.mxu0 %v4735_v54  ;;  %3602 = vmatprep.subr.bf16.mxu1 %v5383_v14 }
 0x464   : > { %1919 = vmatpush1.bf16.msra.mxu0 %v4740_v0  ;;  %3603 = vmatpush3.bf16.msra.mxu1 %v4744_v13 }
 0x465   : > { %2014 = vmatprep.subr.bf16.mxu0 %v4748_v22  ;;  %3608 = vmatprep.subr.bf16.mxu1 %v5383_v14 }
 0x4e7   : > { %v1716_v17 = vpop.f32.mrf.mxu0  ;;  %v1757_v63 = vpop.f32.mrf.mxu1 }
 0x4e8   : > { %v1717_v5 = vadd.f32 %v1716_v17, %v5413_v58  ;;  %v4920_v58 = vld [vmem:[%s4402_s9 + $0x12] sm:$0x3f] }
 0x4e9   : > { %v1718_v32 = vpop.f32.mrf.mxu0  ;;  %v3566_v21 = vpop.f32.mrf.mxu1 }
 0x4ea   : > { %v1763_v18 = vadd.f32 %v3217_v35, %v1717_v5  ;;  %v1719_v0 = vadd.f32 %v1718_v32, %v5414_v57 }
 0x4eb   : > { %v1720_v54 = vpop.f32.mrf.mxu0  ;;  %v1760_v30 = vpop.f32.mrf.mxu1 }
 0x4ec   : > { %v3218_v15 = vmul.f32 -1.442695, %v1763_v18  ;;  %v1773_v22 = vadd.f32 %v1771_v12, %v1719_v0 }
 0x4ed   : > { %v1721_v13 = vpop.f32.mrf.mxu0  ;;  %v3567_v9 = vpop.f32.mrf.mxu1 }
 0x4ee   : > { %3869 = vpow2.f32 %v3218_v15  ;;  %v3219_v8 = vmul.f32 -1.442695, %v1773_v22  ;;  %v1758_v13 = vadd.f32 %v1757_v63, %v5416_v10  ;;  %v1781_v9 = vrot.slane %v3217_v35, 4 }
 0x4f0   : > { %3871 = vpow2.f32 %v3219_v8 }
 0x4fb   : > { %v3870_v4 = vpop.eup %3869 }
 0x4fc   : > { %v1767_v2 = vadd.f32 1.0, %v3870_v4  ;;  %v1881_v4 = vrot.slane %v4920_v58, 2 }
 0x4fd   : > { %v3872_v17 = vpop.eup %3871 }
 0x4fe   : > { %3873 = vrcp.f32 %v1767_v2  ;;  %v1777_v54 = vadd.f32 1.0, %v3872_v17 }
 0x500   : > { %3875 = vrcp.f32 %v1777_v54  ;;  %v2574_v54 = vld [vmem:[%s422_s13] sm:$0x3] }
 0x507   : > { %v1826_v5 = vpop.f32.mrf.mxu0  ;;  %v1867_v21 = vpop.f32.mrf.mxu1 }
 0x508   : > { %v1827_v30 = vadd.f32 %v1826_v5, %v5415_v6 }
 0x509   : > { %v1828_v18 = vpop.f32.mrf.mxu0  ;;  %v3586_v32 = vpop.f32.mrf.mxu1 }
 0x50a   : > { %v1873_v12 = vadd.f32 %v4920_v58, %v1827_v30  ;;  %v1829_v17 = vadd.f32 %v1828_v18, %v4411_v53  ;;  %v4030_v32 = vmov 1983009808  }
 0x50b   : > { %v3874_v8 = vpop.eup %3873  ;;  %v1830_v2 = vpop.f32.mrf.mxu0 }
 0x50c   : > { %v1870_v15 = vpop.f32.mrf.mxu1  ;;  %v1780_v0 = vmul.f32 %v3874_v8, %v1758_v13  ;;  %v3221_v22 = vmul.f32 -1.442695, %v1873_v12  ;;  %v1883_v63 = vadd.f32 %v1881_v4, %v1829_v17  ;;  %v2586_v13 = vunpack.c.l.s4 %v4030_v32 }
 0x50d   : > { %v1831_v57 = vpop.f32.mrf.mxu0  ;;  %v3876_v30 = vpop.eup %3875 }
 0x50e   : > { %v3587_v5 = vpop.f32.mrf.mxu1  ;;  %v1783_v6 = vadd.f32 %v1781_v9, %v1780_v0  ;;  %3877 = vpow2.f32 %v3221_v22  ;;  %v3222_v35 = vmul.f32 -1.442695, %v1883_v63  ;;  %v1785_v18 = vsub.f32 1.0, %v3876_v30  ;;  %v5434_v9 = vld [vmem:[#allocation18_spill] sm:$0xff]  ;;  %v5435_v0 = vld [vmem:[#allocation20_spill] sm:$0xff] }
 0x50f   : > { %v2587_v2 = vunpack.c.0.s8 %v2586_v13  ;;  %v2579_v15 = vrot.slane %v2574_v54, %v5434_v9  ;;  %v1787_v4 = vmul.f32 %v3876_v30, %v4764_v25  ;;  %v2583_v22 = vrot.slane %v2574_v54, %v5435_v0  ;;  %v5436_v5 = vld [vmem:[#allocation17_spill] sm:$0xff] }
 0x510   : > { %3879 = vtanh.f32 %v1783_v6 }
 0x511   : > { %3881 = vpow2.f32 %v3222_v35  ;;  %v4937_v63 = vsub.s32 %v2587_v2, %v5436_v5  ;;  %v2584_v32 = vcombine.low %v2579_v15, %v2583_v22 }
 0x513   : > { %v4947_v25 = vrot.slane %v2584_v32, %v4937_v63 }
 0x51b   : > { %v3878_v12 = vpop.eup %3877 }
 0x51c   : > { %v1877_v8 = vadd.f32 1.0, %v3878_v12  ;;  %v1868_v12 = vadd.f32 %v1867_v21, %v4419_v24 }
 0x51d   : > { %v3880_v57 = vpop.eup %3879 }
 0x51e   : > { %3883 = vrcp.f32 %v1877_v8  ;;  %v1786_v6 = vmul.f32 %v3880_v57, %v1785_v18  ;;  %v3882_v13 = vpop.eup %3881  ;;  %v1891_v8 = vrot.slane %v4920_v58, 4 }
 0x51f   : > { %v1887_v30 = vadd.f32 1.0, %v3882_v13 }
 0x520   : > { %v4934_v17 = vadd.f32 %v1787_v4, %v1786_v6 }
 0x521   : > { %3885 = vrcp.f32 %v1887_v30 }
 0x522   : > { %1899 = vst [vmem:[#allocation2 + $0x10] sm:$0x3] %v4934_v17  ;;  %v1903_v35 = vpack.c.bf16 %v4934_v17, %v4934_v17 }
 0x524   : > { %1937 = vmatmul.mubr.bf16.vlgmr.msra.gmra.mxu0 %v1903_v35  ;;  %3605 = vmatmul.mubr.bf16.vlgmr.msra.gmra.mxu1 %v1903_v35  ;;  %v5437_v35 = vld [vmem:[#allocation26_spill] sm:$0xff] }
 0x525   : > { %2015 = vmatpush1.bf16.msra.mxu0 %v4770_v29  ;;  %3609 = vmatpush3.bf16.msra.mxu1 %v4774_v31 }
 0x526   : > { %2016 = vmatprep.subr.bf16.mxu0 %v4778_v51  ;;  %3610 = vmatprep.subr.bf16.mxu1 %v5383_v14 }
 0x527   : > { %2046 = vmatprep.mubr.bf16.mxu0 %v5384_v52  ;;  %3624 = vmatprep.mubr.msk.bf16.mxu1 %vm4029_vm0, %v5383_v14 }
 0x529   : > { %2017 = vmatpush1.bf16.msra.mxu0 %v4786_v34  ;;  %3611 = vmatpush3.bf16.msra.mxu1 %v4790_v36  ;;  %v2570_v54 = vld [vmem:[#allocation2 + $0x10] sm:$0xf] }
 0x52a   : > { %2018 = vmatprep.subr.bf16.mxu0 %v4796_v61  ;;  %3612 = vmatprep.subr.bf16.mxu1 %v5383_v14  ;;  %v2597_v18 = vmul.f32 %v4947_v25, %v2570_v54 }
 0x52b   : > { %v3884_v57 = vpop.eup %3883 }
 0x52c   : > { %v1890_v2 = vmul.f32 %v3884_v57, %v1868_v12  ;;  %v2647_v9 = vrot.slane %v2597_v18, %v4937_v63 }
 0x52d   : > { %2019 = vmatpush1.bf16.msra.mxu0 %v4801_v55  ;;  %3613 = vmatpush3.bf16.msra.mxu1 %v4805_v26 }
 0x52e   : > { %v1893_v15 = vadd.f32 %v1891_v8, %v1890_v2  ;;  %2020 = vmatprep.subr.bf16.mxu0 %v4809_v60  ;;  %3614 = vmatprep.subr.bf16.mxu1 %v5383_v14  ;;  %v2648_v58 = vcombine.high %v2647_v9, %v2647_v9  ;;  %v2710_v21 = vsel %vm2689_vm1, %v2647_v9, 0.0  ;;  %v3886_v0 = vpop.eup %3885 }
 0x52f   : > { %v1895_v22 = vsub.f32 1.0, %v3886_v0  ;;  %v1897_v13 = vmul.f32 %v3886_v0, %v4866_v19  ;;  %v5443_v0 = vld [vmem:[#allocation10_spill] sm:$0xff] }
 0x530   : > { %3887 = vtanh.f32 %v1893_v15  ;;  %v2711_v6 = vsel %vm2689_vm1, %v2648_v58, 0.0  ;;  %v5438_v15 = vld [vmem:[#allocation6_spill] sm:$0xff] }
 0x531   : > { %2021 = vmatpush1.bf16.msra.mxu0 %v4814_v50  ;;  %3615 = vmatpush3.bf16.msra.mxu1 %v4818_v23  ;;  %v2712_v4 = vadd.f32 %v2711_v6, %v2710_v21  ;;  %v5439_v58 = vld [vmem:[#allocation14_spill] sm:$0xff]  ;;  %v5440_v21 = vld [vmem:[#allocation7_spill] sm:$0xff]  ;;  %v5441_v6 = vld [vmem:[#allocation9_spill] sm:$0xff] }
 0x532   : > { %2022 = vmatprep.subr.bf16.mxu0 %v4822_v1  ;;  %3616 = vmatprep.subr.bf16.mxu1 %v5383_v14 }
 0x533   : > { %2713 = vadd.xlane.f32.xlu0 %v2712_v4  ;;  %v5442_v4 = vld [vmem:[#allocation15_spill] sm:$0xff] }
 0x535   : > { %2023 = vmatpush1.bf16.msra.mxu0 %v4827_v20  ;;  %3617 = vmatpush3.bf16.msra.mxu1 %v4831_v11 }
 0x536   : > { %2024 = vmatprep.subr.bf16.mxu0 %v4835_v16  ;;  %3618 = vmatprep.subr.bf16.mxu1 %v5383_v14 }
 0x539   : > { %2025 = vmatpush1.bf16.msra.mxu0 %v4840_v27  ;;  %3619 = vmatpush3.bf16.msra.mxu1 %v4844_v56 }
 0x53a   : > { %2026 = vmatprep.subr.bf16.mxu0 %v4848_v3  ;;  %3620 = vmatprep.subr.bf16.mxu1 %v5383_v14 }
 0x53d   : > { %v3888_v5 = vpop.eup %3887  ;;  %2027 = vmatpush1.bf16.msra.mxu0 %v4853_v33  ;;  %3621 = vmatpush3.bf16.msra.mxu1 %v4857_v28 }
 0x53e   : > { %2028 = vmatprep.subr.bf16.mxu0 %v5437_v35  ;;  %3622 = vmatprep.subr.bf16.mxu1 %v5383_v14  ;;  %v1896_v32 = vmul.f32 %v3888_v5, %v1895_v22  ;;  %v5444_v22 = vld [vmem:[#allocation12_spill] sm:$0xff] }
 0x53f   : > { %v5445_v5 = vld [vmem:[#allocation16_spill] sm:$0xff] }
 0x540   : > { %v4983_v30 = vadd.f32 %v1897_v13, %v1896_v32  ;;  %v5446_v32 = vld [vmem:[#allocation13_spill] sm:$0xff]  ;;  %v5447_v13 = vld [vmem:[#allocation24_spill] sm:$0xff] }
 0x541   : > { %2029 = vmatpush1.bf16.msra.mxu0 %v4869_v62  ;;  %3623 = vmatpush3.bf16.msra.mxu1 %v4873_v7 }
 0x542   : > { %1900 = vst [vmem:[#allocation2 + $0xe] sm:$0x3] %v4983_v30  ;;  %v2013_v54 = vpack.c.bf16 %v4983_v30, %v4983_v30  ;;  %2126 = vmatprep.subr.bf16.mxu0 %v4641_v37  ;;  %3628 = vmatprep.subr.bf16.mxu1 %v5383_v14 }
 0x544   : > { %2047 = vmatmul.mubr.bf16.vlgmr.msra.gmra.mxu0 %v2013_v54  ;;  %3625 = vmatmul.mubr.bf16.vlgmr.msra.gmra.mxu1 %v2013_v54  ;;  %v5448_v54 = vld [vmem:[#allocation25_spill] sm:$0xff] }
 0x545   : > { %2127 = vmatpush1.bf16.msra.mxu0 %v4646_v38  ;;  %3629 = vmatpush3.bf16.msra.mxu1 %v4650_v39 }
 0x546   : > { %2128 = vmatprep.subr.bf16.mxu0 %v4654_v40  ;;  %3630 = vmatprep.subr.bf16.mxu1 %v5383_v14 }
 0x547   : > { %2158 = vmatprep.mubr.bf16.mxu0 %v5384_v52  ;;  %3644 = vmatprep.mubr.msk.bf16.mxu1 %vm4029_vm0, %v5383_v14 }
 0x549   : > { %v2569_v19 = vld [vmem:[#allocation2 + $0xc] sm:$0xf]  ;;  %2129 = vmatpush1.bf16.msra.mxu0 %v4662_v41  ;;  %3631 = vmatpush3.bf16.msra.mxu1 %v4666_v42 }
 0x54a   : > { %v2596_v12 = vmul.f32 %v4947_v25, %v2569_v19  ;;  %2130 = vmatprep.subr.bf16.mxu0 %v4670_v43  ;;  %3632 = vmatprep.subr.bf16.mxu1 %v5383_v14  ;;  %v3223_v19 = vld [vmem:[%s4375_s22 + $0x1e] sm:$0x3f] }
 0x54c   : > { %v2639_v8 = vrot.slane %v2596_v12, %v4937_v63 }
 0x54d   : > { %2131 = vmatpush1.bf16.msra.mxu0 %v4675_v44  ;;  %3633 = vmatpush3.bf16.msra.mxu1 %v4679_v45 }
 0x54e   : > { %v2640_v18 = vcombine.high %v2639_v8, %v2639_v8  ;;  %2132 = vmatprep.subr.bf16.mxu0 %v4683_v46  ;;  %3634 = vmatprep.subr.bf16.mxu1 %v5383_v14  ;;  %v2705_v57 = vsel %vm2689_vm1, %v2639_v8, 0.0 }
 0x550   : > { %v2706_v2 = vsel %vm2689_vm1, %v2640_v18, 0.0  ;;  %v5449_v18 = vld [vmem:[#allocation19_spill] sm:$0xff] }
 0x551   : > { %v2707_v9 = vadd.f32 %v2706_v2, %v2705_v57  ;;  %2133 = vmatpush1.bf16.msra.mxu0 %v4688_v47  ;;  %3635 = vmatpush3.bf16.msra.mxu1 %v4692_v48 }
 0x552   : > { %2134 = vmatprep.subr.bf16.mxu0 %v4696_v49  ;;  %3636 = vmatprep.subr.bf16.mxu1 %v5383_v14 }
 0x553   : > { %2708 = vadd.xlane.f32.xlu1 %v2707_v9 }
 0x555   : > { %2135 = vmatpush1.bf16.msra.mxu0 %v4701_v59  ;;  %3637 = vmatpush3.bf16.msra.mxu1 %v5438_v15 }
 0x556   : > { %2136 = vmatprep.subr.bf16.mxu0 %v5439_v58  ;;  %3638 = vmatprep.subr.bf16.mxu1 %v5383_v14 }
 0x559   : > { %2137 = vmatpush1.bf16.msra.mxu0 %v5440_v21  ;;  %3639 = vmatpush3.bf16.msra.mxu1 %v5441_v6  ;;  %v5450_v6 = vld [vmem:[#allocation21_spill] sm:$0xff]  ;;  %v1993_v21 = vrot.slane %v3223_v19, 2 }
 0x55a   : > { %2138 = vmatprep.subr.bf16.mxu0 %v5442_v4  ;;  %3640 = vmatprep.subr.bf16.mxu1 %v5383_v14 }
 0x55d   : > { %2139 = vmatpush1.bf16.msra.mxu0 %v5443_v0  ;;  %3641 = vmatpush3.bf16.msra.mxu1 %v5444_v22 }
 0x55e   : > { %2140 = vmatprep.subr.bf16.mxu0 %v5445_v5  ;;  %3642 = vmatprep.subr.bf16.mxu1 %v5383_v14 }
 0x561   : > { %2141 = vmatpush1.bf16.msra.mxu0 %v5446_v32  ;;  %3643 = vmatpush3.bf16.msra.mxu1 %v5447_v13 }
 0x562   : > { %2236 = vmatprep.subr.bf16.mxu0 %v5448_v54  ;;  %3648 = vmatprep.subr.bf16.mxu1 %v5383_v14 }
 0x5e4   : > { %v1938_v12 = vpop.f32.mrf.mxu0  ;;  %v1979_v8 = vpop.f32.mrf.mxu1 }
 0x5e5   : > { %v1939_v57 = vadd.f32 %v1938_v12, %v5449_v18  ;;  %v3226_v18 = vld [vmem:[%s4402_s9 + $0xc] sm:$0x3f] }
 0x5e6   : > { %v1940_v2 = vpop.f32.mrf.mxu0  ;;  %v3606_v9 = vpop.f32.mrf.mxu1 }
 0x5e7   : > { %v1985_v22 = vadd.f32 %v3223_v19, %v1939_v57  ;;  %v1941_v32 = vadd.f32 %v1940_v2, %v5450_v6  ;;  %v1980_v2 = vadd.f32 %v1979_v8, %v5416_v10 }
 0x5e8   : > { %v1942_v5 = vpop.f32.mrf.mxu0  ;;  %v1982_v0 = vpop.f32.mrf.mxu1 }
 0x5e9   : > { %v3224_v4 = vmul.f32 -1.442695, %v1985_v22  ;;  %v1995_v54 = vadd.f32 %v1993_v21, %v1941_v32  ;;  %v5451_v5 = vld [vmem:[#allocation23_spill] sm:$0xff]  ;;  %v2103_v21 = vrot.slane %v3226_v18, 2 }
 0x5ea   : > { %v1943_v13 = vpop.f32.mrf.mxu0  ;;  %v3607_v58 = vpop.f32.mrf.mxu1 }
 0x5eb   : > { %3889 = vpow2.f32 %v3224_v4  ;;  %v3225_v15 = vmul.f32 -1.442695, %v1995_v54  ;;  %v2003_v13 = vrot.slane %v3223_v19, 4 }
 0x5ed   : > { %3891 = vpow2.f32 %v3225_v15 }
 0x5f8   : > { %v3890_v59 = vpop.eup %3889 }
 0x5f9   : > { %v1989_v49 = vadd.f32 1.0, %v3890_v59 }
 0x5fa   : > { %v3892_v12 = vpop.eup %3891 }
 0x5fb   : > { %3893 = vrcp.f32 %v1989_v49  ;;  %v1999_v48 = vadd.f32 1.0, %v3892_v12 }
 0x5fd   : > { %3895 = vrcp.f32 %v1999_v48 }
 0x604   : > { %v2048_v9 = vpop.f32.mrf.mxu0  ;;  %v2089_v57 = vpop.f32.mrf.mxu1 }
 0x605   : > { %v2049_v0 = vadd.f32 %v2048_v9, %v5451_v5 }
 0x606   : > { %v2050_v22 = vpop.f32.mrf.mxu0  ;;  %v3626_v47 = vpop.f32.mrf.mxu1 }
 0x607   : > { %v2095_v58 = vadd.f32 %v3226_v18, %v2049_v0  ;;  %v2051_v59 = vadd.f32 %v2050_v22, %v4411_v53  ;;  %v2113_v22 = vrot.slane %v3226_v18, 4 }
 0x608   : > { %v3894_v4 = vpop.eup %3893  ;;  %v2052_v32 = vpop.f32.mrf.mxu0 }
 0x609   : > { %v2092_v15 = vpop.f32.mrf.mxu1  ;;  %v2002_v54 = vmul.f32 %v3894_v4, %v1980_v2  ;;  %v3227_v49 = vmul.f32 -1.442695, %v2095_v58  ;;  %v2105_v9 = vadd.f32 %v2103_v21, %v2051_v59 }
 0x60a   : > { %v2053_v6 = vpop.f32.mrf.mxu0  ;;  %v3896_v8 = vpop.eup %3895 }
 0x60b   : > { %v3627_v46 = vpop.f32.mrf.mxu1  ;;  %v2005_v12 = vadd.f32 %v2003_v13, %v2002_v54  ;;  %3897 = vpow2.f32 %v3227_v49  ;;  %v3228_v47 = vmul.f32 -1.442695, %v2105_v9  ;;  %v2007_v10 = vsub.f32 1.0, %v3896_v8 }
 0x60c   : > { %v2009_v48 = vmul.f32 %v3896_v8, %v4934_v17 }
 0x60d   : > { %3899 = vtanh.f32 %v2005_v12 }
 0x60e   : > { %3901 = vpow2.f32 %v3228_v47 }
 0x618   : > { %v3898_v19 = vpop.eup %3897 }
 0x619   : > { %v2099_v0 = vadd.f32 1.0, %v3898_v19 }
 0x61a   : > { %v3900_v5 = vpop.eup %3899 }
 0x61b   : > { %3903 = vrcp.f32 %v2099_v0  ;;  %v2008_v32 = vmul.f32 %v3900_v5, %v2007_v10  ;;  %v3902_v6 = vpop.eup %3901  ;;  %v2090_v5 = vadd.f32 %v2089_v57, %v4419_v24 }
 0x61c   : > { %v2109_v10 = vadd.f32 1.0, %v3902_v6  ;;  %v5458_v6 = vld [vmem:[#allocation14_spill] sm:$0xff] }
 0x61d   : > { %v5039_v2 = vadd.f32 %v2009_v48, %v2008_v32  ;;  %v5453_v48 = vld [vmem:[#allocation3_spill] sm:$0xff] }
 0x61e   : > { %3905 = vrcp.f32 %v2109_v10  ;;  %v5459_v10 = vld [vmem:[#allocation7_spill] sm:$0xff] }
 0x61f   : > { %2121 = vst [vmem:[#allocation2 + $0x14] sm:$0x3] %v5039_v2  ;;  %v2125_v46 = vpack.c.bf16 %v5039_v2, %v5039_v2 }
 0x621   : > { %2159 = vmatmul.mubr.bf16.vlgmr.msra.gmra.mxu0 %v2125_v46  ;;  %3645 = vmatmul.mubr.bf16.vlgmr.msra.gmra.mxu1 %v2125_v46  ;;  %v5455_v46 = vld [vmem:[#allocation11_spill] sm:$0xff] }
 0x622   : > { %2237 = vmatpush1.bf16.msra.mxu0 %v4770_v29  ;;  %3649 = vmatpush3.bf16.msra.mxu1 %v4774_v31 }
 0x623   : > { %2238 = vmatprep.subr.bf16.mxu0 %v4778_v51  ;;  %3650 = vmatprep.subr.bf16.mxu1 %v5383_v14 }
 0x624   : > { %2268 = vmatprep.mubr.bf16.mxu0 %v5384_v52  ;;  %3664 = vmatprep.mubr.msk.bf16.mxu1 %vm4029_vm0, %v5383_v14 }
 0x626   : > { %2239 = vmatpush1.bf16.msra.mxu0 %v4786_v34  ;;  %3651 = vmatpush3.bf16.msra.mxu1 %v4790_v36  ;;  %v5053_v17 = vld [vmem:[#allocation2 + $0x14] sm:$0xf] }
 0x627   : > { %2240 = vmatprep.subr.bf16.mxu0 %v4796_v61  ;;  %3652 = vmatprep.subr.bf16.mxu1 %v5383_v14  ;;  %v2598_v13 = vmul.f32 %v4947_v25, %v5053_v17 }
 0x628   : > { %v3904_v58 = vpop.eup %3903 }
 0x629   : > { %v2112_v4 = vmul.f32 %v3904_v58, %v2090_v5  ;;  %v2655_v21 = vrot.slane %v2598_v13, %v4937_v63  ;;  %v5460_v5 = vld [vmem:[#allocation9_spill] sm:$0xff]  ;;  %v5462_v13 = vld [vmem:[#allocation10_spill] sm:$0xff]  ;;  %v5463_v58 = vld [vmem:[#allocation12_spill] sm:$0xff] }
 0x62a   : > { %2241 = vmatpush1.bf16.msra.mxu0 %v4801_v55  ;;  %3653 = vmatpush3.bf16.msra.mxu1 %v4805_v26 }
 0x62b   : > { %v2115_v15 = vadd.f32 %v2113_v22, %v2112_v4  ;;  %2242 = vmatprep.subr.bf16.mxu0 %v4809_v60  ;;  %3654 = vmatprep.subr.bf16.mxu1 %v5383_v14  ;;  %v2656_v18 = vcombine.high %v2655_v21, %v2655_v21  ;;  %v2715_v57 = vsel %vm2689_vm1, %v2655_v21, 0.0  ;;  %v3906_v59 = vpop.eup %3905  ;;  %v5461_v22 = vld [vmem:[#allocation15_spill] sm:$0xff]  ;;  %v5464_v4 = vld [vmem:[#allocation16_spill] sm:$0xff]  ;;  %v5465_v21 = vld [vmem:[#allocation13_spill] sm:$0xff] }
 0x62c   : > { %v2117_v12 = vsub.f32 1.0, %v3906_v59  ;;  %v2119_v8 = vmul.f32 %v3906_v59, %v4983_v30  ;;  %v5468_v59 = vld [vmem:[#allocation19_spill] sm:$0xff] }
 0x62d   : > { %3907 = vtanh.f32 %v2115_v15  ;;  %v2716_v54 = vsel %vm2689_vm1, %v2656_v18, 0.0  ;;  %v5466_v15 = vld [vmem:[#allocation24_spill] sm:$0xff]  ;;  %v5467_v18 = vld [vmem:[#allocation25_spill] sm:$0xff] }
 0x62e   : > { %2243 = vmatpush1.bf16.msra.mxu0 %v4814_v50  ;;  %3655 = vmatpush3.bf16.msra.mxu1 %v4818_v23  ;;  %v2717_v49 = vadd.f32 %v2716_v54, %v2715_v57  ;;  %v3229_v57 = vld [vmem:[%s4375_s22 + $0x24] sm:$0x3f] }
 0x62f   : > { %2244 = vmatprep.subr.bf16.mxu0 %v4822_v1  ;;  %3656 = vmatprep.subr.bf16.mxu1 %v5383_v14 }
 0x630   : > { %2718 = vadd.xlane.f32.xlu1 %v2717_v49 }
 0x632   : > { %2245 = vmatpush1.bf16.msra.mxu0 %v4827_v20  ;;  %3657 = vmatpush3.bf16.msra.mxu1 %v4831_v11 }
 0x633   : > { %2246 = vmatprep.subr.bf16.mxu0 %v4835_v16  ;;  %3658 = vmatprep.subr.bf16.mxu1 %v5383_v14 }
 0x636   : > { %2247 = vmatpush1.bf16.msra.mxu0 %v4840_v27  ;;  %3659 = vmatpush3.bf16.msra.mxu1 %v4844_v56 }
 0x637   : > { %2248 = vmatprep.subr.bf16.mxu0 %v4848_v3  ;;  %3660 = vmatprep.subr.bf16.mxu1 %v5383_v14 }
 0x63a   : > { %v3908_v9 = vpop.eup %3907  ;;  %2249 = vmatpush1.bf16.msra.mxu0 %v4853_v33  ;;  %3661 = vmatpush3.bf16.msra.mxu1 %v4857_v28 }
 0x63b   : > { %2250 = vmatprep.subr.bf16.mxu0 %v5437_v35  ;;  %3662 = vmatprep.subr.bf16.mxu1 %v5383_v14  ;;  %v2118_v47 = vmul.f32 %v3908_v9, %v2117_v12 }
 0x63d   : > { %v5084_v19 = vadd.f32 %v2119_v8, %v2118_v47 }
 0x63e   : > { %2251 = vmatpush1.bf16.msra.mxu0 %v4869_v62  ;;  %3663 = vmatpush3.bf16.msra.mxu1 %v4873_v7 }
 0x63f   : > { %2122 = vst [vmem:[#allocation2 + $0xa] sm:$0x3] %v5084_v19  ;;  %v2235_v0 = vpack.c.bf16 %v5084_v19, %v5084_v19  ;;  %2348 = vmatprep.subr.bf16.mxu0 %v4641_v37  ;;  %3668 = vmatprep.subr.bf16.mxu1 %v5383_v14 }
 0x641   : > { %2269 = vmatmul.mubr.bf16.vlgmr.msra.gmra.mxu0 %v2235_v0  ;;  %3665 = vmatmul.mubr.bf16.vlgmr.msra.gmra.mxu1 %v2235_v0 }
 0x642   : > { %2349 = vmatpush1.bf16.msra.mxu0 %v4646_v38  ;;  %3669 = vmatpush3.bf16.msra.mxu1 %v4650_v39 }
 0x643   : > { %2350 = vmatprep.subr.bf16.mxu0 %v4654_v40  ;;  %3670 = vmatprep.subr.bf16.mxu1 %v5383_v14  ;;  %v5452_v40 = vld [vmem:[#allocation8_spill] sm:$0xff] }
 0x644   : > { %2380 = vmatprep.mubr.bf16.mxu0 %v5384_v52  ;;  %3684 = vmatprep.mubr.msk.bf16.mxu1 %vm4029_vm0, %v5383_v14 }
 0x646   : > { %v5100_v30 = vld [vmem:[#allocation2 + $0x8] sm:$0xf]  ;;  %2351 = vmatpush1.bf16.msra.mxu0 %v4662_v41  ;;  %3671 = vmatpush3.bf16.msra.mxu1 %v4666_v42 }
 0x647   : > { %v2595_v37 = vmul.f32 %v4947_v25, %v5100_v30  ;;  %2352 = vmatprep.subr.bf16.mxu0 %v4670_v43  ;;  %3672 = vmatprep.subr.bf16.mxu1 %v5383_v14  ;;  %v5454_v43 = vld [vmem:[#allocation4_spill] sm:$0xff] }
 0x649   : > { %v2631_v38 = vrot.slane %v2595_v37, %v4937_v63 }
 0x64a   : > { %2353 = vmatpush1.bf16.msra.mxu0 %v4675_v44  ;;  %3673 = vmatpush3.bf16.msra.mxu1 %v4679_v45  ;;  %v5456_v44 = vld [vmem:[#allocation5_spill] sm:$0xff]  ;;  %v5457_v45 = vld [vmem:[#allocation6_spill] sm:$0xff] }
 0x64b   : > { %v2632_v39 = vcombine.high %v2631_v38, %v2631_v38  ;;  %2354 = vmatprep.subr.bf16.mxu0 %v5452_v40  ;;  %3674 = vmatprep.subr.bf16.mxu1 %v5383_v14  ;;  %v2700_v41 = vsel %vm2689_vm1, %v2631_v38, 0.0 }
 0x64d   : > { %v2701_v42 = vsel %vm2689_vm1, %v2632_v39, 0.0  ;;  %v5469_v39 = vld [vmem:[#allocation21_spill] sm:$0xff] }
 0x64e   : > { %v2702_v32 = vadd.f32 %v2701_v42, %v2700_v41  ;;  %2355 = vmatpush1.bf16.msra.mxu0 %v5453_v48  ;;  %3675 = vmatpush3.bf16.msra.mxu1 %v5454_v43  ;;  %v2215_v41 = vrot.slane %v3229_v57, 2 }
 0x64f   : > { %2356 = vmatprep.subr.bf16.mxu0 %v5455_v46  ;;  %3676 = vmatprep.subr.bf16.mxu1 %v5383_v14 }
 0x650   : > { %2703 = vadd.xlane.f32.xlu1 %v2702_v32 }
 0x652   : > { %2357 = vmatpush1.bf16.msra.mxu0 %v5456_v44  ;;  %3677 = vmatpush3.bf16.msra.mxu1 %v5457_v45 }
 0x653   : > { %2358 = vmatprep.subr.bf16.mxu0 %v5458_v6  ;;  %3678 = vmatprep.subr.bf16.mxu1 %v5383_v14  ;;  %v3232_v6 = vld [vmem:[%s4402_s9 + $0x6] sm:$0x3f] }
 0x656   : > { %2359 = vmatpush1.bf16.msra.mxu0 %v5459_v10  ;;  %3679 = vmatpush3.bf16.msra.mxu1 %v5460_v5 }
 0x657   : > { %2360 = vmatprep.subr.bf16.mxu0 %v5461_v22  ;;  %3680 = vmatprep.subr.bf16.mxu1 %v5383_v14 }
 0x65a   : > { %2361 = vmatpush1.bf16.msra.mxu0 %v5462_v13  ;;  %3681 = vmatpush3.bf16.msra.mxu1 %v5463_v58  ;;  %v5470_v13 = vld [vmem:[#allocation23_spill] sm:$0xff] }
 0x65b   : > { %2362 = vmatprep.subr.bf16.mxu0 %v5464_v4  ;;  %3682 = vmatprep.subr.bf16.mxu1 %v5383_v14 }
 0x65e   : > { %2363 = vmatpush1.bf16.msra.mxu0 %v5465_v21  ;;  %3683 = vmatpush3.bf16.msra.mxu1 %v5466_v15  ;;  %v5471_v15 = vld [vmem:[#allocation22_spill] sm:$0xff] }
 0x65f   : > { %2457 = vmatprep.subr.bf16.mxu0 %v5467_v18  ;;  %3688 = vmatprep.subr.bf16.mxu1 %v5383_v14 }
 0x6e1   : > { %v2160_v54 = vpop.f32.mrf.mxu0  ;;  %v2201_v49 = vpop.f32.mrf.mxu1 }
 0x6e2   : > { %v2161_v12 = vadd.f32 %v2160_v54, %v5468_v59  ;;  %v2202_v18 = vadd.f32 %v2201_v49, %v5471_v15  ;;  %v2225_v54 = vrot.slane %v3229_v57, 4 }
 0x6e3   : > { %v2162_v9 = vpop.f32.mrf.mxu0  ;;  %v3646_v47 = vpop.f32.mrf.mxu1 }
 0x6e4   : > { %v2207_v8 = vadd.f32 %v3229_v57, %v2161_v12  ;;  %v2163_v40 = vadd.f32 %v2162_v9, %v5469_v39  ;;  %v2325_v47 = vrot.slane %v3232_v6, 2 }
 0x6e5   : > { %v2164_v0 = vpop.f32.mrf.mxu0  ;;  %v2204_v37 = vpop.f32.mrf.mxu1 }
 0x6e6   : > { %v3230_v38 = vmul.f32 -1.442695, %v2207_v8  ;;  %v2217_v48 = vadd.f32 %v2215_v41, %v2163_v40 }
 0x6e7   : > { %v2165_v42 = vpop.f32.mrf.mxu0  ;;  %v3647_v32 = vpop.f32.mrf.mxu1 }
 0x6e8   : > { %3909 = vpow2.f32 %v3230_v38  ;;  %v3231_v43 = vmul.f32 -1.442695, %v2217_v48 }
 0x6ea   : > { %3911 = vpow2.f32 %v3231_v43 }
 0x6f5   : > { %v3910_v46 = vpop.eup %3909 }
 0x6f6   : > { %v2211_v44 = vadd.f32 1.0, %v3910_v46 }
 0x6f7   : > { %v3912_v45 = vpop.eup %3911 }
 0x6f8   : > { %3913 = vrcp.f32 %v2211_v44  ;;  %v2221_v22 = vadd.f32 1.0, %v3912_v45 }
 0x6fa   : > { %3915 = vrcp.f32 %v2221_v22 }
 0x701   : > { %v2270_v10 = vpop.f32.mrf.mxu0  ;;  %v2311_v5 = vpop.f32.mrf.mxu1 }
 0x702   : > { %v2271_v58 = vadd.f32 %v2270_v10, %v5470_v13 }
 0x703   : > { %v2272_v4 = vpop.f32.mrf.mxu0  ;;  %v3666_v21 = vpop.f32.mrf.mxu1 }
 0x704   : > { %v2317_v12 = vadd.f32 %v3232_v6, %v2271_v58  ;;  %v2273_v40 = vadd.f32 %v2272_v4, %v4411_v53 }
 0x705   : > { %v3914_v9 = vpop.eup %3913  ;;  %v2274_v8 = vpop.f32.mrf.mxu0 }
 0x706   : > { %v2314_v0 = vpop.f32.mrf.mxu1  ;;  %v2224_v37 = vmul.f32 %v3914_v9, %v2202_v18  ;;  %v3233_v38 = vmul.f32 -1.442695, %v2317_v12  ;;  %v2327_v48 = vadd.f32 %v2325_v47, %v2273_v40  ;;  %v2312_v18 = vadd.f32 %v2311_v5, %v4419_v24  ;;  %v2455_v40 = vld [vmem:[%s4402_s9] sm:$0x3f] }
 0x707   : > { %v2275_v41 = vpop.f32.mrf.mxu0  ;;  %v3916_v49 = vpop.eup %3915 }
 0x708   : > { %v3667_v42 = vpop.f32.mrf.mxu1  ;;  %v2227_v32 = vadd.f32 %v2225_v54, %v2224_v37  ;;  %3917 = vpow2.f32 %v3233_v38  ;;  %v3234_v43 = vmul.f32 -1.442695, %v2327_v48  ;;  %v2229_v44 = vsub.f32 1.0, %v3916_v49 }
 0x709   : > { %v2231_v22 = vmul.f32 %v3916_v49, %v5039_v2  ;;  %v2335_v54 = vrot.slane %v3232_v6, 4 }
 0x70a   : > { %3919 = vtanh.f32 %v2227_v32 }
 0x70b   : > { %3921 = vpow2.f32 %v3234_v43 }
 0x715   : > { %v3918_v57 = vpop.eup %3917 }
 0x716   : > { %v2321_v46 = vadd.f32 1.0, %v3918_v57 }
 0x717   : > { %v3920_v45 = vpop.eup %3919 }
 0x718   : > { %3923 = vrcp.f32 %v2321_v46  ;;  %v2230_v10 = vmul.f32 %v3920_v45, %v2229_v44  ;;  %v3922_v21 = vpop.eup %3921  ;;  %v2546_v45 = vrot.slane %v2455_v40, 2 }
 0x719   : > { %v2331_v2 = vadd.f32 1.0, %v3922_v21 }
 0x71a   : > { %v5143_v58 = vadd.f32 %v2231_v22, %v2230_v10 }
 0x71b   : > { %3925 = vrcp.f32 %v2331_v2 }
 0x71c   : > { %2343 = vst [vmem:[#allocation2 + $0x18] sm:$0x3] %v5143_v58  ;;  %v2347_v4 = vpack.c.bf16 %v5143_v58, %v5143_v58 }
 0x71e   : > { %2381 = vmatmul.mubr.bf16.vlgmr.msra.gmra.mxu0 %v2347_v4  ;;  %3685 = vmatmul.mubr.bf16.vlgmr.msra.gmra.mxu1 %v2347_v4 }
 0x71f   : > { %2458 = vmatpush1.bf16.msra.mxu0 %v4770_v29  ;;  %3689 = vmatpush3.bf16.msra.mxu1 %v4774_v31 }
 0x720   : > { %2459 = vmatprep.subr.bf16.mxu0 %v4778_v51  ;;  %3690 = vmatprep.subr.bf16.mxu1 %v5383_v14 }
 0x721   : > { %2489 = vmatprep.mubr.bf16.mxu0 %v5384_v52  ;;  %3704 = vmatprep.mubr.msk.bf16.mxu1 %vm4029_vm0, %v5383_v14 }
 0x723   : > { %2460 = vmatpush1.bf16.msra.mxu0 %v4786_v34  ;;  %3691 = vmatpush3.bf16.msra.mxu1 %v4790_v36 }
 0x724   : > { %2461 = vmatprep.subr.bf16.mxu0 %v4796_v61  ;;  %3692 = vmatprep.subr.bf16.mxu1 %v5383_v14 }
 0x725   : > { %v3924_v29 = vpop.eup %3923 }
 0x726   : > { %v2334_v31 = vmul.f32 %v3924_v29, %v2312_v18 }
 0x727   : > { %2462 = vmatpush1.bf16.msra.mxu0 %v4801_v55  ;;  %3693 = vmatpush3.bf16.msra.mxu1 %v4805_v26 }
 0x728   : > { %v2337_v52 = vadd.f32 %v2335_v54, %v2334_v31  ;;  %2463 = vmatprep.subr.bf16.mxu0 %v4809_v60  ;;  %3694 = vmatprep.subr.bf16.mxu1 %v5383_v14  ;;  %v3926_v51 = vpop.eup %3925 }
 0x729   : > { %v2339_v34 = vsub.f32 1.0, %v3926_v51  ;;  %v2341_v55 = vmul.f32 %v3926_v51, %v5084_v19 }
 0x72a   : > { %3927 = vtanh.f32 %v2337_v52 }
 0x72b   : > { %2464 = vmatpush1.bf16.msra.mxu0 %v4814_v50  ;;  %3695 = vmatpush3.bf16.msra.mxu1 %v4818_v23 }
 0x72c   : > { %2465 = vmatprep.subr.bf16.mxu0 %v4822_v1  ;;  %3696 = vmatprep.subr.bf16.mxu1 %v5383_v14 }
 0x72f   : > { %2466 = vmatpush1.bf16.msra.mxu0 %v4827_v20  ;;  %3697 = vmatpush3.bf16.msra.mxu1 %v4831_v11 }
 0x730   : > { %2467 = vmatprep.subr.bf16.mxu0 %v4835_v16  ;;  %3698 = vmatprep.subr.bf16.mxu1 %v5383_v14 }
 0x733   : > { %2468 = vmatpush1.bf16.msra.mxu0 %v4840_v27  ;;  %3699 = vmatpush3.bf16.msra.mxu1 %v4844_v56  ;;  %v3235_v27 = vld [vmem:[%s4375_s22 + $0x2a] sm:$0x3f] }
 0x734   : > { %2469 = vmatprep.subr.bf16.mxu0 %v4848_v3  ;;  %3700 = vmatprep.subr.bf16.mxu1 %v5383_v14  ;;  %v2437_v12 = vrot.slane %v3235_v27, 2  ;;  %v2447_v57 = vrot.slane %v3235_v27, 4 }
 0x737   : > { %v3928_v36 = vpop.eup %3927  ;;  %2470 = vmatpush1.bf16.msra.mxu0 %v4853_v33  ;;  %3701 = vmatpush3.bf16.msra.mxu1 %v4857_v28 }
 0x738   : > { %2471 = vmatprep.subr.bf16.mxu0 %v5437_v35  ;;  %3702 = vmatprep.subr.bf16.mxu1 %v5383_v14  ;;  %v2340_v61 = vmul.f32 %v3928_v36, %v2339_v34 }
 0x73a   : > { %v5181_v26 = vadd.f32 %v2341_v55, %v2340_v61 }
 0x73b   : > { %2472 = vmatpush1.bf16.msra.mxu0 %v4869_v62  ;;  %3703 = vmatpush3.bf16.msra.mxu1 %v4873_v7 }
 0x73c   : > { %2344 = vst [vmem:[#allocation2 + $0x6] sm:$0x3] %v5181_v26  ;;  %v2456_v60 = vpack.c.bf16 %v5181_v26, %v5181_v26 }
 0x73e   : > { %2490 = vmatmul.mubr.bf16.vlgmr.msra.gmra.mxu0 %v2456_v60  ;;  %3705 = vmatmul.mubr.bf16.vlgmr.msra.gmra.mxu1 %v2456_v60 }
 0x743   : > { %v5188_v50 = vld [vmem:[#allocation2 + $0x4] sm:$0xf] }
 0x744   : > { %v2594_v14 = vmul.f32 %v4947_v25, %v5188_v50 }
 0x746   : > { %v2623_v23 = vrot.slane %v2594_v14, %v4937_v63 }
 0x748   : > { %v2624_v1 = vcombine.high %v2623_v23, %v2623_v23  ;;  %v2695_v20 = vsel %vm2689_vm1, %v2623_v23, 0.0 }
 0x74a   : > { %v2696_v11 = vsel %vm2689_vm1, %v2624_v1, 0.0 }
 0x74b   : > { %v2697_v16 = vadd.f32 %v2696_v11, %v2695_v20  ;;  %v2556_v20 = vrot.slane %v2455_v40, 4 }
 0x74d   : > { %2698 = vadd.xlane.f32.xlu0 %v2697_v16 }
 0x7de   : > { %v2382_v56 = vpop.f32.mrf.mxu0  ;;  %v2423_v3 = vpop.f32.mrf.mxu1 }
 0x7df   : > { %v2383_v33 = vadd.f32 %v2382_v56, %v5468_v59 }
 0x7e0   : > { %v2384_v28 = vpop.f32.mrf.mxu0  ;;  %v3686_v62 = vpop.f32.mrf.mxu1 }
 0x7e1   : > { %v2429_v7 = vadd.f32 %v3235_v27, %v2383_v33  ;;  %v2385_v5 = vadd.f32 %v2384_v28, %v5469_v39  ;;  %v2424_v39 = vadd.f32 %v2423_v3, %v5471_v15 }
 0x7e2   : > { %v2386_v35 = vpop.f32.mrf.mxu0  ;;  %v2426_v19 = vpop.f32.mrf.mxu1 }
 0x7e3   : > { %v3236_v6 = vmul.f32 -1.442695, %v2429_v7  ;;  %v2439_v8 = vadd.f32 %v2437_v12, %v2385_v5  ;;  %v5212_v12 = vld [vmem:[#allocation2 + $0x18] sm:$0xf] }
 0x7e4   : > { %v2387_v9 = vpop.f32.mrf.mxu0  ;;  %v3687_v47 = vpop.f32.mrf.mxu1 }
 0x7e5   : > { %3929 = vpow2.f32 %v3236_v6  ;;  %v3237_v0 = vmul.f32 -1.442695, %v2439_v8  ;;  %v2599_v9 = vmul.f32 %v4947_v25, %v5212_v12 }
 0x7e7   : > { %3931 = vpow2.f32 %v3237_v0  ;;  %v2663_v0 = vrot.slane %v2599_v9, %v4937_v63 }
 0x7f2   : > { %v3930_v37 = vpop.eup %3929 }
 0x7f3   : > { %v2433_v38 = vadd.f32 1.0, %v3930_v37 }
 0x7f4   : > { %v3932_v59 = vpop.eup %3931 }
 0x7f5   : > { %3933 = vrcp.f32 %v2433_v38  ;;  %v2443_v32 = vadd.f32 1.0, %v3932_v59  ;;  %v2664_v59 = vcombine.high %v2663_v0, %v2663_v0 }
 0x7f7   : > { %3935 = vrcp.f32 %v2443_v32  ;;  %v2720_v32 = vsel %vm2689_vm1, %v2663_v0, 0.0 }
 0x7fe   : > { %v2491_v41 = vpop.f32.mrf.mxu0  ;;  %v2532_v42 = vpop.f32.mrf.mxu1 }
 0x7ff   : > { %v2492_v48 = vadd.f32 %v2491_v41, %v5470_v13  ;;  %v2533_v1 = vadd.f32 %v2532_v42, %v4419_v24  ;;  %v2721_v42 = vsel %vm2689_vm1, %v2664_v59, 0.0 }
 0x800   : > { %v2493_v43 = vpop.f32.mrf.mxu0  ;;  %v3706_v49 = vpop.f32.mrf.mxu1 }
 0x801   : > { %v2538_v46 = vadd.f32 %v2492_v48, %v2455_v40  ;;  %v2494_v2 = vadd.f32 %v2493_v43, %v4411_v53  ;;  %v2722_v48 = vadd.f32 %v2721_v42, %v2720_v32  ;;  %v2714_v49 = vpop.xlane.xlu0 %2713 }
 0x802   : > { %v3934_v44 = vpop.eup %3933  ;;  %v2495_v10 = vpop.f32.mrf.mxu0 }
 0x803   : > { %v2535_v22 = vpop.f32.mrf.mxu1  ;;  %v2446_v4 = vmul.f32 %v3934_v44, %v2424_v39  ;;  %v3238_v21 = vmul.f32 -1.442695, %v2538_v46  ;;  %v2548_v13 = vadd.f32 %v2546_v45, %v2494_v2  ;;  %v3240_v46 = vld [vmem:[%s425_s16] ss:$0 sm:$0xff] }
 0x804   : > { %v2496_v18 = vpop.f32.mrf.mxu0  ;;  %v3936_v15 = vpop.eup %3935  ;;  %v2741_v10 = vadd.f32 %v3240_v46, %v2714_v49 }
 0x805   : > { %v3707_v54 = vpop.f32.mrf.mxu1  ;;  %v2449_v29 = vadd.f32 %v2447_v57, %v2446_v4  ;;  %3937 = vpow2.f32 %v3238_v21  ;;  %v3239_v31 = vmul.f32 -1.442695, %v2548_v13  ;;  %v2451_v51 = vsub.f32 1.0, %v3936_v15  ;;  %v2699_v57 = vpop.xlane.xlu0 %2698 }
 0x806   : > { %v2453_v55 = vmul.f32 %v3936_v15, %v5143_v58  ;;  %v2738_v22 = vadd.f32 %v3240_v46, %v2699_v57 }
 0x807   : > { %3939 = vtanh.f32 %v2449_v29 }
 0x808   : > { %3941 = vpow2.f32 %v3239_v31  ;;  %v2750_v31 = vsel %vm2745_vm2, %v2741_v10, -inf  ;;  %v2747_v15 = vsel %vm2745_vm2, %v2738_v22, -inf }
 0x812   : > { %v3938_v52 = vpop.eup %3937 }
 0x813   : > { %v2542_v34 = vadd.f32 1.0, %v3938_v52 }
 0x814   : > { %v3940_v36 = vpop.eup %3939 }
 0x815   : > { %v2452_v61 = vmul.f32 %v3940_v36, %v2451_v51  ;;  %3943 = vrcp.f32 %v2542_v34  ;;  %v3942_v53 = vpop.eup %3941 }
 0x816   : > { %v2552_v14 = vadd.f32 1.0, %v3942_v53 }
 0x817   : > { %v2454_v60 = vadd.f32 %v2453_v55, %v2452_v61 }
 0x818   : > { %3945 = vrcp.f32 %v2552_v14 }
 0x819   : > { %2564 = vst [vmem:[#allocation2 + $0x1c] sm:$0x3] %v2454_v60 }
 0x820   : > { %v5203_v23 = vld [vmem:[#allocation2 + $0x1c] sm:$0xf] }
 0x821   : > { %v2600_v11 = vmul.f32 %v4947_v25, %v5203_v23 }
 0x822   : > { %v3944_v16 = vpop.eup %3943 }
 0x823   : > { %v2555_v27 = vmul.f32 %v3944_v16, %v2533_v1  ;;  %v2671_v56 = vrot.slane %v2600_v11, %v4937_v63 }
 0x825   : > { %v2558_v3 = vadd.f32 %v2556_v20, %v2555_v27  ;;  %v2672_v58 = vcombine.high %v2671_v56, %v2671_v56  ;;  %v2725_v33 = vsel %vm2689_vm1, %v2671_v56, 0.0  ;;  %v3946_v7 = vpop.eup %3945 }
 0x826   : > { %v2560_v24 = vsub.f32 1.0, %v3946_v7  ;;  %v2562_v6 = vmul.f32 %v3946_v7, %v5181_v26 }
 0x827   : > { %3947 = vtanh.f32 %v2558_v3  ;;  %v2726_v28 = vsel %vm2689_vm1, %v2672_v58, 0.0 }
 0x828   : > { %v2727_v62 = vadd.f32 %v2726_v28, %v2725_v33 }
 0x82a   : > { %2728 = vadd.xlane.f32.xlu1 %v2727_v62 }
 0x834   : > { %v3948_v35 = vpop.eup %3947 }
 0x835   : > { %v2561_v19 = vmul.f32 %v3948_v35, %v2560_v24 }
 0x837   : > { %v2563_v5 = vadd.f32 %v2562_v6, %v2561_v19 }
 0x839   : > { %2565 = vst [vmem:[#allocation2 + $0x2] sm:$0x3] %v2563_v5 }
 0x840   : > { %v5216_v47 = vld [vmem:[#allocation2] sm:$0xf] }
 0x841   : > { %v2593_v8 = vmul.f32 %v4947_v25, %v5216_v47  ;;  %v2709_v25 = vpop.xlane.xlu1 %2708 }
 0x842   : > { %v2740_v2 = vadd.f32 %v3240_v46, %v2709_v25 }
 0x843   : > { %v2615_v37 = vrot.slane %v2593_v8, %v4937_v63 }
 0x844   : > { %v2749_v36 = vsel %vm2745_vm2, %v2740_v2, -inf }
 0x845   : > { %v2616_v38 = vcombine.high %v2615_v37, %v2615_v37  ;;  %v2690_v26 = vsel %vm2689_vm1, %v2615_v37, 0.0  ;;  %v2719_v43 = vpop.xlane.xlu1 %2718 }
 0x846   : > { %v2742_v18 = vadd.f32 %v3240_v46, %v2719_v43 }
 0x847   : > { %v2691_v40 = vsel %vm2689_vm1, %v2616_v38, 0.0 }
 0x848   : > { %v2692_v41 = vadd.f32 %v2691_v40, %v2690_v26  ;;  %v2752_v61 = vsel %vm2745_vm2, %v2742_v18, -inf }
 0x849   : > { %v2704_v39 = vpop.xlane.xlu1 %2703  ;;  %v2753_v53 = vmax.f32 %v2747_v15, %v2752_v61  ;;  %v2871_v61 = vrot.slane %v5188_v50, %v4937_v63 }
 0x84a   : > { %2693 = vadd.xlane.f32.xlu0 %v2692_v41  ;;  %v2739_v54 = vadd.f32 %v3240_v46, %v2704_v39 }
 0x84c   : > { %v2748_v55 = vsel %vm2745_vm2, %v2739_v54, -inf }
 0x84e   : > { %2723 = vadd.xlane.f32.xlu0 %v2722_v48 }
 0x8b3   : > { %v2729_v44 = vpop.xlane.xlu1 %2728 }
 0x8b4   : > { %v2744_v4 = vadd.f32 %v3240_v46, %v2729_v44 }
 0x8b6   : > { %v2756_v52 = vsel %vm2745_vm2, %v2744_v4, -inf }
 0x8b7   : > { %v2757_v14 = vmax.f32 %v2749_v36, %v2756_v52 }
 0x8d3   : > { %v2694_v45 = vpop.xlane.xlu0 %2693 }
 0x8d4   : > { %v2737_v21 = vadd.f32 %v3240_v46, %v2694_v45 }
 0x8d6   : > { %v2746_v29 = vsel %vm2745_vm2, %v2737_v21, -inf }
 0x8d7   : > { %v2724_v13 = vpop.xlane.xlu0 %2723  ;;  %v2751_v34 = vmax.f32 %v2746_v29, %v2750_v31 }
 0x8d8   : > { %v2743_v51 = vadd.f32 %v3240_v46, %v2724_v13 }
 0x8d9   : > { %v2758_v20 = vmax.f32 %v2751_v34, %v2753_v53  ;;  %v2872_v53 = vcombine.high %v2871_v61, %v2871_v61 }
 0x8da   : > { %v2754_v60 = vsel %vm2745_vm2, %v2743_v51, -inf }
 0x8db   : > { %v2755_v1 = vmax.f32 %v2748_v55, %v2754_v60  ;;  %v2863_v55 = vrot.slane %v5216_v47, %v4937_v63  ;;  %v2879_v60 = vrot.slane %v5100_v30, %v4937_v63 }
 0x8dd   : > { %v2759_v11 = vmax.f32 %v2755_v1, %v2757_v14  ;;  %v2864_v14 = vcombine.high %v2863_v55, %v2863_v55 }
 0x8df   : > { %v2760_v16 = vmax.f32 %v2758_v20, %v2759_v11 }
 0x8e1   : > { %v2761_v27 = vsub.f32 %v2737_v21, %v2760_v16  ;;  %v2763_v56 = vsub.f32 %v2739_v54, %v2760_v16  ;;  %v2762_v58 = vsub.f32 %v2738_v22, %v2760_v16  ;;  %v2764_v33 = vsub.f32 %v2740_v2, %v2760_v16 }
 0x8e2   : > { %v2765_v62 = vsub.f32 %v2741_v10, %v2760_v16  ;;  %v2766_v24 = vsub.f32 %v2742_v18, %v2760_v16  ;;  %v2767_v19 = vsub.f32 %v2743_v51, %v2760_v16  ;;  %v2768_v5 = vsub.f32 %v2744_v4, %v2760_v16 }
 0x8e3   : > { %v2769_v3 = vmul.f32 1.442695, %v2761_v27  ;;  %v2773_v28 = vmul.f32 1.442695, %v2763_v56  ;;  %v2771_v7 = vmul.f32 1.442695, %v2762_v58 }
 0x8e4   : > { %v2775_v35 = vmul.f32 1.442695, %v2764_v33  ;;  %v2777_v6 = vmul.f32 1.442695, %v2765_v62  ;;  %v2779_v9 = vmul.f32 1.442695, %v2766_v24 }
 0x8e5   : > { %3949 = vpow2.f32 %v2769_v3  ;;  %v2781_v8 = vmul.f32 1.442695, %v2767_v19  ;;  %v2783_v0 = vmul.f32 1.442695, %v2768_v5  ;;  %v2880_v3 = vcombine.high %v2879_v60, %v2879_v60 }
 0x8e6   : > { %3951 = vpow2.f32 %v2773_v28  ;;  %v4017_v58 = vld.sshfl [vmem:[#allocation2 + $0xc] sm:$0x33 pattern:$0x76325410] }
 0x8e7   : > { %3953 = vpow2.f32 %v2771_v7  ;;  %v2888_v5 = vcombine.high %v4017_v58, %v4017_v58 }
 0x8e8   : > { %3955 = vpow2.f32 %v2775_v35 }
 0x8e9   : > { %3957 = vpow2.f32 %v2777_v6 }
 0x8ea   : > { %3959 = vpow2.f32 %v2779_v9  ;;  %v4018_v9 = vld.sshfl [vmem:[#allocation2 + $0x10] sm:$0x33 pattern:$0x76325410] }
 0x8eb   : > { %3961 = vpow2.f32 %v2781_v8 }
 0x8ec   : > { %3963 = vpow2.f32 %v2783_v0 }
 0x8f2   : > { %v3950_v37 = vpop.eup %3949 }
 0x8f3   : > { %v3952_v38 = vpop.eup %3951  ;;  %v2785_v59 = vsel %vm2745_vm2, %v3950_v37, 0.0 }
 0x8f4   : > { %v3954_v26 = vpop.eup %3953  ;;  %v2788_v32 = vsel %vm2745_vm2, %v3952_v38, 0.0 }
 0x8f5   : > { %v2786_v40 = vsel %vm2745_vm2, %v3954_v26, 0.0  ;;  %v3956_v41 = vpop.eup %3955 }
 0x8f6   : > { %v2787_v42 = vadd.f32 %v2786_v40, %v2785_v59  ;;  %v3958_v48 = vpop.eup %3957  ;;  %v2790_v43 = vsel %vm2745_vm2, %v3956_v41, 0.0 }
 0x8f7   : > { %v3960_v49 = vpop.eup %3959  ;;  %v2792_v57 = vsel %vm2745_vm2, %v3958_v48, 0.0 }
 0x8f8   : > { %v2789_v25 = vadd.f32 %v2788_v32, %v2787_v42  ;;  %v3962_v46 = vpop.eup %3961  ;;  %v2794_v45 = vsel %vm2745_vm2, %v3960_v49, 0.0  ;;  %v2903_v42 = vrot.slane %v5053_v17, %v4937_v63 }
 0x8f9   : > { %v3964_v10 = vpop.eup %3963  ;;  %v2796_v4 = vsel %vm2745_vm2, %v3962_v46, 0.0 }
 0x8fa   : > { %v2791_v39 = vadd.f32 %v2790_v43, %v2789_v25  ;;  %v2798_v2 = vsel %vm2745_vm2, %v3964_v10, 0.0 }
 0x8fc   : > { %v2793_v44 = vadd.f32 %v2792_v57, %v2791_v39 }
 0x8fe   : > { %v2795_v22 = vadd.f32 %v2794_v45, %v2793_v44  ;;  %v2911_v44 = vrot.slane %v5212_v12, %v4937_v63 }
 0x900   : > { %v2797_v21 = vadd.f32 %v2796_v4, %v2795_v22 }
 0x902   : > { %v2799_v18 = vadd.f32 %v2798_v2, %v2797_v21 }
 0x904   : > { %3965 = vrcp.f32 %v2799_v18  ;;  %v2912_v18 = vcombine.high %v2911_v44, %v2911_v44 }
 0x911   : > { %v3966_v54 = vpop.eup %3965 }
 0x912   : > { %v2802_v29 = vmul.f32 %v3966_v54, %v3954_v26  ;;  %v2801_v13 = vmul.f32 %v3966_v54, %v3950_v37  ;;  %v2803_v31 = vmul.f32 %v3966_v54, %v3952_v38  ;;  %v2804_v15 = vmul.f32 %v3966_v54, %v3956_v41 }
 0x913   : > { %v2805_v52 = vmul.f32 %v3966_v54, %v3958_v48  ;;  %v2806_v51 = vmul.f32 %v3966_v54, %v3960_v49  ;;  %v2807_v34 = vmul.f32 %v3966_v54, %v3962_v46  ;;  %v2808_v36 = vmul.f32 %v3966_v54, %v3964_v10 }
 0x914   : > { %2816 = vperm.xlu1 %3724, %v2802_v29   ;;  %2811 = vperm.xlu0 %3723, %v2801_v13   ;;  %v2896_v41 = vcombine.high %v4018_v9, %v4018_v9  ;;  %v2904_v46 = vcombine.high %v2903_v42, %v2903_v42  ;;  %v2919_v54 = vrot.slane %v5203_v23, %v4937_v63 }
 0x918   : > { %2821 = vperm.xlu1 %3724, %v2803_v31  }
 0x91c   : > { %2826 = vperm.xlu1 %3724, %v2804_v15  }
 0x920   : > { %2831 = vperm.xlu1 %3724, %v2805_v52  }
 0x924   : > { %2836 = vperm.xlu1 %3724, %v2806_v51  }
 0x928   : > { %2841 = vperm.xlu1 %3724, %v2807_v34   ;;  %v2920_v34 = vcombine.high %v2919_v54, %v2919_v54 }
 0x92c   : > { %2846 = vperm.xlu1 %3724, %v2808_v36  }
 0x98f   : > { %v2817_v1 = vpop.permute.xlu1 %2816  ;;  %v2812_v20 = vpop.permute.xlu0 %2811 }
 0x990   : > { %v2939_v11 = vmul.f32 %v2871_v61, %v2817_v1  ;;  %v2940_v16 = vmul.f32 %v2872_v53, %v2817_v1  ;;  %v2937_v27 = vmul.f32 %v2863_v55, %v2812_v20  ;;  %v2938_v56 = vmul.f32 %v2864_v14, %v2812_v20 }
 0x992   : > { %v2954_v33 = vsel %vm2689_vm1, %v2939_v11, 0.0  ;;  %v2969_v50 = vsel %vm2689_vm1, %v2940_v16, 0.0  ;;  %v2953_v28 = vsel %vm2689_vm1, %v2937_v27, 0.0  ;;  %v2968_v47 = vsel %vm2689_vm1, %v2938_v56, 0.0 }
 0x993   : > { %v2955_v62 = vadd.f32 %v2954_v33, %v2953_v28  ;;  %v2970_v30 = vadd.f32 %v2969_v50, %v2968_v47  ;;  %v2822_v7 = vpop.permute.xlu1 %2821 }
 0x994   : > { %v2941_v24 = vmul.f32 %v2879_v60, %v2822_v7  ;;  %v2942_v35 = vmul.f32 %v2880_v3, %v2822_v7 }
 0x996   : > { %v2956_v19 = vsel %vm2689_vm1, %v2941_v24, 0.0  ;;  %v2971_v6 = vsel %vm2689_vm1, %v2942_v35, 0.0 }
 0x997   : > { %v2957_v8 = vadd.f32 %v2956_v19, %v2955_v62  ;;  %v2972_v0 = vadd.f32 %v2971_v6, %v2970_v30  ;;  %v2827_v37 = vpop.permute.xlu1 %2826 }
 0x998   : > { %v2943_v38 = vmul.f32 %v4017_v58, %v2827_v37  ;;  %v2944_v59 = vmul.f32 %v2888_v5, %v2827_v37 }
 0x99a   : > { %v2958_v26 = vsel %vm2689_vm1, %v2943_v38, 0.0  ;;  %v2973_v40 = vsel %vm2689_vm1, %v2944_v59, 0.0 }
 0x99b   : > { %v2959_v32 = vadd.f32 %v2958_v26, %v2957_v8  ;;  %v2974_v48 = vadd.f32 %v2973_v40, %v2972_v0  ;;  %v2832_v25 = vpop.permute.xlu1 %2831 }
 0x99c   : > { %v2945_v43 = vmul.f32 %v4018_v9, %v2832_v25  ;;  %v2946_v49 = vmul.f32 %v2896_v41, %v2832_v25 }
 0x99e   : > { %v2960_v39 = vsel %vm2689_vm1, %v2945_v43, 0.0  ;;  %v2975_v57 = vsel %vm2689_vm1, %v2946_v49, 0.0 }
 0x99f   : > { %v2961_v45 = vadd.f32 %v2960_v39, %v2959_v32  ;;  %v2976_v10 = vadd.f32 %v2975_v57, %v2974_v48  ;;  %v2837_v22 = vpop.permute.xlu1 %2836 }
 0x9a0   : > { %v2947_v4 = vmul.f32 %v2903_v42, %v2837_v22  ;;  %v2948_v21 = vmul.f32 %v2904_v46, %v2837_v22 }
 0x9a2   : > { %v2962_v17 = vsel %vm2689_vm1, %v2947_v4, 0.0  ;;  %v2977_v2 = vsel %vm2689_vm1, %v2948_v21, 0.0 }
 0x9a3   : > { %v2963_v29 = vadd.f32 %v2962_v17, %v2961_v45  ;;  %v2978_v13 = vadd.f32 %v2977_v2, %v2976_v10  ;;  %v2842_v31 = vpop.permute.xlu1 %2841 }
 0x9a4   : > { %v2949_v15 = vmul.f32 %v2911_v44, %v2842_v31  ;;  %v2950_v12 = vmul.f32 %v2912_v18, %v2842_v31 }
 0x9a6   : > { %v2964_v52 = vsel %vm2689_vm1, %v2949_v15, 0.0  ;;  %v2979_v51 = vsel %vm2689_vm1, %v2950_v12, 0.0 }
 0x9a7   : > { %v2965_v36 = vadd.f32 %v2964_v52, %v2963_v29  ;;  %v2980_v61 = vadd.f32 %v2979_v51, %v2978_v13  ;;  %v2847_v55 = vpop.permute.xlu1 %2846 }
 0x9a8   : > { %v2951_v60 = vmul.f32 %v2919_v54, %v2847_v55  ;;  %v2952_v53 = vmul.f32 %v2920_v34, %v2847_v55 }
 0x9aa   : > { %v2966_v14 = vsel %vm2689_vm1, %v2951_v60, 0.0  ;;  %v2981_v63 = vsel %vm2689_vm1, %v2952_v53, 0.0 }
 0x9ab   : > { %v2967_v23 = vadd.f32 %v2966_v14, %v2965_v36  ;;  %v2982_v1 = vadd.f32 %v2981_v63, %v2980_v61 }
 0x9ad   : > { %v2983_v20 = vmul.f32 0.125, %v2967_v23  ;;  %v2984_v11 = vmul.f32 0.125, %v2982_v1 }
 0x9af   : > { %v2987_v16 = vcombine.low %v2983_v20, %v2984_v11 }
 0x9b1   : > { %3241 = vst.sshfl [vmem:[%s430_s19] sm:$0x33 pattern:$0x76325410] %v2987_v16 }
 0x9b2 PF: > { %s18_s27 = sadd.s32 1, %s4025_s27  }
 0x9b3   : > { %p15_p5 = scmp.ge.s32.totalorder %s18_s27, 5  }
 0x9b5   :  { %17 = sbr.rel (!%p15_p5) target bundleno = 1 (0x1), region = 124 }

</bundles_post_ra>
